<compile_context>
chip_gen: v7x
topology: tpu7x:2x2x1
jax: 0.10.0
libtpu: 0.0.40
codegen_flags: <defaults>
</compile_context>

<pallas_src>
import functools

import jax
import jax.numpy as jnp
from jax.experimental import pallas as pl
from jax.experimental.pallas import tpu as pltpu

BN_EPS = 1e-5


# --------------------------------------------------------------------------
# Per-generation VMEM budget (v7x has only 64 MiB/TC; v5e/v6e have 128 MiB).
# --------------------------------------------------------------------------
def _vmem_limit_bytes():
    try:
        cap = int(pltpu.get_tpu_info().vmem_capacity_bytes)
    except Exception:
        cap = 128 << 20
    return int(min(cap * 3 // 4, 96 << 20))


_VMEM_LIMIT = _vmem_limit_bytes()


def _cparams(sem):
    return pltpu.CompilerParams(dimension_semantics=sem,
                                vmem_limit_bytes=_VMEM_LIMIT)


def _pick_tm(M, per_row_bytes):
    """Largest row tile (256/512 preferred) that divides M and fits VMEM."""
    budget = max(_VMEM_LIMIT // 2, 8 << 20)
    for t in (1024, 512, 256, 128, 64, 32, 16, 8):
        if M % t == 0 and t * per_row_bytes <= budget:
            return t
    return M  # full-extent block is always legal


# --------------------------------------------------------------------------
# Matmul (bf16 in, f32 acc) with per-tile BN partial statistics (parallel grid)
# --------------------------------------------------------------------------
def _mm_stats_kernel(x_ref, w_ref, y_ref, s_ref, ss_ref):
    y = jnp.dot(x_ref[...], w_ref[...], preferred_element_type=jnp.float32)
    y_ref[...] = y.astype(y_ref.dtype)
    s_ref[...] = jnp.sum(y, axis=0, keepdims=True)[None]       # (1,1,C) partial
    ss_ref[...] = jnp.sum(y * y, axis=0, keepdims=True)[None]


def matmul_with_stats(x, w, out_dtype=jnp.bfloat16):
    """(M,K)@(K,C) in bf16 -> y (M,C) out_dtype, colsum (1,C), colsumsq (1,C)."""
    x = x.astype(jnp.bfloat16)
    w = w.astype(jnp.bfloat16)
    M, K = x.shape
    _, C = w.shape
    tm = _pick_tm(M, 4 * K + 8 * C)       # double-buffered bf16 x + y (cons.)
    G = M // tm
    y, s_p, ss_p = pl.pallas_call(
        _mm_stats_kernel,
        out_shape=(jax.ShapeDtypeStruct((M, C), out_dtype),
                   jax.ShapeDtypeStruct((G, 1, C), jnp.float32),
                   jax.ShapeDtypeStruct((G, 1, C), jnp.float32)),
        grid_spec=pltpu.PrefetchScalarGridSpec(
            num_scalar_prefetch=0,
            grid=(G,),
            in_specs=[pl.BlockSpec((tm, K), lambda i: (i, 0)),
                      pl.BlockSpec((K, C), lambda i: (0, 0))],
            out_specs=(pl.BlockSpec((tm, C), lambda i: (i, 0)),
                       pl.BlockSpec((1, 1, C), lambda i: (i, 0, 0)),
                       pl.BlockSpec((1, 1, C), lambda i: (i, 0, 0)))),
        compiler_params=_cparams(("parallel",)),
    )(x, w)
    return y, jnp.sum(s_p, axis=0), jnp.sum(ss_p, axis=0)


# --------------------------------------------------------------------------
# Direct (non-materialized) 3x3 stride-1 conv: per-sample flat-shift matmuls
# --------------------------------------------------------------------------
def _conv3x3_s1_kernel(x_ref, w_ref, y_ref, s_ref, ss_ref, *, Ho, Wo, Wp):
    n = Ho * Wp
    acc = None
    for dy in range(3):
        for dx in range(3):
            off = dy * Wp + dx
            d = jnp.dot(x_ref[0, off:off + n, :], w_ref[dy * 3 + dx],
                        preferred_element_type=jnp.float32)
            acc = d if acc is None else acc + d
    y_ref[0] = acc.astype(y_ref.dtype)
    # mask the Wp-Wo junk columns out of the BN batch statistics
    col = jax.lax.broadcasted_iota(jnp.int32, (n, 1), 0) % Wp
    yv = jnp.where(col < Wo, acc, 0.0)
    s_ref[...] = jnp.sum(yv, axis=0, keepdims=True)[None]
    ss_ref[...] = jnp.sum(yv * yv, axis=0, keepdims=True)[None]


def conv3x3_s1_direct_raw(x_nhwc, w):
    N, H, W, Cin = x_nhwc.shape
    Cout = w.shape[-1]
    Ho, Wo = H, W
    Wp = W + 2
    Hpp = H + 3                       # 1 top + 1 bottom pad + 1 safety row
    xp = jnp.pad(x_nhwc.astype(jnp.bfloat16), ((0, 0), (1, 2), (1, 1), (0, 0)))
    xf = xp.reshape(N, Hpp * Wp, Cin)
    wr = w.reshape(9, Cin, Cout).astype(jnp.bfloat16)
    n = Ho * Wp
    kern = functools.partial(_conv3x3_s1_kernel, Ho=Ho, Wo=Wo, Wp=Wp)
    y, s_p, ss_p = pl.pallas_call(
        kern,
        out_shape=(jax.ShapeDtypeStruct((N, n, Cout), jnp.bfloat16),
                   jax.ShapeDtypeStruct((N, 1, Cout), jnp.float32),
                   jax.ShapeDtypeStruct((N, 1, Cout), jnp.float32)),
        grid_spec=pltpu.PrefetchScalarGridSpec(
            num_scalar_prefetch=0,
            grid=(N,),
            in_specs=[pl.BlockSpec((1, Hpp * Wp, Cin), lambda i: (i, 0, 0)),
                      pl.BlockSpec((9, Cin, Cout), lambda i: (0, 0, 0))],
            out_specs=(pl.BlockSpec((1, n, Cout), lambda i: (i, 0, 0)),
                       pl.BlockSpec((1, 1, Cout), lambda i: (i, 0, 0)),
                       pl.BlockSpec((1, 1, Cout), lambda i: (i, 0, 0)))),
        compiler_params=_cparams(("parallel",)),
    )(xf, wr)
    return y, jnp.sum(s_p, axis=0), jnp.sum(ss_p, axis=0), (N, Ho, Wo, Wp)


# --------------------------------------------------------------------------
# Direct 3x3 stride-2 conv via 4 parity planes (no im2col materialization)
# --------------------------------------------------------------------------
def _conv3x3_s2_kernel(ee_ref, eo_ref, oe_ref, oo_ref, w_ref,
                       y_ref, s_ref, ss_ref, *, Ho, Wo, Wp):
    n = Ho * Wp
    refs = ((ee_ref, eo_ref), (oe_ref, oo_ref))   # [row parity][col parity]
    acc = None
    for dy in range(3):
        for dx in range(3):
            ref = refs[dy % 2][dx % 2]
            off = (dy // 2) * Wp + (dx // 2)
            d = jnp.dot(ref[0, off:off + n, :], w_ref[dy * 3 + dx],
                        preferred_element_type=jnp.float32)
            acc = d if acc is None else acc + d
    y_ref[0] = acc.astype(y_ref.dtype)
    col = jax.lax.broadcasted_iota(jnp.int32, (n, 1), 0) % Wp
    yv = jnp.where(col < Wo, acc, 0.0)
    s_ref[...] = jnp.sum(yv, axis=0, keepdims=True)[None]
    ss_ref[...] = jnp.sum(yv * yv, axis=0, keepdims=True)[None]


def conv3x3_s2_direct_raw(x_nhwc, w):
    N, H, W, Cin = x_nhwc.shape                    # H, W even
    Cout = w.shape[-1]
    Ho, Wo = H // 2, W // 2
    Wp = Wo + 1
    Hp2 = Ho + 2
    xp = jnp.pad(x_nhwc.astype(jnp.bfloat16), ((0, 0), (1, 3), (1, 1), (0, 0)))
    planes = [xp[:, a::2, b::2, :].reshape(N, Hp2 * Wp, Cin)
              for a in (0, 1) for b in (0, 1)]     # ee, eo, oe, oo
    wr = w.reshape(9, Cin, Cout).astype(jnp.bfloat16)
    n = Ho * Wp
    kern = functools.partial(_conv3x3_s2_kernel, Ho=Ho, Wo=Wo, Wp=Wp)
    plane_spec = pl.BlockSpec((1, Hp2 * Wp, Cin), lambda i: (i, 0, 0))
    y, s_p, ss_p = pl.pallas_call(
        kern,
        out_shape=(jax.ShapeDtypeStruct((N, n, Cout), jnp.bfloat16),
                   jax.ShapeDtypeStruct((N, 1, Cout), jnp.float32),
                   jax.ShapeDtypeStruct((N, 1, Cout), jnp.float32)),
        grid_spec=pltpu.PrefetchScalarGridSpec(
            num_scalar_prefetch=0,
            grid=(N,),
            in_specs=[plane_spec] * 4
                     + [pl.BlockSpec((9, Cin, Cout), lambda i: (0, 0, 0))],
            out_specs=(pl.BlockSpec((1, n, Cout), lambda i: (i, 0, 0)),
                       pl.BlockSpec((1, 1, Cout), lambda i: (i, 0, 0)),
                       pl.BlockSpec((1, 1, Cout), lambda i: (i, 0, 0)))),
        compiler_params=_cparams(("parallel",)),
    )(*planes, wr)
    return y, jnp.sum(s_p, axis=0), jnp.sum(ss_p, axis=0), (N, Ho, Wo, Wp)


# --------------------------------------------------------------------------
# BN (training-mode batch statistics) affine + optional residual + ReLU
# --------------------------------------------------------------------------
def _bn_affine(colsum, colsumsq, count, gamma, beta):
    mean = colsum / count
    var = jnp.maximum(colsumsq / count - mean * mean, 0.0)   # clamp, safer
    scale = gamma.reshape(1, -1) * jax.lax.rsqrt(var + BN_EPS)
    bias = beta.reshape(1, -1) - mean * scale
    return scale, bias


def _affine_kernel(y_ref, s_ref, b_ref, o_ref, *, relu):
    out = y_ref[...] * s_ref[...] + b_ref[...]
    if relu:
        out = jnp.maximum(out, 0.0)
    o_ref[...] = out.astype(o_ref.dtype)


def _affine_res_kernel(y_ref, s_ref, b_ref, r_ref, o_ref, *, relu):
    out = y_ref[...] * s_ref[...] + b_ref[...] + r_ref[...]
    if relu:
        out = jnp.maximum(out, 0.0)
    o_ref[...] = out.astype(o_ref.dtype)


def _affine_res2_kernel(y_ref, s_ref, b_ref, yd_ref, sd_ref, bd_ref, o_ref,
                        *, relu):
    out = (y_ref[...] * s_ref[...] + b_ref[...]
           + yd_ref[...] * sd_ref[...] + bd_ref[...])
    if relu:
        out = jnp.maximum(out, 0.0)
    o_ref[...] = out.astype(o_ref.dtype)


def apply_bn(y, scale, bias, *, relu=True, residual=None,
             res_y=None, res_scale=None, res_bias=None,
             out_dtype=jnp.float32):
    M, C = y.shape
    # lane-dense packing for narrow channel counts (masked-store avoidance)
    f = 1
    if C < 128 and 128 % C == 0 and M % (128 // C) == 0:
        f = 128 // C
    Mp, Cp = M // f, C * f
    prow = (lambda a: a) if f == 1 else (lambda a: a.reshape(Mp, Cp))
    pvec = (lambda v: v) if f == 1 else (lambda v: jnp.tile(v, (1, f)))

    yp, sp, bp = prow(y), pvec(scale), pvec(bias)
    if res_y is not None:
        kern = functools.partial(_affine_res2_kernel, relu=relu)
        args = (yp, sp, bp, prow(res_y), pvec(res_scale), pvec(res_bias))
        n_rows = 3
    elif residual is not None:
        kern = functools.partial(_affine_res_kernel, relu=relu)
        args = (yp, sp, bp, prow(residual))
        n_rows = 3
    else:
        kern = functools.partial(_affine_kernel, relu=relu)
        args = (yp, sp, bp)
        n_rows = 2

    tm = _pick_tm(Mp, n_rows * Cp * 8)
    row = pl.BlockSpec((tm, Cp), lambda i: (i, 0))
    vec = pl.BlockSpec((1, Cp), lambda i: (0, 0))
    spec_map = {0: row, 1: vec, 2: vec, 3: row, 4: vec, 5: vec}
    in_specs = [spec_map[k] for k in range(len(args))]

    out = pl.pallas_call(
        kern,
        out_shape=jax.ShapeDtypeStruct((Mp, Cp), out_dtype),
        grid_spec=pltpu.PrefetchScalarGridSpec(
            num_scalar_prefetch=0,
            grid=(Mp // tm,),
            in_specs=in_specs,
            out_specs=row),
        compiler_params=_cparams(("parallel",)),
    )(*args)
    return out if f == 1 else out.reshape(M, C)


# --------------------------------------------------------------------------
# MaxPool 3x3 / stride 2 / pad 1 (parity-plane version, no 9x stacked tensor)
# --------------------------------------------------------------------------
def _maxpool_parity_kernel(ee_ref, eo_ref, oe_ref, oo_ref, o_ref, *, Ho, Wo, Wp):
    n = Ho * Wp

    def tap(ref, a, b):
        off = a * Wp + b
        return ref[0, off:off + n, :]

    m = tap(ee_ref, 0, 0)
    for ref, shifts in ((ee_ref, ((0, 1), (1, 0), (1, 1))),
                        (eo_ref, ((0, 0), (1, 0))),
                        (oe_ref, ((0, 0), (0, 1))),
                        (oo_ref, ((0, 0),))):
        for a, b in shifts:
            m = jnp.maximum(m, tap(ref, a, b))
    o_ref[0] = m


def _maxpool_parity(x):
    N, H, W, C = x.shape
    Ho, Wo = H // 2, W // 2
    neg = jnp.finfo(jnp.float32).min
    xp = jnp.pad(x, ((0, 0), (1, 3), (1, 1), (0, 0)), constant_values=neg)
    ee = xp[:, 0::2, 0::2, :]
    eo = xp[:, 0::2, 1::2, :]
    oe = xp[:, 1::2, 0::2, :]
    oo = xp[:, 1::2, 1::2, :]
    Hpe, Wp = ee.shape[1], ee.shape[2]           # (Ho+2, Wo+1) for even H, W
    planes = [p.reshape(N, Hpe * Wp, C) for p in (ee, eo, oe, oo)]
    n = Ho * Wp
    kern = functools.partial(_maxpool_parity_kernel, Ho=Ho, Wo=Wo, Wp=Wp)
    plane_spec = pl.BlockSpec((1, Hpe * Wp, C), lambda i: (i, 0, 0))
    out = pl.pallas_call(
        kern,
        out_shape=jax.ShapeDtypeStruct((N, n, C), jnp.float32),
        grid_spec=pltpu.PrefetchScalarGridSpec(
            num_scalar_prefetch=0,
            grid=(N,),
            in_specs=[plane_spec] * 4,
            out_specs=pl.BlockSpec((1, n, C), lambda i: (i, 0, 0))),
        compiler_params=_cparams(("parallel",)),
    )(*planes)
    return out.reshape(N, Ho, Wp, C)[:, :, :Wo, :]


def _maxpool_stacked_kernel(p_ref, o_ref):
    p = p_ref[...]
    m = p[:, 0, :]
    for k in range(1, p_ref.shape[1]):
        m = jnp.maximum(m, p[:, k, :])
    o_ref[...] = m


def _maxpool_stacked(x):
    N, H, W, C = x.shape
    Ho = (H + 2 - 3) // 2 + 1
    Wo = (W + 2 - 3) // 2 + 1
    neg = jnp.finfo(jnp.float32).min
    xp = jnp.pad(x, ((0, 0), (1, 1), (1, 1), (0, 0)), constant_values=neg)
    taps = [xp[:, i:i + 2 * Ho:2, j:j + 2 * Wo:2, :]
            for i in range(3) for j in range(3)]
    p = jnp.stack(taps, axis=3).reshape(N * Ho * Wo, 9, C)
    M = N * Ho * Wo
    tm = _pick_tm(M, 9 * C * 8)
    out = pl.pallas_call(
        _maxpool_stacked_kernel,
        out_shape=jax.ShapeDtypeStruct((M, C), jnp.float32),
        grid_spec=pltpu.PrefetchScalarGridSpec(
            num_scalar_prefetch=0,
            grid=(M // tm,),
            in_specs=[pl.BlockSpec((tm, 9, C), lambda i: (i, 0, 0))],
            out_specs=pl.BlockSpec((tm, C), lambda i: (i, 0))),
        compiler_params=_cparams(("parallel",)),
    )(p)
    return out.reshape(N, Ho, Wo, C)


_POOL_FAST_OK = True


def maxpool_3x3_s2_p1(x):
    global _POOL_FAST_OK
    if _POOL_FAST_OK and x.shape[1] % 2 == 0 and x.shape[2] % 2 == 0:
        try:
            return _maxpool_parity(x)
        except Exception:          # safety net: fall back to stacked version
            _POOL_FAST_OK = False
    # TODO(synk): odd-H/W fast path for maxpool.
    return _maxpool_stacked(x)


# --------------------------------------------------------------------------
# Conv wrappers
# --------------------------------------------------------------------------
def _im2col(x, kh, kw, stride, pad):
    N, H, W, C = x.shape
    Ho = (H + 2 * pad - kh) // stride + 1
    Wo = (W + 2 * pad - kw) // stride + 1
    xp = jnp.pad(x, ((0, 0), (pad, pad), (pad, pad), (0, 0)))
    taps = [xp[:, i:i + stride * Ho:stride, j:j + stride * Wo:stride, :]
            for i in range(kh) for j in range(kw)]
    patches = jnp.stack(taps, axis=3)
    return patches.reshape(N * Ho * Wo, kh * kw * C), Ho, Wo


def conv1x1_raw(x, w, stride=1):
    N, H, W, Cin = x.shape
    Cout = w.shape[-1]
    xs = x[:, ::stride, ::stride, :] if stride > 1 else x
    Ho, Wo = xs.shape[1], xs.shape[2]
    cols = xs.reshape(N * Ho * Wo, Cin)
    y, s, ss = matmul_with_stats(cols, w.reshape(Cin, Cout))
    return y, s, ss, (N, Ho, Wo)


def conv1x1_bn(x, w, gamma, beta, *, stride=1, relu=True,
               out_dtype=jnp.float32):
    y, s, ss, (N, Ho, Wo) = conv1x1_raw(x, w, stride)
    sc, b = _bn_affine(s, ss, y.shape[0], gamma, beta)
    return apply_bn(y, sc, b, relu=relu,
                    out_dtype=out_dtype).reshape(N, Ho, Wo, -1)


_DIRECT_S1_OK = True
_DIRECT_S2_OK = True


def _conv3x3_s1_direct_bn(x, w, gamma, beta, out_dtype):
    y, s, ss, (N, Ho, Wo, Wp) = conv3x3_s1_direct_raw(x, w)
    sc, b = _bn_affine(s, ss, N * Ho * Wo, gamma, beta)
    out = apply_bn(y.reshape(N * Ho * Wp, -1), sc, b, relu=True,
                   out_dtype=out_dtype)
    return out.reshape(N, Ho, Wp, -1)[:, :, :Wo, :]   # strip junk columns


def _conv3x3_s2_direct_bn(x, w, gamma, beta, out_dtype):
    y, s, ss, (N, Ho, Wo, Wp) = conv3x3_s2_direct_raw(x, w)
    sc, b = _bn_affine(s, ss, N * Ho * Wo, gamma, beta)
    out = apply_bn(y.reshape(N * Ho * Wp, -1), sc, b, relu=True,
                   out_dtype=out_dtype)
    return out.reshape(N, Ho, Wp, -1)[:, :, :Wo, :]   # strip junk columns


def conv3x3_bn(x, w, gamma, beta, *, stride=1, out_dtype=jnp.float32):
    global _DIRECT_S1_OK, _DIRECT_S2_OK
    if stride == 1 and _DIRECT_S1_OK:
        try:
            return _conv3x3_s1_direct_bn(x, w, gamma, beta, out_dtype)
        except Exception:          # safety net: fall back to im2col path
            _DIRECT_S1_OK = False
    if (stride == 2 and _DIRECT_S2_OK
            and x.shape[1] % 2 == 0 and x.shape[2] % 2 == 0):
        try:
            return _conv3x3_s2_direct_bn(x, w, gamma, beta, out_dtype)
        except Exception:          # safety net: fall back to im2col path
            _DIRECT_S2_OK = False
    # im2col fallback (also covers odd spatial / unusual strides)
    cin = x.shape[-1]
    cols, Ho, Wo = _im2col(x.astype(jnp.bfloat16), 3, 3, stride, 1)
    y, s, ss = matmul_with_stats(cols, w.reshape(9 * cin, -1))
    sc, b = _bn_affine(s, ss, y.shape[0], gamma, beta)
    return apply_bn(y, sc, b, relu=True,
                    out_dtype=out_dtype).reshape(x.shape[0], Ho, Wo, -1)


def stem_conv_bn(x, w, gamma, beta):
    # 7x7/s2 stem: bf16 im2col (input has only 3 channels), K padded to 256.
    # TODO(synk): direct (non-materialized) kernel for the 7x7 stem.
    N = x.shape[0]
    Cout = w.shape[-1]
    cols, Ho, Wo = _im2col(x.astype(jnp.bfloat16), 7, 7, 2, 3)
    K = cols.shape[1]
    Kp = ((K + 127) // 128) * 128
    cols = jnp.pad(cols, ((0, 0), (0, Kp - K)))
    wf = jnp.pad(w.reshape(K, Cout).astype(jnp.bfloat16), ((0, Kp - K), (0, 0)))
    y, s, ss = matmul_with_stats(cols, wf)
    sc, b = _bn_affine(s, ss, y.shape[0], gamma, beta)
    return apply_bn(y, sc, b, relu=True).reshape(N, Ho, Wo, Cout)


# --------------------------------------------------------------------------
# Bottleneck / backbone
# --------------------------------------------------------------------------
def bottleneck(x, p):
    N = x.shape[0]
    # conv1 (1x1) + BN + ReLU   (intra-block activation kept in bf16)
    a1 = conv1x1_bn(x, p['conv1_w'], p['bn1_g'], p['bn1_b'], relu=True,
                    out_dtype=jnp.bfloat16)
    # conv2 (3x3, maybe strided) + BN + ReLU
    a2 = conv3x3_bn(a1, p['conv2_w'], p['bn2_g'], p['bn2_b'],
                    stride=p['stride'], out_dtype=jnp.bfloat16)
    # conv3 (1x1) raw; its BN and the residual add + ReLU are fused below
    y3, s3, ss3, (_, Ho, Wo) = conv1x1_raw(a2, p['conv3_w'])
    sc3, b3 = _bn_affine(s3, ss3, y3.shape[0], p['bn3_g'], p['bn3_b'])
    if p['has_downsample']:
        # downsample conv raw; its BN affine is fused into the same kernel
        yd, sd, ssd, _ = conv1x1_raw(x, p['down_w'], stride=p['stride'])
        scd, bd = _bn_affine(sd, ssd, yd.shape[0], p['down_g'], p['down_b'])
        out = apply_bn(y3, sc3, b3, relu=True,
                       res_y=yd, res_scale=scd, res_bias=bd)
    else:
        res = x.reshape(y3.shape[0], -1)
        out = apply_bn(y3, sc3, b3, relu=True, residual=res)
    return out.reshape(N, Ho, Wo, -1)


def resnet50_backbone_forward(x_nchw, params):
    x = jnp.transpose(x_nchw, (0, 2, 3, 1))       # NCHW -> NHWC
    x = stem_conv_bn(x, params['stem_w'], params['stem_g'], params['stem_b'])
    enc2x = x
    x = maxpool_3x3_s2_p1(x)
    encs = []
    for layer in params['layers']:
        for p in layer:
            x = bottleneck(x, p)
        encs.append(x)
    outs = [enc2x] + encs                         # enc2x..enc32x
    return [jnp.transpose(o, (0, 3, 1, 2)) for o in outs]   # back to NCHW


# --------------------------------------------------------------------------
# Deterministic parameter init (kaiming fan_out for convs; BN gamma=1, beta=0;
# the original PyTorch __init__ zeroes BN gamma by a bug which would make the
# forward identically zero — we use the standard non-degenerate init).
# TODO(synk): pretrained checkpoint loading (model_zoo) intentionally omitted.
# --------------------------------------------------------------------------
def init_params(key):
    keys = iter(jax.random.split(key, 256))

    def conv(kh, kw, cin, cout):
        std = (2.0 / (kh * kw * cout)) ** 0.5
        return std * jax.random.normal(next(keys), (kh, kw, cin, cout),
                                       jnp.float32)

    def bn(c):
        return jnp.ones((c,), jnp.float32), jnp.zeros((c,), jnp.float32)

    params = {}
    params['stem_w'] = conv(7, 7, 3, 64)
    params['stem_g'], params['stem_b'] = bn(64)

    layers_cfg = [(64, 3, 1), (128, 4, 2), (256, 6, 2), (512, 3, 2)]
    inplanes = 64
    layers = []
    for planes, nblocks, stride in layers_cfg:
        layer = []
        for b in range(nblocks):
            p = {}
            p['stride'] = stride if b == 0 else 1
            p['has_downsample'] = (b == 0)     # stride!=1 or inplanes!=planes*4
            p['conv1_w'] = conv(1, 1, inplanes, planes)
            p['bn1_g'], p['bn1_b'] = bn(planes)
            p['conv2_w'] = conv(3, 3, planes, planes)
            p['bn2_g'], p['bn2_b'] = bn(planes)
            p['conv3_w'] = conv(1, 1, planes, planes * 4)
            p['bn3_g'], p['bn3_b'] = bn(planes * 4)
            if p['has_downsample']:
                p['down_w'] = conv(1, 1, inplanes, planes * 4)
                p['down_g'], p['down_b'] = bn(planes * 4)
            layer.append(p)
            inplanes = planes * 4
        layers.append(layer)
    params['layers'] = layers
    return params


if __name__ == "__main__":
    key = jax.random.PRNGKey(0)
    pkey, xkey = jax.random.split(key)
    params = init_params(pkey)
    x = jax.random.normal(xkey, (2, 3, 64, 64), jnp.float32)

    outs = resnet50_backbone_forward(x, params)
    outs = jax.block_until_ready(outs)

    expected = [(2, 64, 32, 32), (2, 256, 16, 16), (2, 512, 8, 8),
                (2, 1024, 4, 4), (2, 2048, 2, 2)]
    for o, e in zip(outs, expected):
        assert tuple(o.shape) == e, (tuple(o.shape), e)
        assert bool(jnp.all(jnp.isfinite(o)))
    print("KERNEL_OK")
</pallas_src>

<mosaic_0001>
module attributes {stable_mosaic.version = 11 : i64} {
  func.func @_mm_stats_kernel(%arg0: i32, %arg1: memref<1024x256xbf16, #tpu.memory_space<vmem>>, %arg2: memref<256x64xbf16, #tpu.memory_space<vmem>>, %arg3: memref<1024x64xbf16, #tpu.memory_space<vmem>>, %arg4: memref<1x1x64xf32, #tpu.memory_space<vmem>>, %arg5: memref<1x1x64xf32, #tpu.memory_space<vmem>>) attributes {dimension_semantics = [#tpu.dimension_semantics<parallel>], iteration_bounds = array<i64: 2>, scalar_prefetch = 0 : i64, scratch_operands = 0 : i64, tpu.core_type = #tpu.core_type<tc>, window_params = [{transform_indices = @transform_0, window_bounds = array<i64: 1024, 256>}, {pipeline_mode = #tpu.pipeline_mode<synchronous>, transform_indices = @transform_1, window_bounds = array<i64: 256, 64>}, {transform_indices = @transform_2, window_bounds = array<i64: 1024, 64>}, {transform_indices = @transform_3, window_bounds = array<i64: 1, 1, 64>}, {transform_indices = @transform_4, window_bounds = array<i64: 1, 1, 64>}]} {
    %c0 = arith.constant 0 : index
    %c0_0 = arith.constant 0 : index
    %0 = vector.load %arg1[%c0, %c0_0] : memref<1024x256xbf16, #tpu.memory_space<vmem>>, vector<1024x256xbf16>
    %c0_1 = arith.constant 0 : index
    %c0_2 = arith.constant 0 : index
    %1 = vector.load %arg2[%c0_1, %c0_2] : memref<256x64xbf16, #tpu.memory_space<vmem>>, vector<256x64xbf16>
    %cst = arith.constant dense<0.000000e+00> : vector<1024x64xf32>
    %2 = tpu.matmul %0, %1, %cst {dimension_numbers = #tpu.dot_dimension_numbers<[1], [0], [0], [1], [0, 0, 1, 1], [], []>} : vector<1024x256xbf16>, vector<256x64xbf16>, vector<1024x64xf32> -> vector<1024x64xf32>
    %3 = arith.truncf %2 : vector<1024x64xf32> to vector<1024x64xbf16>
    %c0_3 = arith.constant 0 : index
    %c0_4 = arith.constant 0 : index
    %4 = vector.load %arg3[%c0_3, %c0_4] : memref<1024x64xbf16, #tpu.memory_space<vmem>>, vector<1024x64xbf16>
    tpu.vector_store %arg3[%c0_3, %c0_4], %3 {strides = array<i32>} : memref<1024x64xbf16, #tpu.memory_space<vmem>>, vector<1024x64xbf16>,
    %cst_5 = arith.constant dense<0.000000e+00> : vector<64xf32>
    %5 = vector.multi_reduction <add>, %2, %cst_5 [0] : vector<1024x64xf32> to vector<64xf32>
    %6 = vector.shape_cast %5 : vector<64xf32> to vector<1x64xf32>
    %7 = vector.shape_cast %6 : vector<1x64xf32> to vector<1x1x64xf32>
    %c0_6 = arith.constant 0 : index
    %c0_7 = arith.constant 0 : index
    %c0_8 = arith.constant 0 : index
    %8 = vector.load %arg4[%c0_6, %c0_7, %c0_8] : memref<1x1x64xf32, #tpu.memory_space<vmem>>, vector<1x1x64xf32>
    tpu.vector_store %arg4[%c0_6, %c0_7, %c0_8], %7 {strides = array<i32>} : memref<1x1x64xf32, #tpu.memory_space<vmem>>, vector<1x1x64xf32>,
    %9 = arith.mulf %2, %2 : vector<1024x64xf32>
    %cst_9 = arith.constant dense<0.000000e+00> : vector<64xf32>
    %10 = vector.multi_reduction <add>, %9, %cst_9 [0] : vector<1024x64xf32> to vector<64xf32>
    %11 = vector.shape_cast %10 : vector<64xf32> to vector<1x64xf32>
    %12 = vector.shape_cast %11 : vector<1x64xf32> to vector<1x1x64xf32>
    %c0_10 = arith.constant 0 : index
    %c0_11 = arith.constant 0 : index
    %c0_12 = arith.constant 0 : index
    %13 = vector.load %arg5[%c0_10, %c0_11, %c0_12] : memref<1x1x64xf32, #tpu.memory_space<vmem>>, vector<1x1x64xf32>
    tpu.vector_store %arg5[%c0_10, %c0_11, %c0_12], %12 {strides = array<i32>} : memref<1x1x64xf32, #tpu.memory_space<vmem>>, vector<1x1x64xf32>,
    return
  }
  func.func @transform_0(%arg0: i32) -> (i32, i32) {
    %c0_i32 = arith.constant 0 : i32
    %c0_i32_0 = arith.constant 0 : i32
    return %arg0, %c0_i32 : i32, i32
  }
  func.func @transform_1(%arg0: i32) -> (i32, i32) {
    %c0_i32 = arith.constant 0 : i32
    %c0_i32_0 = arith.constant 0 : i32
    %c0_i32_1 = arith.constant 0 : i32
    return %c0_i32, %c0_i32_0 : i32, i32
  }
  func.func @transform_2(%arg0: i32) -> (i32, i32) {
    %c0_i32 = arith.constant 0 : i32
    %c0_i32_0 = arith.constant 0 : i32
    return %arg0, %c0_i32 : i32, i32
  }
  func.func @transform_3(%arg0: i32) -> (i32, i32, i32) {
    %c0_i32 = arith.constant 0 : i32
    %c0_i32_0 = arith.constant 0 : i32
    %c0_i32_1 = arith.constant 0 : i32
    return %arg0, %c0_i32, %c0_i32_0 : i32, i32, i32
  }
  func.func @transform_4(%arg0: i32) -> (i32, i32, i32) {
    %c0_i32 = arith.constant 0 : i32
    %c0_i32_0 = arith.constant 0 : i32
    %c0_i32_1 = arith.constant 0 : i32
    return %arg0, %c0_i32, %c0_i32_0 : i32, i32, i32
  }
}

</mosaic_0001>

<bundles_post_ra>
// kernel: tpu_custom_call.1
= control target key start
LH: loop header
LB: loop body
LE: loop exit
PB: predicated region body
PF: predicated region fallthrough
CT: control target
= control target key end

     0   :  { %10 = vsyncpa [#allocation3], 0  ;;  %s5535_s0 = inlined_call_operand.hbm [shape: bf16[2048,256], index: 0, kind: input, shape index: {}]   ;;  %s5536_s1 = inlined_call_operand.hbm [shape: bf16[256,64], index: 1, kind: input, shape index: {}]   ;;  %s5537_s2 = inlined_call_operand.hbm [shape: bf16[2048,64], index: 2, kind: output, shape index: {0}]   ;;  %s5538_s3 = inlined_call_operand.hbm [shape: f32[2,1,64], index: 3, kind: output, shape index: {1}]   ;;  %s5539_s4 = inlined_call_operand.hbm [shape: f32[2,1,64], index: 4, kind: output, shape index: {2}]  }
   0x1   :  { %12 = vsyncpa [#allocation3 + $0x1], 0 }
   0x2   :  { %13 = vsyncpa [#allocation6], 0 }
   0x3   :  { %14 = vsyncpa [#allocation4], 0 }
   0x4   :  { %16 = vsyncpa [#allocation4 + $0x1], 0 }
   0x5   :  { %17 = vsyncpa [#allocation9], 0 }
   0x6   :  { %19 = vsyncpa [#allocation9 + $0x1], 0  ;;  %s4113_s15 = smov 0   ;;  %s4115_s16 = smov 0  }
   0x7   :  { %s4117_s17 = smov 0   ;;  %s4119_s18 = smov 0  }
   0x8 LB: > { %s4134_s19 = sadd.s32 4294967295, %s4074_s18   ;;  %s3171_s20 = sadd.s32 4294967294, %s4074_s18   ;;  %s4074_s18 = sphi %s4119_s18, %s5627_s18   ;;  %s4070_s17 = sphi %s4117_s17, %s5626_s17   ;;  %s4066_s16 = sphi %s4115_s16, %s5625_s16   ;;  %s4062_s15 = sphi %s4113_s15, %s5624_s15  }
   0x9   : > { %p45_p0 = scmp.ne.s32.totalorder %s4066_s16, %s4062_s15  ;;  %p5540_p1 = scmp.eq.s32.totalorder %s4134_s19, 0 }
   0xa   : > { %p96_p3 = scmp.eq.s32.totalorder %s3171_s20, 1  ;;  %p3172_p5 = scmp.ge.s32.totalorder %s4074_s18, 1 }
   0xb   : > { %p4145_p4 = por %p5540_p1, %p45_p0  ;;  %p155_p7 = scmp.lt.s32.totalorder %s4074_s18, 3 }
   0xc   : > { %p4150_p6 = por %p96_p3, %p45_p0  ;;  %s4076_s24 = smov [#allocation5]  }
   0xd   : > { %s5577_s21 = scalar_select %p4145_p4, 1, 0 }
   0xe   : > { %s5578_s22 = scalar_select %p4150_p6, 1, 0 }
   0xf   : > { %p4155_p8 = pnand %p3172_p5, %p155_p7  ;;  %s167_s25 = sshll.u32 %s4076_s24, 4  ;;  %s4159_s25 = int_to_ptr.vmem [resolvable:$true] %s167_s25 }
  0x10   : > { %s4171_s27 = sadd.s32 1, %s4074_s18   ;;  %s32_s28 = sadd.s32 1, %s4070_s17 }
  0x11   : > { %s5579_s23 = scalar_select %p4155_p8, 1, 0 }
  0x12   : > { %p3637_p9 = pneg %p4155_p8  ;;  %s29_s29 = ssub.s32 %s4074_s18, %s4171_s27 }
  0x13   : > { %s3886_s6 = scalar_lea.hbm %s5536_s1, 2048 }
  0x14   : > { %p4166_p11 = pnand %p3637_p9, %p5540_p1  ;;  %p3887_p12 = scmp.ne.s32.totalorder %s5536_s1, %s3886_s6 }
  0x15   : > { %p3893_p5 = scmp.lt.u32.totalorder %s3886_s6, %s5536_s1 }
  0x16   : > { %p3888_p13 = pneg %p4166_p11 }
  0x18   : > { %p3889_p0 = pnand %p3888_p13, %p3887_p12 }
  0x1a   : > { %p3890_p3 = pneg %p3889_p0 }
  0x1c   : > { %p3895_p7 = pnand %p3893_p5, %p3890_p3 }
  0x1e   : > { %3898 = shalt.err (!%p3895_p7)
}
  0x1f   : > { %s3899_s11 = scalar_lea.vmem %s4159_s25, 2048  ;;  %p3907_p2 = scmp.lt.s32.totalorder %s4159_s25, %s4159_s25 }
  0x20   : > { %p3900_p9 = scmp.ne.s32.totalorder %s4159_s25, %s3899_s11  ;;  %p3908_p6 = scmp.lt.s32.totalorder %s3899_s11, %s3899_s11 }
  0x22   : > { %p3902_p10 = pnand %p3900_p9, %p3888_p13  ;;  %p3909_p4 = por %p3908_p6, %p3907_p2 }
  0x24   : > { %p3903_p1 = pneg %p3902_p10 }
  0x26   : > { %p3910_p8 = pnand %p3909_p4, %p3903_p1 }
  0x28   : > { %3913 = shalt.err (!%p3910_p8)
}
  0x29   : > { %s4077_s12 = smov 64   ;;  %s4078_s13 = smov 4  }
  0x2a   : > { %3640 = dma.hbm_to_vmem [thread:$0]  (!%p4166_p11), %s5536_s1, 2048, %s4159_s25, [#allocation6], %s4077_s12, %s4077_s12, %s4078_s13  }
  0x2b   : > { %p30_p2 = scmp.eq.s32.totalorder %s29_s29, 0  ;;  %p39_p1 = scmp.ne.s32.totalorder %s4070_s17, %s4066_s16 }
  0x2c   : > { %p40_p4 = scmp.eq.s32.totalorder %s4074_s18, 0  ;;  %p3656_p6 = scmp.lt.s32.totalorder %s4074_s18, 2 }
  0x2d   : > { %s4202_s30 = scalar_select %p30_p2, %s4070_s17, %s32_s28  }
  0x2e   : > { %p41_p8 = por %p40_p4, %p39_p1  ;;  %p5581_p10 = scmp.eq.s32.totalorder %s4134_s19, 1 }
  0x2f   : > { %s181_s6 = sand.u32 1, %s4070_s17   ;;  %s3463_s7 = sshll.u32 %s4074_s18, 14 }
  0x30   : > { %p4206_p12 = por %p5581_p10, %p39_p1  ;;  %s3175_s8 = sshll.u32 %s181_s6, 10 }
  0x31   : > { %s4215_s10 = scalar_lea.hbm %s5535_s0, %s3463_s7  ;;  %s185_s25 = scalar_lea.vmem [#allocation2], %s3175_s8 }
  0x32   : > { %s193_s28 = sshll.u32 %s185_s25, 4  ;;  %p4217_p11 = pnand %p3656_p6, %p41_p8  ;;  %s4221_s28 = int_to_ptr.vmem [resolvable:$true] %s193_s28 }
  0x33   : > { %s4223_s11 = scalar_lea.sflag [#allocation3], %s181_s6  ;;  %s3914_s12 = scalar_lea.hbm %s4215_s10, 16384 }
  0x34   : > { %p3915_p13 = scmp.ne.s32.totalorder %s4215_s10, %s3914_s12  ;;  %p3916_p0 = pneg %p4217_p11 }
  0x35   : > { %s3919_s24 = scalar_lea.hbm %s5535_s0, 32768  ;;  %p3920_p7 = scmp.lt.u32.totalorder %s4215_s10, %s5535_s0 }
  0x36   : > { %p3917_p3 = pnand %p3916_p0, %p3915_p13  ;;  %p3921_p9 = scmp.lt.u32.totalorder %s3919_s24, %s3914_s12 }
  0x37   : > { %p3923_p1 = scmp.lt.u32.totalorder %s3914_s12, %s4215_s10 }
  0x38   : > { %p3918_p5 = pneg %p3917_p3  ;;  %p3922_p2 = por %p3921_p9, %p3920_p7 }
  0x3a   : > { %p3924_p4 = por %p3923_p1, %p3922_p2 }
  0x3c   : > { %p3925_p6 = pnand %p3924_p4, %p3918_p5 }
  0x3e   : > { %3928 = shalt.err (!%p3925_p6)
}
  0x3f   : > { %s3929_s6 = scalar_lea.vmem %s4221_s28, 16384  ;;  %s4079_s26 = smov [#allocation2]  }
  0x40   : > { %p3930_p8 = scmp.ne.s32.totalorder %s4221_s28, %s3929_s6  ;;  %s3934_s9 = sshll.u32 %s4079_s26, 4  ;;  %s3935_s9 = int_to_ptr.vmem [resolvable:$false] %s3934_s9 }
  0x41   : > { %s3936_s25 = scalar_lea.vmem %s3935_s9, 32768  ;;  %p3937_p3 = scmp.lt.s32.totalorder %s4221_s28, %s3935_s9 }
  0x42   : > { %p3932_p10 = pnand %p3930_p8, %p3916_p0  ;;  %p3938_p7 = scmp.lt.s32.totalorder %s3936_s25, %s3929_s6 }
  0x44   : > { %p3933_p13 = pneg %p3932_p10  ;;  %p3939_p9 = por %p3938_p7, %p3937_p3 }
  0x46   : > { %p3940_p2 = pnand %p3939_p9, %p3933_p13 }
  0x48   : > { %3943 = shalt.err (!%p3940_p2)
}
  0x49   : > { %s4080_s12 = smov 128   ;;  %s4081_s13 = smov 8  }
  0x4a   : > { %3644 = dma.hbm_to_vmem [thread:$0]  (!%p4217_p11), %s4215_s10, 16384, %s4221_s28, %s4223_s11, %s4080_s12, %s4080_s12, %s4081_s13  }
  0x4b   : > { %p5584_p0 = scmp.ne.s32.totalorder %s5579_s23, 0 }
  0x4d   : > { %205 = sbr.rel (%p5584_p0) target bundleno = 808 (0x328), region = 28 }
  0x54   : > { %s4254_s14 = sand.u32 1, %s4066_s16   ;;  %p5585_p5 = scmp.ne.s32.totalorder %s5577_s21, 0 }
  0x55   : > { %s3180_s24 = sshll.u32 %s4254_s14, 10  ;;  %s208_s7 = scalar_lea.sflag [#allocation3], %s4254_s14 }
  0x56   : > { %s4258_s8 = scalar_lea.vmem [#allocation2], %s3180_s24 }
  0x57   : > { %4045 = dma.done.wait (%p5585_p5), %s208_s7, 16384  }
  0x58   : > { %4047 = vsyncadd (%p5585_p5), %s208_s7, 4294950912  ;;  %p5586_p11 = scmp.eq.s32.totalorder %s4134_s19, 0 }
  0x5a   : > { %4049 = dma.done.wait (%p5586_p11), [#allocation6], 2048   ;;  %p5587_p1 = pmov %p5586_p11 }
  0x5b   : > { %v4082_v0 = vmov 0   ;;  %v3699_v1 = vld [vmem:[#allocation5] sm:$0xff]   ;;  %v3700_v2 = vld [vmem:[#allocation5 + $0x8] sm:$0xff]   ;;  %v3701_v3 = vld [vmem:[#allocation5 + $0x10] sm:$0xff]   ;;  %s3182_s21 = sshll.u32 %s4254_s14, 9  ;;  %vm2204_vm0 = vcmask 519168  }
  0x5c   : > { %4051 = vsyncadd (%p5587_p1), [#allocation6], 4294965248  ;;  %1147 = vmatprep.subr.bf16.mxu0 %v4082_v0  ;;  %3593 = vmatprep.subr.bf16.mxu1 %v4082_v0  ;;  %v3702_v4 = vld [vmem:[#allocation5 + $0x18] sm:$0xff]   ;;  %v3703_v5 = vld [vmem:[#allocation5 + $0x20] sm:$0xff]   ;;  %vm2333_vm1 = vcmask 523264   ;;  %s4437_s23 = scalar_lea.vmem [#allocation7], %s3182_s21 }
  0x5d   : > { %1148 = vmatpush1.bf16.msra.mxu0 %v3699_v1  ;;  %3609 = vmatpush1.bf16.msra.mxu1 %v3699_v1  ;;  %v3717_v6 = vld [vmem:[%s4258_s8 + $0x4] ss:$8 sps:$4 sm:$0xff]   ;;  %v3705_v8 = vld [vmem:[#allocation5 + $0x30] sm:$0xff]   ;;  %v3706_v9 = vld [vmem:[#allocation5 + $0x38] sm:$0xff]   ;;  %s3592_s10 = sshll.u32 %s4134_s19, 13  ;;  %s3009_s28 = sshll.u32 %s4437_s23, 4  ;;  %s5150_s28 = int_to_ptr.vmem [resolvable:$true] %s3009_s28 }
  0x5e   : > { %1149 = vmatprep.subr.bf16.mxu0 %v4082_v0  ;;  %3594 = vmatprep.subr.bf16.mxu1 %v4082_v0  ;;  %v3704_v7 = vld [vmem:[#allocation5 + $0x28] sm:$0xff]   ;;  %v3707_v10 = vld [vmem:[#allocation5 + $0x40] sm:$0xff]   ;;  %v3709_v12 = vld [vmem:[#allocation5 + $0x50] sm:$0xff]   ;;  %s5148_s6 = scalar_lea.hbm %s5537_s2, %s3592_s10  ;;  %s2988_s26 = scalar_lea.sflag [#allocation4], %s4254_s14 }
  0x5f   : > { %1179 = vmatprep.mubr.bf16.mxu0 %v3717_v6  ;;  %v3708_v11 = vld [vmem:[#allocation5 + $0x48] sm:$0xff]   ;;  %v3710_v13 = vld [vmem:[#allocation5 + $0x58] sm:$0xff]   ;;  %v3711_v14 = vld [vmem:[#allocation5 + $0x60] sm:$0xff]   ;;  %s3944_s9 = scalar_lea.vmem %s5150_s28, 8192  ;;  %s4083_s25 = smov [#allocation7]  }
  0x60   : > { %v3712_v15 = vld [vmem:[#allocation5 + $0x68] sm:$0xff]   ;;  %v3713_v16 = vld [vmem:[#allocation5 + $0x70] sm:$0xff]   ;;  %v3714_v18 = vld [vmem:[#allocation5 + $0x78] sm:$0xff]   ;;  %p3945_p4 = scmp.ne.s32.totalorder %s5150_s28, %s3944_s9  ;;  %s3948_s12 = sshll.u32 %s4083_s25, 4  ;;  %s3949_s12 = int_to_ptr.vmem [resolvable:$false] %s3948_s12 }
  0x61   : > { %1150 = vmatpush1.bf16.msra.mxu0 %v3700_v2  ;;  %3610 = vmatpush1.bf16.msra.mxu1 %v3700_v2  ;;  %v3765_v17 = vld [vmem:[%s4258_s8 + $0x204] ss:$8 sps:$4 sm:$0xff]   ;;  %v3715_v19 = vld [vmem:[%s4258_s8] ss:$8 sps:$4 sm:$0xff]   ;;  %v3718_v21 = vld [vmem:[%s4258_s8 + $0x14] ss:$8 sps:$4 sm:$0xff]   ;;  %p3951_p10 = scmp.lt.s32.totalorder %s5150_s28, %s3949_s12 }
  0x62   : > { %1151 = vmatprep.subr.bf16.mxu0 %v4082_v0  ;;  %3595 = vmatprep.subr.bf16.mxu1 %v4082_v0  ;;  %v3763_v20 = vld [vmem:[%s4258_s8 + $0x200] ss:$8 sps:$4 sm:$0xff]   ;;  %v3769_v22 = vld [vmem:[%s4258_s8 + $0x214] ss:$8 sps:$4 sm:$0xff]   ;;  %v3720_v23 = vld [vmem:[%s4258_s8 + $0x10] ss:$8 sps:$4 sm:$0xff]   ;;  %p3946_p6 = pnand %p3945_p4, %p4206_p12 }
  0x63   : > { %1435 = vmatprep.mubr.bf16.mxu1 %v3765_v17  ;;  %v3771_v24 = vld [vmem:[%s4258_s8 + $0x210] ss:$8 sps:$4 sm:$0xff]   ;;  %v3721_v25 = vld [vmem:[%s4258_s8 + $0x24] ss:$8 sps:$4 sm:$0xff]   ;;  %v3723_v27 = vld [vmem:[%s4258_s8 + $0x20] ss:$8 sps:$4 sm:$0xff]  }
  0x64   : > { %v3775_v26 = vld [vmem:[%s4258_s8 + $0x224] ss:$8 sps:$4 sm:$0xff]   ;;  %v3777_v28 = vld [vmem:[%s4258_s8 + $0x220] ss:$8 sps:$4 sm:$0xff]   ;;  %v3724_v29 = vld [vmem:[%s4258_s8 + $0x34] ss:$8 sps:$4 sm:$0xff]   ;;  %p3947_p8 = pneg %p3946_p6 }
  0x65   : > { %1152 = vmatpush1.bf16.msra.mxu0 %v3701_v3  ;;  %3611 = vmatpush1.bf16.msra.mxu1 %v3701_v3  ;;  %v3781_v30 = vld [vmem:[%s4258_s8 + $0x234] ss:$8 sps:$4 sm:$0xff]   ;;  %v3726_v31 = vld [vmem:[%s4258_s8 + $0x30] ss:$8 sps:$4 sm:$0xff]   ;;  %v3727_v33 = vld [vmem:[%s4258_s8 + $0x44] ss:$8 sps:$4 sm:$0xff]  }
  0x66   : > { %1153 = vmatprep.subr.bf16.mxu0 %v4082_v0  ;;  %3596 = vmatprep.subr.bf16.mxu1 %v4082_v0  ;;  %v3783_v32 = vld [vmem:[%s4258_s8 + $0x230] ss:$8 sps:$4 sm:$0xff]   ;;  %v3787_v34 = vld [vmem:[%s4258_s8 + $0x244] ss:$8 sps:$4 sm:$0xff]   ;;  %v3729_v35 = vld [vmem:[%s4258_s8 + $0x40] ss:$8 sps:$4 sm:$0xff]  }
  0x67   : > { %v3789_v36 = vld [vmem:[%s4258_s8 + $0x240] ss:$8 sps:$4 sm:$0xff]   ;;  %v3730_v37 = vld [vmem:[%s4258_s8 + $0x54] ss:$8 sps:$4 sm:$0xff]   ;;  %v3732_v39 = vld [vmem:[%s4258_s8 + $0x50] ss:$8 sps:$4 sm:$0xff]  }
  0x68   : > { %v3793_v38 = vld [vmem:[%s4258_s8 + $0x254] ss:$8 sps:$4 sm:$0xff]   ;;  %v3795_v40 = vld [vmem:[%s4258_s8 + $0x250] ss:$8 sps:$4 sm:$0xff]   ;;  %v3733_v41 = vld [vmem:[%s4258_s8 + $0x64] ss:$8 sps:$4 sm:$0xff]  }
  0x69   : > { %1154 = vmatpush1.bf16.msra.mxu0 %v3702_v4  ;;  %3612 = vmatpush1.bf16.msra.mxu1 %v3702_v4  ;;  %v3799_v42 = vld [vmem:[%s4258_s8 + $0x264] ss:$8 sps:$4 sm:$0xff]   ;;  %v3735_v43 = vld [vmem:[%s4258_s8 + $0x60] ss:$8 sps:$4 sm:$0xff]   ;;  %v3736_v45 = vld [vmem:[%s4258_s8 + $0x74] ss:$8 sps:$4 sm:$0xff]  }
  0x6a   : > { %1155 = vmatprep.subr.bf16.mxu0 %v4082_v0  ;;  %3597 = vmatprep.subr.bf16.mxu1 %v4082_v0  ;;  %v3801_v44 = vld [vmem:[%s4258_s8 + $0x260] ss:$8 sps:$4 sm:$0xff]   ;;  %v3805_v46 = vld [vmem:[%s4258_s8 + $0x274] ss:$8 sps:$4 sm:$0xff]   ;;  %v3738_v47 = vld [vmem:[%s4258_s8 + $0x70] ss:$8 sps:$4 sm:$0xff]  }
  0x6b   : > { %v3807_v48 = vld [vmem:[%s4258_s8 + $0x270] ss:$8 sps:$4 sm:$0xff]   ;;  %v3739_v49 = vld [vmem:[%s4258_s8 + $0x84] ss:$8 sps:$4 sm:$0xff]   ;;  %v3741_v51 = vld [vmem:[%s4258_s8 + $0x80] ss:$8 sps:$4 sm:$0xff]  }
  0x6c   : > { %v3811_v50 = vld [vmem:[%s4258_s8 + $0x284] ss:$8 sps:$4 sm:$0xff]   ;;  %v3813_v52 = vld [vmem:[%s4258_s8 + $0x280] ss:$8 sps:$4 sm:$0xff]   ;;  %v3742_v53 = vld [vmem:[%s4258_s8 + $0x94] ss:$8 sps:$4 sm:$0xff]  }
  0x6d   : > { %1156 = vmatpush1.bf16.msra.mxu0 %v3703_v5  ;;  %3613 = vmatpush1.bf16.msra.mxu1 %v3703_v5  ;;  %v3817_v54 = vld [vmem:[%s4258_s8 + $0x294] ss:$8 sps:$4 sm:$0xff]   ;;  %v3744_v55 = vld [vmem:[%s4258_s8 + $0x90] ss:$8 sps:$4 sm:$0xff]   ;;  %v3745_v57 = vld [vmem:[%s4258_s8 + $0xa4] ss:$8 sps:$4 sm:$0xff]  }
  0x6e   : > { %1157 = vmatprep.subr.bf16.mxu0 %v4082_v0  ;;  %3598 = vmatprep.subr.bf16.mxu1 %v4082_v0  ;;  %v3819_v56 = vld [vmem:[%s4258_s8 + $0x290] ss:$8 sps:$4 sm:$0xff]   ;;  %v3823_v58 = vld [vmem:[%s4258_s8 + $0x2a4] ss:$8 sps:$4 sm:$0xff]   ;;  %v3747_v59 = vld [vmem:[%s4258_s8 + $0xa0] ss:$8 sps:$4 sm:$0xff]  }
  0x6f   : > { %v3825_v60 = vld [vmem:[%s4258_s8 + $0x2a0] ss:$8 sps:$4 sm:$0xff]   ;;  %v3748_v61 = vld [vmem:[%s4258_s8 + $0xb4] ss:$8 sps:$4 sm:$0xff]   ;;  %v3750_v1 = vld [vmem:[%s4258_s8 + $0xb0] ss:$8 sps:$4 sm:$0xff]  }
  0x70   : > { %v337_v62 = vld [vmem:[%s4258_s8 + $0x2b0] sm:$0xff]  ;;  %v338_v63 = vld [vmem:[%s4258_s8 + $0x2b8] sm:$0xff]  ;;  %v3751_v3 = vld [vmem:[%s4258_s8 + $0xc4] ss:$8 sps:$4 sm:$0xff]   ;;  %s3950_s13 = scalar_lea.vmem %s3949_s12, 16384 }
  0x71   : > { %1158 = vmatpush1.bf16.msra.mxu0 %v3704_v7  ;;  %3614 = vmatpush1.bf16.msra.mxu1 %v3704_v7  ;;  %v3269_v2 = vcombine.low %v337_v62, %v338_v63  ;;  %v339_v4 = vld [vmem:[%s4258_s8 + $0x2c0] sm:$0xff]  ;;  %v340_v5 = vld [vmem:[%s4258_s8 + $0x2c8] sm:$0xff]  ;;  %p3952_p13 = scmp.lt.s32.totalorder %s3950_s13, %s3944_s9 }
  0x72   : > { %1159 = vmatprep.subr.bf16.mxu0 %v4082_v0  ;;  %3599 = vmatprep.subr.bf16.mxu1 %v4082_v0  ;;  %v3834_v6 = vld [vmem:[%s4258_s8 + $0x2c4] ss:$8 sps:$4 sm:$0xff]   ;;  %v3753_v7 = vld [vmem:[%s4258_s8 + $0xc0] ss:$8 sps:$4 sm:$0xff]  }
  0x73   : > { %v344_v17 = vld [vmem:[%s4258_s8 + $0x2e8] sm:$0xff]  ;;  %p3953_p3 = por %p3952_p13, %p3951_p10 }
  0x74   : > { %v3802_v63 = vld [vmem:[%s4258_s8 + $0x164] ss:$8 sps:$4 sm:$0xff]  }
  0x75   : > { %1160 = vmatpush1.bf16.msra.mxu0 %v3705_v8  ;;  %3615 = vmatpush1.bf16.msra.mxu1 %v3705_v8  ;;  %v3271_v8 = vcombine.low %v339_v4, %v340_v5  ;;  %v3808_v5 = vld [vmem:[%s4258_s8 + $0x174] ss:$8 sps:$4 sm:$0xff]   ;;  %p3954_p7 = pnand %p3953_p3, %p3947_p8 }
  0x76   : > { %1161 = vmatprep.subr.bf16.mxu0 %v4082_v0  ;;  %3600 = vmatprep.subr.bf16.mxu1 %v4082_v0 }
  0x79   : > { %1162 = vmatpush1.bf16.msra.mxu0 %v3706_v9  ;;  %3616 = vmatpush1.bf16.msra.mxu1 %v3706_v9  ;;  %v3754_v9 = vld [vmem:[%s4258_s8 + $0xd4] ss:$8 sps:$4 sm:$0xff]  }
  0x7a   : > { %1163 = vmatprep.subr.bf16.mxu0 %v4082_v0  ;;  %3601 = vmatprep.subr.bf16.mxu1 %v4082_v0 }
  0x7d   : > { %1164 = vmatpush1.bf16.msra.mxu0 %v3707_v10  ;;  %3617 = vmatpush1.bf16.msra.mxu1 %v3707_v10  ;;  %v341_v10 = vld [vmem:[%s4258_s8 + $0x2d0] sm:$0xff] }
  0x7e   : > { %1165 = vmatprep.subr.bf16.mxu0 %v4082_v0  ;;  %3602 = vmatprep.subr.bf16.mxu1 %v4082_v0 }
  0x81   : > { %1166 = vmatpush1.bf16.msra.mxu0 %v3708_v11  ;;  %3618 = vmatpush1.bf16.msra.mxu1 %v3708_v11  ;;  %v342_v11 = vld [vmem:[%s4258_s8 + $0x2d8] sm:$0xff] }
  0x82   : > { %1167 = vmatprep.subr.bf16.mxu0 %v4082_v0  ;;  %3603 = vmatprep.subr.bf16.mxu1 %v4082_v0 }
  0x85   : > { %1168 = vmatpush1.bf16.msra.mxu0 %v3709_v12  ;;  %3619 = vmatpush1.bf16.msra.mxu1 %v3709_v12  ;;  %v3839_v12 = vld [vmem:[%s4258_s8 + $0x2d4] ss:$8 sps:$4 sm:$0xff]  }
  0x86   : > { %1169 = vmatprep.subr.bf16.mxu0 %v4082_v0  ;;  %3604 = vmatprep.subr.bf16.mxu1 %v4082_v0 }
  0x89   : > { %1170 = vmatpush1.bf16.msra.mxu0 %v3710_v13  ;;  %3620 = vmatpush1.bf16.msra.mxu1 %v3710_v13  ;;  %v3756_v13 = vld [vmem:[%s4258_s8 + $0xd0] ss:$8 sps:$4 sm:$0xff]  }
  0x8a   : > { %1171 = vmatprep.subr.bf16.mxu0 %v4082_v0  ;;  %3605 = vmatprep.subr.bf16.mxu1 %v4082_v0 }
  0x8d   : > { %1172 = vmatpush1.bf16.msra.mxu0 %v3711_v14  ;;  %3621 = vmatpush1.bf16.msra.mxu1 %v3711_v14  ;;  %v3273_v14 = vcombine.low %v341_v10, %v342_v11  ;;  %v3814_v11 = vld [vmem:[%s4258_s8 + $0x184] ss:$8 sps:$4 sm:$0xff]  }
  0x8e   : > { %1173 = vmatprep.subr.bf16.mxu0 %v4082_v0  ;;  %3606 = vmatprep.subr.bf16.mxu1 %v4082_v0 }
  0x91   : > { %1174 = vmatpush1.bf16.msra.mxu0 %v3712_v15  ;;  %3622 = vmatpush1.bf16.msra.mxu1 %v3712_v15  ;;  %v3757_v15 = vld [vmem:[%s4258_s8 + $0xe4] ss:$8 sps:$4 sm:$0xff]  }
  0x92   : > { %1175 = vmatprep.subr.bf16.mxu0 %v4082_v0  ;;  %3607 = vmatprep.subr.bf16.mxu1 %v4082_v0 }
  0x95   : > { %1176 = vmatpush1.bf16.msra.mxu0 %v3713_v16  ;;  %3623 = vmatpush1.bf16.msra.mxu1 %v3713_v16  ;;  %v343_v16 = vld [vmem:[%s4258_s8 + $0x2e0] sm:$0xff] }
  0x96   : > { %1177 = vmatprep.subr.bf16.mxu0 %v4082_v0  ;;  %3608 = vmatprep.subr.bf16.mxu1 %v4082_v0  ;;  %v3829_v0 = vld [vmem:[%s4258_s8 + $0x2b4] ss:$8 sps:$4 sm:$0xff]  }
  0x99   : > { %1178 = vmatpush1.bf16.msra.mxu0 %v3714_v18  ;;  %3624 = vmatpush1.bf16.msra.mxu1 %v3714_v18  ;;  %v3844_v18 = vld [vmem:[%s4258_s8 + $0x2e4] ss:$8 sps:$4 sm:$0xff]  }
  0x9c   : > { %1180 = vmatmul.mubr.bf16.vlgmr.msra.gmra.mrb[0].mxu0 %v3715_v19  ;;  %1436 = vmatmul.mubr.bf16.vlgmr.msra.gmra.mrb[0].mxu1 %v3763_v20  ;;  %v3759_v19 = vld [vmem:[%s4258_s8 + $0xe0] ss:$8 sps:$4 sm:$0xff]   ;;  %v3275_v20 = vcombine.low %v343_v16, %v344_v17  ;;  %v3820_v17 = vld [vmem:[%s4258_s8 + $0x194] ss:$8 sps:$4 sm:$0xff]  }
  0x9d   : > { %1187 = vmatprep.mubr.bf16.mxu0 %v3718_v21  ;;  %1443 = vmatprep.mubr.bf16.mxu1 %v3769_v22  ;;  %v3760_v21 = vld [vmem:[%s4258_s8 + $0xf4] ss:$8 sps:$4 sm:$0xff]  }
  0x9e   : > { %v345_v22 = vld [vmem:[%s4258_s8 + $0x2f0] sm:$0xff] }
  0xa4   : > { %1188 = vmatmul.mubr.bf16.gmra.mrb[4].mxu0 %v3720_v23  ;;  %1444 = vmatmul.mubr.bf16.gmra.mrb[4].mxu1 %v3771_v24  ;;  %v346_v23 = vld [vmem:[%s4258_s8 + $0x2f8] sm:$0xff] }
  0xa5   : > { %1195 = vmatprep.mubr.bf16.mxu0 %v3721_v25  ;;  %1451 = vmatprep.mubr.bf16.mxu1 %v3775_v26  ;;  %v3849_v24 = vld [vmem:[%s4258_s8 + $0x2f4] ss:$8 sps:$4 sm:$0xff]   ;;  %v3762_v25 = vld [vmem:[%s4258_s8 + $0xf0] ss:$8 sps:$4 sm:$0xff]   ;;  %v3277_v26 = vcombine.low %v345_v22, %v346_v23  ;;  %v3826_v23 = vld [vmem:[%s4258_s8 + $0x1a4] ss:$8 sps:$4 sm:$0xff]  }
  0xac   : > { %1196 = vmatmul.mubr.bf16.gmra.mrb[8].mxu0 %v3723_v27  ;;  %1452 = vmatmul.mubr.bf16.gmra.mrb[8].mxu1 %v3777_v28  ;;  %v3766_v27 = vld [vmem:[%s4258_s8 + $0x104] ss:$8 sps:$4 sm:$0xff]  }
  0xad   : > { %1203 = vmatprep.mubr.bf16.mxu0 %v3724_v29  ;;  %1459 = vmatprep.mubr.bf16.mxu1 %v3781_v30  ;;  %v347_v28 = vld [vmem:[%s4258_s8 + $0x300] sm:$0xff]  ;;  %v348_v29 = vld [vmem:[%s4258_s8 + $0x308] sm:$0xff] }
  0xae   : > { %v3854_v30 = vld [vmem:[%s4258_s8 + $0x304] ss:$8 sps:$4 sm:$0xff]  }
  0xb4   : > { %1204 = vmatmul.mubr.bf16.gmra.mrb[12].mxu0 %v3726_v31  ;;  %1460 = vmatmul.mubr.bf16.gmra.mrb[12].mxu1 %v3783_v32  ;;  %v3768_v31 = vld [vmem:[%s4258_s8 + $0x100] ss:$8 sps:$4 sm:$0xff]   ;;  %v3279_v32 = vcombine.low %v347_v28, %v348_v29  ;;  %v3831_v29 = vld [vmem:[%s4258_s8 + $0x1b4] ss:$8 sps:$4 sm:$0xff]  }
  0xb5   : > { %1211 = vmatprep.mubr.bf16.mxu0 %v3727_v33  ;;  %1467 = vmatprep.mubr.bf16.mxu1 %v3787_v34  ;;  %v3772_v33 = vld [vmem:[%s4258_s8 + $0x114] ss:$8 sps:$4 sm:$0xff]  }
  0xb6   : > { %v349_v34 = vld [vmem:[%s4258_s8 + $0x310] sm:$0xff] }
  0xbc   : > { %1212 = vmatmul.mubr.bf16.gmra.mrb[16].mxu0 %v3729_v35  ;;  %1468 = vmatmul.mubr.bf16.gmra.mrb[16].mxu1 %v3789_v36  ;;  %v350_v35 = vld [vmem:[%s4258_s8 + $0x318] sm:$0xff] }
  0xbd   : > { %1219 = vmatprep.mubr.bf16.mxu0 %v3730_v37  ;;  %1475 = vmatprep.mubr.bf16.mxu1 %v3793_v38  ;;  %v3856_v36 = vld [vmem:[%s4258_s8 + $0x314] ss:$8 sps:$4 sm:$0xff]   ;;  %v3774_v37 = vld [vmem:[%s4258_s8 + $0x110] ss:$8 sps:$4 sm:$0xff]   ;;  %v3281_v38 = vcombine.low %v349_v34, %v350_v35 }
  0xc4   : > { %1220 = vmatmul.mubr.bf16.gmra.mrb[20].mxu0 %v3732_v39  ;;  %1476 = vmatmul.mubr.bf16.gmra.mrb[20].mxu1 %v3795_v40  ;;  %v3778_v39 = vld [vmem:[%s4258_s8 + $0x124] ss:$8 sps:$4 sm:$0xff]  }
  0xc5   : > { %1227 = vmatprep.mubr.bf16.mxu0 %v3733_v41  ;;  %1483 = vmatprep.mubr.bf16.mxu1 %v3799_v42  ;;  %v351_v40 = vld [vmem:[%s4258_s8 + $0x320] sm:$0xff]  ;;  %v352_v41 = vld [vmem:[%s4258_s8 + $0x328] sm:$0xff] }
  0xc6   : > { %v3858_v42 = vld [vmem:[%s4258_s8 + $0x324] ss:$8 sps:$4 sm:$0xff]  }
  0xcc   : > { %1228 = vmatmul.mubr.bf16.gmra.mrb[24].mxu0 %v3735_v43  ;;  %1484 = vmatmul.mubr.bf16.gmra.mrb[24].mxu1 %v3801_v44  ;;  %v3780_v43 = vld [vmem:[%s4258_s8 + $0x120] ss:$8 sps:$4 sm:$0xff]   ;;  %v3283_v44 = vcombine.low %v351_v40, %v352_v41 }
  0xcd   : > { %1235 = vmatprep.mubr.bf16.mxu0 %v3736_v45  ;;  %1491 = vmatprep.mubr.bf16.mxu1 %v3805_v46  ;;  %v3784_v45 = vld [vmem:[%s4258_s8 + $0x134] ss:$8 sps:$4 sm:$0xff]  }
  0xce   : > { %v353_v46 = vld [vmem:[%s4258_s8 + $0x330] sm:$0xff] }
  0xd4   : > { %1236 = vmatmul.mubr.bf16.gmra.mrb[28].mxu0 %v3738_v47  ;;  %1492 = vmatmul.mubr.bf16.gmra.mrb[28].mxu1 %v3807_v48  ;;  %v354_v47 = vld [vmem:[%s4258_s8 + $0x338] sm:$0xff] }
  0xd5   : > { %1243 = vmatprep.mubr.bf16.mxu0 %v3739_v49  ;;  %1499 = vmatprep.mubr.bf16.mxu1 %v3811_v50  ;;  %v3860_v48 = vld [vmem:[%s4258_s8 + $0x334] ss:$8 sps:$4 sm:$0xff]   ;;  %v3786_v49 = vld [vmem:[%s4258_s8 + $0x130] ss:$8 sps:$4 sm:$0xff]   ;;  %v3285_v50 = vcombine.low %v353_v46, %v354_v47 }
  0xdc   : > { %1244 = vmatmul.mubr.bf16.gmra.mrb[32].mxu0 %v3741_v51  ;;  %1500 = vmatmul.mubr.bf16.gmra.mrb[32].mxu1 %v3813_v52  ;;  %v3790_v51 = vld [vmem:[%s4258_s8 + $0x144] ss:$8 sps:$4 sm:$0xff]  }
  0xdd   : > { %1251 = vmatprep.mubr.bf16.mxu0 %v3742_v53  ;;  %1507 = vmatprep.mubr.bf16.mxu1 %v3817_v54  ;;  %v355_v52 = vld [vmem:[%s4258_s8 + $0x340] sm:$0xff]  ;;  %v356_v53 = vld [vmem:[%s4258_s8 + $0x348] sm:$0xff] }
  0xde   : > { %v3862_v54 = vld [vmem:[%s4258_s8 + $0x344] ss:$8 sps:$4 sm:$0xff]  }
  0xe4   : > { %1252 = vmatmul.mubr.bf16.gmra.mrb[36].mxu0 %v3744_v55  ;;  %1508 = vmatmul.mubr.bf16.gmra.mrb[36].mxu1 %v3819_v56  ;;  %v3792_v55 = vld [vmem:[%s4258_s8 + $0x140] ss:$8 sps:$4 sm:$0xff]   ;;  %v3287_v56 = vcombine.low %v355_v52, %v356_v53 }
  0xe5   : > { %1259 = vmatprep.mubr.bf16.mxu0 %v3745_v57  ;;  %1515 = vmatprep.mubr.bf16.mxu1 %v3823_v58  ;;  %v3796_v57 = vld [vmem:[%s4258_s8 + $0x154] ss:$8 sps:$4 sm:$0xff]  }
  0xe6   : > { %v357_v58 = vld [vmem:[%s4258_s8 + $0x350] sm:$0xff] }
  0xec   : > { %1260 = vmatmul.mubr.bf16.gmra.mrb[40].mxu0 %v3747_v59  ;;  %1516 = vmatmul.mubr.bf16.gmra.mrb[40].mxu1 %v3825_v60  ;;  %v358_v59 = vld [vmem:[%s4258_s8 + $0x358] sm:$0xff] }
  0xed   : > { %1267 = vmatprep.mubr.bf16.mxu0 %v3748_v61  ;;  %1523 = vmatprep.mubr.bf16.mxu1 %v3829_v0  ;;  %v3864_v60 = vld [vmem:[%s4258_s8 + $0x354] ss:$8 sps:$4 sm:$0xff]   ;;  %v3798_v61 = vld [vmem:[%s4258_s8 + $0x150] ss:$8 sps:$4 sm:$0xff]   ;;  %v3289_v62 = vcombine.low %v357_v58, %v358_v59  ;;  %v359_v0 = vld [vmem:[%s4258_s8 + $0x360] sm:$0xff] }
  0xee   : > { %v3878_v58 = vld [vmem:[%s4258_s8 + $0x3c4] ss:$8 sps:$4 sm:$0xff]  }
  0xf4   : > { %1268 = vmatmul.mubr.bf16.gmra.mrb[44].mxu0 %v3750_v1  ;;  %1524 = vmatmul.mubr.bf16.gmra.mrb[44].mxu1 %v3269_v2  ;;  %v360_v1 = vld [vmem:[%s4258_s8 + $0x368] sm:$0xff] }
  0xf5   : > { %1275 = vmatprep.mubr.bf16.mxu0 %v3751_v3  ;;  %1531 = vmatprep.mubr.bf16.mxu1 %v3834_v6  ;;  %v3866_v2 = vld [vmem:[%s4258_s8 + $0x364] ss:$8 sps:$4 sm:$0xff]   ;;  %v3804_v3 = vld [vmem:[%s4258_s8 + $0x160] ss:$8 sps:$4 sm:$0xff]   ;;  %v3291_v4 = vcombine.low %v359_v0, %v360_v1  ;;  %v361_v6 = vld [vmem:[%s4258_s8 + $0x370] sm:$0xff] }
  0xfc   : > { %1276 = vmatmul.mubr.bf16.gmra.mrb[48].mxu0 %v3753_v7  ;;  %1532 = vmatmul.mubr.bf16.gmra.mrb[48].mxu1 %v3271_v8  ;;  %v362_v7 = vld [vmem:[%s4258_s8 + $0x378] sm:$0xff] }
  0xfd   : > { %1283 = vmatprep.mubr.bf16.mxu0 %v3754_v9  ;;  %1539 = vmatprep.mubr.bf16.mxu1 %v3839_v12  ;;  %v3868_v8 = vld [vmem:[%s4258_s8 + $0x374] ss:$8 sps:$4 sm:$0xff]   ;;  %v3810_v9 = vld [vmem:[%s4258_s8 + $0x170] ss:$8 sps:$4 sm:$0xff]   ;;  %v3293_v10 = vcombine.low %v361_v6, %v362_v7  ;;  %v363_v12 = vld [vmem:[%s4258_s8 + $0x380] sm:$0xff] }
  0xfe   : > { %v3841_v7 = vld [vmem:[%s4258_s8 + $0x1d4] ss:$8 sps:$4 sm:$0xff]  }
 0x104   : > { %1284 = vmatmul.mubr.bf16.gmra.mrb[52].mxu0 %v3756_v13  ;;  %1540 = vmatmul.mubr.bf16.gmra.mrb[52].mxu1 %v3273_v14  ;;  %v364_v13 = vld [vmem:[%s4258_s8 + $0x388] sm:$0xff] }
 0x105   : > { %1291 = vmatprep.mubr.bf16.mxu0 %v3757_v15  ;;  %1547 = vmatprep.mubr.bf16.mxu1 %v3844_v18  ;;  %v3870_v14 = vld [vmem:[%s4258_s8 + $0x384] ss:$8 sps:$4 sm:$0xff]   ;;  %v3816_v15 = vld [vmem:[%s4258_s8 + $0x180] ss:$8 sps:$4 sm:$0xff]   ;;  %v3295_v16 = vcombine.low %v363_v12, %v364_v13  ;;  %v365_v18 = vld [vmem:[%s4258_s8 + $0x390] sm:$0xff] }
 0x10c   : > { %1292 = vmatmul.mubr.bf16.gmra.mrb[56].mxu0 %v3759_v19  ;;  %1548 = vmatmul.mubr.bf16.gmra.mrb[56].mxu1 %v3275_v20  ;;  %v366_v19 = vld [vmem:[%s4258_s8 + $0x398] sm:$0xff] }
 0x10d   : > { %1299 = vmatprep.mubr.bf16.mxu0 %v3760_v21  ;;  %1555 = vmatprep.mubr.bf16.mxu1 %v3849_v24  ;;  %v3872_v20 = vld [vmem:[%s4258_s8 + $0x394] ss:$8 sps:$4 sm:$0xff]   ;;  %v3822_v21 = vld [vmem:[%s4258_s8 + $0x190] ss:$8 sps:$4 sm:$0xff]   ;;  %v3297_v22 = vcombine.low %v365_v18, %v366_v19  ;;  %v367_v24 = vld [vmem:[%s4258_s8 + $0x3a0] sm:$0xff] }
 0x114   : > { %1300 = vmatmul.mubr.bf16.gmra.mrb[60].mxu0 %v3762_v25  ;;  %1556 = vmatmul.mubr.bf16.gmra.mrb[60].mxu1 %v3277_v26  ;;  %v368_v25 = vld [vmem:[%s4258_s8 + $0x3a8] sm:$0xff] }
 0x115   : > { %1307 = vmatprep.mubr.bf16.mxu0 %v3766_v27  ;;  %1563 = vmatprep.mubr.bf16.mxu1 %v3854_v30  ;;  %v3874_v26 = vld [vmem:[%s4258_s8 + $0x3a4] ss:$8 sps:$4 sm:$0xff]   ;;  %v3828_v27 = vld [vmem:[%s4258_s8 + $0x1a0] ss:$8 sps:$4 sm:$0xff]   ;;  %v3299_v28 = vcombine.low %v367_v24, %v368_v25  ;;  %v369_v30 = vld [vmem:[%s4258_s8 + $0x3b0] sm:$0xff] }
 0x11c   : > { %1308 = vmatmul.mubr.bf16.gmra.mrb[64].mxu0 %v3768_v31  ;;  %1564 = vmatmul.mubr.bf16.gmra.mrb[64].mxu1 %v3279_v32  ;;  %v370_v31 = vld [vmem:[%s4258_s8 + $0x3b8] sm:$0xff] }
 0x11d   : > { %1315 = vmatprep.mubr.bf16.mxu0 %v3772_v33  ;;  %1571 = vmatprep.mubr.bf16.mxu1 %v3856_v36  ;;  %v3876_v32 = vld [vmem:[%s4258_s8 + $0x3b4] ss:$8 sps:$4 sm:$0xff]   ;;  %v3301_v41 = vcombine.low %v369_v30, %v370_v31  ;;  %v3843_v30 = vld [vmem:[%s4258_s8 + $0x1d0] ss:$8 sps:$4 sm:$0xff]  }
 0x124   : > { %1316 = vmatmul.mubr.bf16.gmra.mrb[68].mxu0 %v3774_v37  ;;  %1572 = vmatmul.mubr.bf16.gmra.mrb[68].mxu1 %v3281_v38  ;;  %v3833_v38 = vld [vmem:[%s4258_s8 + $0x1b0] ss:$8 sps:$4 sm:$0xff]  }
 0x125   : > { %1323 = vmatprep.mubr.bf16.mxu0 %v3778_v39  ;;  %1579 = vmatprep.mubr.bf16.mxu1 %v3858_v42 }
 0x12c   : > { %1324 = vmatmul.mubr.bf16.gmra.mrb[72].mxu0 %v3780_v43  ;;  %1580 = vmatmul.mubr.bf16.gmra.mrb[72].mxu1 %v3283_v44  ;;  %v3836_v43 = vld [vmem:[%s4258_s8 + $0x1c4] ss:$8 sps:$4 sm:$0xff]  }
 0x12d   : > { %1331 = vmatprep.mubr.bf16.mxu0 %v3784_v45  ;;  %1587 = vmatprep.mubr.bf16.mxu1 %v3860_v48 }
 0x134   : > { %1332 = vmatmul.mubr.bf16.gmra.mrb[76].mxu0 %v3786_v49  ;;  %1588 = vmatmul.mubr.bf16.gmra.mrb[76].mxu1 %v3285_v50 }
 0x135   : > { %1339 = vmatprep.mubr.bf16.mxu0 %v3790_v51  ;;  %1595 = vmatprep.mubr.bf16.mxu1 %v3862_v54 }
 0x13c   : > { %1340 = vmatmul.mubr.bf16.gmra.mrb[80].mxu0 %v3792_v55  ;;  %1596 = vmatmul.mubr.bf16.gmra.mrb[80].mxu1 %v3287_v56  ;;  %v371_v56 = vld [vmem:[%s4258_s8 + $0x3c0] sm:$0xff] }
 0x13d   : > { %1347 = vmatprep.mubr.bf16.mxu0 %v3796_v57  ;;  %1603 = vmatprep.mubr.bf16.mxu1 %v3864_v60  ;;  %v372_v57 = vld [vmem:[%s4258_s8 + $0x3c8] sm:$0xff] }
 0x144   : > { %1348 = vmatmul.mubr.bf16.gmra.mrb[84].mxu0 %v3798_v61  ;;  %1604 = vmatmul.mubr.bf16.gmra.mrb[84].mxu1 %v3289_v62  ;;  %v3303_v61 = vcombine.low %v371_v56, %v372_v57 }
 0x145   : > { %1355 = vmatprep.mubr.bf16.mxu0 %v3802_v63  ;;  %1611 = vmatprep.mubr.bf16.mxu1 %v3866_v2  ;;  %v3838_v2 = vld [vmem:[%s4258_s8 + $0x1c0] ss:$8 sps:$4 sm:$0xff]  }
 0x14c   : > { %1356 = vmatmul.mubr.bf16.gmra.mrb[88].mxu0 %v3804_v3  ;;  %1612 = vmatmul.mubr.bf16.gmra.mrb[88].mxu1 %v3291_v4 }
 0x14d   : > { %1363 = vmatprep.mubr.bf16.mxu0 %v3808_v5  ;;  %1619 = vmatprep.mubr.bf16.mxu1 %v3868_v8 }
 0x154   : > { %1364 = vmatmul.mubr.bf16.gmra.mrb[92].mxu0 %v3810_v9  ;;  %1620 = vmatmul.mubr.bf16.gmra.mrb[92].mxu1 %v3293_v10 }
 0x155   : > { %1371 = vmatprep.mubr.bf16.mxu0 %v3814_v11  ;;  %1627 = vmatprep.mubr.bf16.mxu1 %v3870_v14 }
 0x15c   : > { %1372 = vmatmul.mubr.bf16.gmra.mrb[96].mxu0 %v3816_v15  ;;  %1628 = vmatmul.mubr.bf16.gmra.mrb[96].mxu1 %v3295_v16 }
 0x15d   : > { %1379 = vmatprep.mubr.bf16.mxu0 %v3820_v17  ;;  %1635 = vmatprep.mubr.bf16.mxu1 %v3872_v20  ;;  %v373_v20 = vld [vmem:[%s4258_s8 + $0x3d0] sm:$0xff] }
 0x164   : > { %1380 = vmatmul.mubr.bf16.gmra.mrb[100].mxu0 %v3822_v21  ;;  %1636 = vmatmul.mubr.bf16.gmra.mrb[100].mxu1 %v3297_v22  ;;  %v374_v21 = vld [vmem:[%s4258_s8 + $0x3d8] sm:$0xff] }
 0x165   : > { %1387 = vmatprep.mubr.bf16.mxu0 %v3826_v23  ;;  %1643 = vmatprep.mubr.bf16.mxu1 %v3874_v26  ;;  %v3880_v22 = vld [vmem:[%s4258_s8 + $0x3d4] ss:$8 sps:$4 sm:$0xff]   ;;  %v3305_v25 = vcombine.low %v373_v20, %v374_v21 }
 0x16c   : > { %1388 = vmatmul.mubr.bf16.gmra.mrb[104].mxu0 %v3828_v27  ;;  %1644 = vmatmul.mubr.bf16.gmra.mrb[104].mxu1 %v3299_v28 }
 0x16d   : > { %1395 = vmatprep.mubr.bf16.mxu0 %v3831_v29  ;;  %1651 = vmatprep.mubr.bf16.mxu1 %v3876_v32 }
 0x16f   : > { %v1181_v33 = vpop.f32.mrb[0].mxu0  ;;  %v4429_v34 = vpop.f32.mrb[0].mxu1 }
 0x170   : > { %v3464_v35 = vpack.c.bf16 %v1181_v33, %v1181_v33  ;;  %v2597_v36 = vmul.f32 %v1181_v33, %v1181_v33  ;;  %v1183_v37 = vpop.f32.mrb[1].mxu0  ;;  %v3528_v39 = vpack.c.bf16 %v4429_v34, %v4429_v34  ;;  %v1439_v40 = vpop.f32.mrb[1].mxu1  ;;  %v2334_v45 = vsel %vm2333_vm1, %v1181_v33, 0.0 }
 0x171   : > { %v1184_v42 = vpop.f32.mrb[2].mxu0  ;;  %v4435_v44 = vpop.f32.mrb[2].mxu1 }
 0x172   : > { %2205 = vst.msk [vmem:[%s4437_s23] sm:$0xf] %vm2204_vm0, %v3464_v35  ;;  %v3465_v46 = vpack.c.bf16 %v1184_v42, %v1184_v42  ;;  %v2335_v47 = vsel %vm2333_vm1, %v1184_v42, 0.0  ;;  %v2598_v48 = vmul.f32 %v1184_v42, %v1184_v42  ;;  %v1186_v49 = vpop.f32.mrb[3].mxu0  ;;  %2269 = vst.msk [vmem:[%s4437_s23 + $0x100] sm:$0xf] %vm2204_vm0, %v3528_v39  ;;  %v3529_v52 = vpack.c.bf16 %v4435_v44, %v4435_v44 }
 0x173   : > { %v1442_v50 = vpop.f32.mrb[3].mxu1  ;;  %v2336_v51 = vadd.f32 %v2335_v47, %v2334_v45  ;;  %v2725_v53 = vsel %vm2333_vm1, %v2597_v36, 0.0  ;;  %v3846_v36 = vld [vmem:[%s4258_s8 + $0x1e4] ss:$8 sps:$4 sm:$0xff]  }
 0x174   : > { %2206 = vst.msk [vmem:[%s4437_s23 + $0x4] sm:$0xf] %vm2204_vm0, %v3465_v46  ;;  %v2726_v54 = vsel %vm2333_vm1, %v2598_v48, 0.0  ;;  %1396 = vmatmul.mubr.bf16.gmra.mrb[108].mxu0 %v3833_v38  ;;  %1652 = vmatmul.mubr.bf16.gmra.mrb[108].mxu1 %v3301_v41  ;;  %2270 = vst.msk [vmem:[%s4437_s23 + $0x104] sm:$0xf] %vm2204_vm0, %v3529_v52  ;;  %v375_v50 = vld [vmem:[%s4258_s8 + $0x3e0] sm:$0xff] }
 0x175   : > { %v2727_v55 = vadd.f32 %v2726_v54, %v2725_v53  ;;  %1403 = vmatprep.mubr.bf16.mxu0 %v3836_v43  ;;  %1659 = vmatprep.mubr.bf16.mxu1 %v3878_v58  ;;  %v3882_v52 = vld [vmem:[%s4258_s8 + $0x3e4] ss:$8 sps:$4 sm:$0xff]  }
 0x177   : > { %v1189_v59 = vpop.f32.mrb[4].mxu0  ;;  %v4456_v60 = vpop.f32.mrb[4].mxu1 }
 0x178   : > { %v3466_v62 = vpack.c.bf16 %v1189_v59, %v1189_v59  ;;  %v2337_v63 = vsel %vm2333_vm1, %v1189_v59, 0.0  ;;  %v2599_v0 = vmul.f32 %v1189_v59, %v1189_v59  ;;  %v1191_v1 = vpop.f32.mrb[5].mxu0  ;;  %v3530_v3 = vpack.c.bf16 %v4456_v60, %v4456_v60  ;;  %v1447_v4 = vpop.f32.mrb[5].mxu1 }
 0x179   : > { %v2338_v5 = vadd.f32 %v2337_v63, %v2336_v51  ;;  %v1192_v6 = vpop.f32.mrb[6].mxu0  ;;  %v4463_v8 = vpop.f32.mrb[6].mxu1  ;;  %v376_v51 = vld [vmem:[%s4258_s8 + $0x3e8] sm:$0xff] }
 0x17a   : > { %2207 = vst.msk [vmem:[%s4437_s23 + $0x8] sm:$0xf] %vm2204_vm0, %v3466_v62  ;;  %v2728_v9 = vsel %vm2333_vm1, %v2599_v0, 0.0  ;;  %v3467_v10 = vpack.c.bf16 %v1192_v6, %v1192_v6  ;;  %v2339_v11 = vsel %vm2333_vm1, %v1192_v6, 0.0  ;;  %v2600_v12 = vmul.f32 %v1192_v6, %v1192_v6  ;;  %v1194_v13 = vpop.f32.mrb[7].mxu0  ;;  %v1450_v14 = vpop.f32.mrb[7].mxu1 }
 0x17b   : > { %2271 = vst.msk [vmem:[%s4437_s23 + $0x108] sm:$0xf] %vm2204_vm0, %v3530_v3  ;;  %v2729_v15 = vadd.f32 %v2728_v9, %v2727_v55  ;;  %v2340_v16 = vadd.f32 %v2339_v11, %v2338_v5  ;;  %v3531_v17 = vpack.c.bf16 %v4463_v8, %v4463_v8  ;;  %v3307_v55 = vcombine.low %v375_v50, %v376_v51 }
 0x17c   : > { %2208 = vst.msk [vmem:[%s4437_s23 + $0xc] sm:$0xf] %vm2204_vm0, %v3467_v10  ;;  %v2730_v18 = vsel %vm2333_vm1, %v2600_v12, 0.0  ;;  %1404 = vmatmul.mubr.bf16.gmra.mrb[112].mxu0 %v3838_v2  ;;  %1660 = vmatmul.mubr.bf16.gmra.mrb[112].mxu1 %v3303_v61  ;;  %v3848_v61 = vld [vmem:[%s4258_s8 + $0x1e0] ss:$8 sps:$4 sm:$0xff]  }
 0x17d   : > { %v2731_v19 = vadd.f32 %v2730_v18, %v2729_v15  ;;  %1411 = vmatprep.mubr.bf16.mxu0 %v3841_v7  ;;  %2272 = vst.msk [vmem:[%s4437_s23 + $0x10c] sm:$0xf] %vm2204_vm0, %v3531_v17  ;;  %1667 = vmatprep.mubr.bf16.mxu1 %v3880_v22  ;;  %v3851_v2 = vld [vmem:[%s4258_s8 + $0x1f4] ss:$8 sps:$4 sm:$0xff]  }
 0x17e   : > { %v378_v17 = vld [vmem:[%s4258_s8 + $0x3f8] sm:$0xff] }
 0x17f   : > { %v1197_v23 = vpop.f32.mrb[8].mxu0  ;;  %v4481_v24 = vpop.f32.mrb[8].mxu1  ;;  %v3884_v18 = vld [vmem:[%s4258_s8 + $0x3f4] ss:$8 sps:$4 sm:$0xff]  }
 0x180   : > { %v3468_v26 = vpack.c.bf16 %v1197_v23, %v1197_v23  ;;  %v2341_v27 = vsel %vm2333_vm1, %v1197_v23, 0.0  ;;  %v2601_v28 = vmul.f32 %v1197_v23, %v1197_v23  ;;  %v1199_v29 = vpop.f32.mrb[9].mxu0  ;;  %v3532_v31 = vpack.c.bf16 %v4481_v24, %v4481_v24  ;;  %v1455_v32 = vpop.f32.mrb[9].mxu1 }
 0x181   : > { %v2342_v33 = vadd.f32 %v2341_v27, %v2340_v16  ;;  %v1200_v35 = vpop.f32.mrb[10].mxu0  ;;  %v4488_v37 = vpop.f32.mrb[10].mxu1  ;;  %v377_v16 = vld [vmem:[%s4258_s8 + $0x3f0] sm:$0xff] }
 0x182   : > { %2209 = vst.msk [vmem:[%s4437_s23 + $0x10] sm:$0xf] %vm2204_vm0, %v3468_v26  ;;  %v2732_v38 = vsel %vm2333_vm1, %v2601_v28, 0.0  ;;  %v3469_v39 = vpack.c.bf16 %v1200_v35, %v1200_v35  ;;  %v2343_v40 = vsel %vm2333_vm1, %v1200_v35, 0.0  ;;  %v2602_v41 = vmul.f32 %v1200_v35, %v1200_v35  ;;  %v1202_v42 = vpop.f32.mrb[11].mxu0  ;;  %v1458_v43 = vpop.f32.mrb[11].mxu1 }
 0x183   : > { %2273 = vst.msk [vmem:[%s4437_s23 + $0x110] sm:$0xf] %vm2204_vm0, %v3532_v31  ;;  %v2733_v45 = vadd.f32 %v2732_v38, %v2731_v19  ;;  %v2344_v46 = vadd.f32 %v2343_v40, %v2342_v33  ;;  %v3533_v47 = vpack.c.bf16 %v4488_v37, %v4488_v37  ;;  %v3309_v21 = vcombine.low %v377_v16, %v378_v17  ;;  %v3853_v27 = vld [vmem:[%s4258_s8 + $0x1f0] ss:$8 sps:$4 sm:$0xff]  }
 0x184   : > { %2210 = vst.msk [vmem:[%s4437_s23 + $0x14] sm:$0xf] %vm2204_vm0, %v3469_v39  ;;  %v2734_v48 = vsel %vm2333_vm1, %v2602_v41, 0.0  ;;  %1412 = vmatmul.mubr.bf16.gmra.mrb[116].mxu0 %v3843_v30  ;;  %1668 = vmatmul.mubr.bf16.gmra.mrb[116].mxu1 %v3305_v25 }
 0x185   : > { %v2735_v49 = vadd.f32 %v2734_v48, %v2733_v45  ;;  %1419 = vmatprep.mubr.bf16.mxu0 %v3846_v36  ;;  %2274 = vst.msk [vmem:[%s4437_s23 + $0x114] sm:$0xf] %vm2204_vm0, %v3533_v47  ;;  %1675 = vmatprep.mubr.bf16.mxu1 %v3882_v52 }
 0x187   : > { %v1205_v53 = vpop.f32.mrb[12].mxu0  ;;  %v4506_v54 = vpop.f32.mrb[12].mxu1 }
 0x188   : > { %v3470_v56 = vpack.c.bf16 %v1205_v53, %v1205_v53  ;;  %v2345_v57 = vsel %vm2333_vm1, %v1205_v53, 0.0  ;;  %v2603_v58 = vmul.f32 %v1205_v53, %v1205_v53  ;;  %v1207_v59 = vpop.f32.mrb[13].mxu0  ;;  %v3534_v62 = vpack.c.bf16 %v4506_v54, %v4506_v54  ;;  %v1463_v63 = vpop.f32.mrb[13].mxu1 }
 0x189   : > { %v2346_v0 = vadd.f32 %v2345_v57, %v2344_v46  ;;  %v1208_v1 = vpop.f32.mrb[14].mxu0  ;;  %v4513_v3 = vpop.f32.mrb[14].mxu1 }
 0x18a   : > { %2211 = vst.msk [vmem:[%s4437_s23 + $0x18] sm:$0xf] %vm2204_vm0, %v3470_v56  ;;  %v2736_v4 = vsel %vm2333_vm1, %v2603_v58, 0.0  ;;  %v3471_v5 = vpack.c.bf16 %v1208_v1, %v1208_v1  ;;  %v2347_v6 = vsel %vm2333_vm1, %v1208_v1, 0.0  ;;  %v2604_v7 = vmul.f32 %v1208_v1, %v1208_v1  ;;  %v1210_v9 = vpop.f32.mrb[15].mxu0  ;;  %v1466_v10 = vpop.f32.mrb[15].mxu1 }
 0x18b   : > { %2275 = vst.msk [vmem:[%s4437_s23 + $0x118] sm:$0xf] %vm2204_vm0, %v3534_v62  ;;  %v2737_v11 = vadd.f32 %v2736_v4, %v2735_v49  ;;  %v2348_v12 = vadd.f32 %v2347_v6, %v2346_v0  ;;  %v3535_v13 = vpack.c.bf16 %v4513_v3, %v4513_v3 }
 0x18c   : > { %2212 = vst.msk [vmem:[%s4437_s23 + $0x1c] sm:$0xf] %vm2204_vm0, %v3471_v5  ;;  %v2738_v14 = vsel %vm2333_vm1, %v2604_v7, 0.0  ;;  %1420 = vmatmul.mubr.bf16.gmra.mrb[120].mxu0 %v3848_v61  ;;  %1676 = vmatmul.mubr.bf16.gmra.mrb[120].mxu1 %v3307_v55 }
 0x18d   : > { %v2739_v15 = vadd.f32 %v2738_v14, %v2737_v11  ;;  %1427 = vmatprep.mubr.bf16.mxu0 %v3851_v2  ;;  %2276 = vst.msk [vmem:[%s4437_s23 + $0x11c] sm:$0xf] %vm2204_vm0, %v3535_v13  ;;  %1683 = vmatprep.mubr.bf16.mxu1 %v3884_v18 }
 0x18f   : > { %v1213_v19 = vpop.f32.mrb[16].mxu0  ;;  %v4531_v20 = vpop.f32.mrb[16].mxu1 }
 0x190   : > { %v3472_v22 = vpack.c.bf16 %v1213_v19, %v1213_v19  ;;  %v2349_v23 = vsel %vm2333_vm1, %v1213_v19, 0.0  ;;  %v2605_v25 = vmul.f32 %v1213_v19, %v1213_v19  ;;  %v1215_v26 = vpop.f32.mrb[17].mxu0  ;;  %v3536_v28 = vpack.c.bf16 %v4531_v20, %v4531_v20  ;;  %v1471_v29 = vpop.f32.mrb[17].mxu1 }
 0x191   : > { %v2350_v30 = vadd.f32 %v2349_v23, %v2348_v12  ;;  %v1216_v31 = vpop.f32.mrb[18].mxu0  ;;  %v4537_v32 = vpop.f32.mrb[18].mxu1 }
 0x192   : > { %2213 = vst.msk [vmem:[%s4437_s23 + $0x20] sm:$0xf] %vm2204_vm0, %v3472_v22  ;;  %v2740_v33 = vsel %vm2333_vm1, %v2605_v25, 0.0  ;;  %v3473_v35 = vpack.c.bf16 %v1216_v31, %v1216_v31  ;;  %v2351_v36 = vsel %vm2333_vm1, %v1216_v31, 0.0  ;;  %v2606_v38 = vmul.f32 %v1216_v31, %v1216_v31  ;;  %v1218_v39 = vpop.f32.mrb[19].mxu0  ;;  %v1474_v40 = vpop.f32.mrb[19].mxu1 }
 0x193   : > { %2277 = vst.msk [vmem:[%s4437_s23 + $0x120] sm:$0xf] %vm2204_vm0, %v3536_v28  ;;  %v2741_v41 = vadd.f32 %v2740_v33, %v2739_v15  ;;  %v2352_v42 = vadd.f32 %v2351_v36, %v2350_v30  ;;  %v3537_v43 = vpack.c.bf16 %v4537_v32, %v4537_v32 }
 0x194   : > { %2214 = vst.msk [vmem:[%s4437_s23 + $0x24] sm:$0xf] %vm2204_vm0, %v3473_v35  ;;  %v2742_v45 = vsel %vm2333_vm1, %v2606_v38, 0.0  ;;  %1428 = vmatmul.mubr.bf16.gmra.mrb[124].mxu0 %v3853_v27  ;;  %1684 = vmatmul.mubr.bf16.gmra.mrb[124].mxu1 %v3309_v21 }
 0x195   : > { %v2743_v46 = vadd.f32 %v2742_v45, %v2741_v41  ;;  %2278 = vst.msk [vmem:[%s4437_s23 + $0x124] sm:$0xf] %vm2204_vm0, %v3537_v43 }
 0x197   : > { %v1221_v47 = vpop.f32.mrb[20].mxu0  ;;  %v4552_v48 = vpop.f32.mrb[20].mxu1 }
 0x198   : > { %v3474_v49 = vpack.c.bf16 %v1221_v47, %v1221_v47  ;;  %v2353_v50 = vsel %vm2333_vm1, %v1221_v47, 0.0  ;;  %v2607_v51 = vmul.f32 %v1221_v47, %v1221_v47  ;;  %v1223_v52 = vpop.f32.mrb[21].mxu0  ;;  %v3538_v53 = vpack.c.bf16 %v4552_v48, %v4552_v48  ;;  %v1479_v55 = vpop.f32.mrb[21].mxu1 }
 0x199   : > { %v2354_v56 = vadd.f32 %v2353_v50, %v2352_v42  ;;  %v1224_v57 = vpop.f32.mrb[22].mxu0  ;;  %v4557_v58 = vpop.f32.mrb[22].mxu1 }
 0x19a   : > { %2215 = vst.msk [vmem:[%s4437_s23 + $0x28] sm:$0xf] %vm2204_vm0, %v3474_v49  ;;  %v2744_v59 = vsel %vm2333_vm1, %v2607_v51, 0.0  ;;  %v3475_v61 = vpack.c.bf16 %v1224_v57, %v1224_v57  ;;  %v2355_v62 = vsel %vm2333_vm1, %v1224_v57, 0.0  ;;  %v2608_v63 = vmul.f32 %v1224_v57, %v1224_v57  ;;  %v1226_v0 = vpop.f32.mrb[23].mxu0  ;;  %v1482_v1 = vpop.f32.mrb[23].mxu1 }
 0x19b   : > { %2279 = vst.msk [vmem:[%s4437_s23 + $0x128] sm:$0xf] %vm2204_vm0, %v3538_v53  ;;  %v2745_v2 = vadd.f32 %v2744_v59, %v2743_v46  ;;  %v2356_v4 = vadd.f32 %v2355_v62, %v2354_v56  ;;  %v3539_v5 = vpack.c.bf16 %v4557_v58, %v4557_v58 }
 0x19c   : > { %2216 = vst.msk [vmem:[%s4437_s23 + $0x2c] sm:$0xf] %vm2204_vm0, %v3475_v61  ;;  %v2746_v6 = vsel %vm2333_vm1, %v2608_v63, 0.0 }
 0x19d   : > { %v2747_v7 = vadd.f32 %v2746_v6, %v2745_v2  ;;  %2280 = vst.msk [vmem:[%s4437_s23 + $0x12c] sm:$0xf] %vm2204_vm0, %v3539_v5 }
 0x19f   : > { %v1229_v9 = vpop.f32.mrb[24].mxu0  ;;  %v4572_v10 = vpop.f32.mrb[24].mxu1 }
 0x1a0   : > { %v3476_v11 = vpack.c.bf16 %v1229_v9, %v1229_v9  ;;  %v2357_v12 = vsel %vm2333_vm1, %v1229_v9, 0.0  ;;  %v2609_v13 = vmul.f32 %v1229_v9, %v1229_v9  ;;  %v1231_v14 = vpop.f32.mrb[25].mxu0  ;;  %v3540_v15 = vpack.c.bf16 %v4572_v10, %v4572_v10  ;;  %v1487_v16 = vpop.f32.mrb[25].mxu1 }
 0x1a1   : > { %v2358_v17 = vadd.f32 %v2357_v12, %v2356_v4  ;;  %v1232_v18 = vpop.f32.mrb[26].mxu0  ;;  %v4577_v19 = vpop.f32.mrb[26].mxu1 }
 0x1a2   : > { %2217 = vst.msk [vmem:[%s4437_s23 + $0x30] sm:$0xf] %vm2204_vm0, %v3476_v11  ;;  %v2748_v21 = vsel %vm2333_vm1, %v2609_v13, 0.0  ;;  %v3477_v22 = vpack.c.bf16 %v1232_v18, %v1232_v18  ;;  %v2359_v23 = vsel %vm2333_vm1, %v1232_v18, 0.0  ;;  %v2610_v25 = vmul.f32 %v1232_v18, %v1232_v18  ;;  %v1234_v26 = vpop.f32.mrb[27].mxu0  ;;  %v1490_v27 = vpop.f32.mrb[27].mxu1 }
 0x1a3   : > { %2281 = vst.msk [vmem:[%s4437_s23 + $0x130] sm:$0xf] %vm2204_vm0, %v3540_v15  ;;  %v2749_v28 = vadd.f32 %v2748_v21, %v2747_v7  ;;  %v2360_v29 = vadd.f32 %v2359_v23, %v2358_v17  ;;  %v3541_v30 = vpack.c.bf16 %v4577_v19, %v4577_v19 }
 0x1a4   : > { %2218 = vst.msk [vmem:[%s4437_s23 + $0x34] sm:$0xf] %vm2204_vm0, %v3477_v22  ;;  %v2750_v31 = vsel %vm2333_vm1, %v2610_v25, 0.0 }
 0x1a5   : > { %v2751_v33 = vadd.f32 %v2750_v31, %v2749_v28  ;;  %2282 = vst.msk [vmem:[%s4437_s23 + $0x134] sm:$0xf] %vm2204_vm0, %v3541_v30 }
 0x1a7   : > { %v1237_v35 = vpop.f32.mrb[28].mxu0  ;;  %v4592_v36 = vpop.f32.mrb[28].mxu1 }
 0x1a8   : > { %v3478_v38 = vpack.c.bf16 %v1237_v35, %v1237_v35  ;;  %v2361_v39 = vsel %vm2333_vm1, %v1237_v35, 0.0  ;;  %v2611_v40 = vmul.f32 %v1237_v35, %v1237_v35  ;;  %v1239_v41 = vpop.f32.mrb[29].mxu0  ;;  %v3542_v42 = vpack.c.bf16 %v4592_v36, %v4592_v36  ;;  %v1495_v43 = vpop.f32.mrb[29].mxu1 }
 0x1a9   : > { %v2362_v45 = vadd.f32 %v2361_v39, %v2360_v29  ;;  %v1240_v46 = vpop.f32.mrb[30].mxu0  ;;  %v4597_v47 = vpop.f32.mrb[30].mxu1 }
 0x1aa   : > { %2219 = vst.msk [vmem:[%s4437_s23 + $0x38] sm:$0xf] %vm2204_vm0, %v3478_v38  ;;  %v2752_v49 = vsel %vm2333_vm1, %v2611_v40, 0.0  ;;  %v3479_v50 = vpack.c.bf16 %v1240_v46, %v1240_v46  ;;  %v2363_v51 = vsel %vm2333_vm1, %v1240_v46, 0.0  ;;  %v2612_v52 = vmul.f32 %v1240_v46, %v1240_v46  ;;  %v1242_v53 = vpop.f32.mrb[31].mxu0  ;;  %v1498_v55 = vpop.f32.mrb[31].mxu1 }
 0x1ab   : > { %2283 = vst.msk [vmem:[%s4437_s23 + $0x138] sm:$0xf] %vm2204_vm0, %v3542_v42  ;;  %v2753_v56 = vadd.f32 %v2752_v49, %v2751_v33  ;;  %v2364_v57 = vadd.f32 %v2363_v51, %v2362_v45  ;;  %v3543_v59 = vpack.c.bf16 %v4597_v47, %v4597_v47 }
 0x1ac   : > { %2220 = vst.msk [vmem:[%s4437_s23 + $0x3c] sm:$0xf] %vm2204_vm0, %v3479_v50  ;;  %v2754_v61 = vsel %vm2333_vm1, %v2612_v52, 0.0 }
 0x1ad   : > { %v2755_v62 = vadd.f32 %v2754_v61, %v2753_v56  ;;  %2284 = vst.msk [vmem:[%s4437_s23 + $0x13c] sm:$0xf] %vm2204_vm0, %v3543_v59 }
 0x1af   : > { %v1245_v63 = vpop.f32.mrb[32].mxu0  ;;  %v4612_v0 = vpop.f32.mrb[32].mxu1 }
 0x1b0   : > { %v3480_v1 = vpack.c.bf16 %v1245_v63, %v1245_v63  ;;  %v2365_v2 = vsel %vm2333_vm1, %v1245_v63, 0.0  ;;  %v2613_v4 = vmul.f32 %v1245_v63, %v1245_v63  ;;  %v1247_v5 = vpop.f32.mrb[33].mxu0  ;;  %v3544_v6 = vpack.c.bf16 %v4612_v0, %v4612_v0  ;;  %v1503_v7 = vpop.f32.mrb[33].mxu1 }
 0x1b1   : > { %v2366_v9 = vadd.f32 %v2365_v2, %v2364_v57  ;;  %v1248_v11 = vpop.f32.mrb[34].mxu0  ;;  %v4617_v12 = vpop.f32.mrb[34].mxu1 }
 0x1b2   : > { %2221 = vst.msk [vmem:[%s4437_s23 + $0x40] sm:$0xf] %vm2204_vm0, %v3480_v1  ;;  %v2756_v13 = vsel %vm2333_vm1, %v2613_v4, 0.0  ;;  %v3481_v14 = vpack.c.bf16 %v1248_v11, %v1248_v11  ;;  %v2367_v15 = vsel %vm2333_vm1, %v1248_v11, 0.0  ;;  %v2614_v16 = vmul.f32 %v1248_v11, %v1248_v11  ;;  %v1250_v17 = vpop.f32.mrb[35].mxu0  ;;  %v1506_v18 = vpop.f32.mrb[35].mxu1 }
 0x1b3   : > { %2285 = vst.msk [vmem:[%s4437_s23 + $0x140] sm:$0xf] %vm2204_vm0, %v3544_v6  ;;  %v2757_v21 = vadd.f32 %v2756_v13, %v2755_v62  ;;  %v2368_v22 = vadd.f32 %v2367_v15, %v2366_v9  ;;  %v3545_v23 = vpack.c.bf16 %v4617_v12, %v4617_v12 }
 0x1b4   : > { %2222 = vst.msk [vmem:[%s4437_s23 + $0x44] sm:$0xf] %vm2204_vm0, %v3481_v14  ;;  %v2758_v25 = vsel %vm2333_vm1, %v2614_v16, 0.0 }
 0x1b5   : > { %v2759_v26 = vadd.f32 %v2758_v25, %v2757_v21  ;;  %2286 = vst.msk [vmem:[%s4437_s23 + $0x144] sm:$0xf] %vm2204_vm0, %v3545_v23 }
 0x1b7   : > { %v1253_v27 = vpop.f32.mrb[36].mxu0  ;;  %v4632_v28 = vpop.f32.mrb[36].mxu1 }
 0x1b8   : > { %v3482_v29 = vpack.c.bf16 %v1253_v27, %v1253_v27  ;;  %v2369_v30 = vsel %vm2333_vm1, %v1253_v27, 0.0  ;;  %v2615_v31 = vmul.f32 %v1253_v27, %v1253_v27  ;;  %v1255_v33 = vpop.f32.mrb[37].mxu0  ;;  %v3546_v35 = vpack.c.bf16 %v4632_v28, %v4632_v28  ;;  %v1511_v38 = vpop.f32.mrb[37].mxu1 }
 0x1b9   : > { %v2370_v39 = vadd.f32 %v2369_v30, %v2368_v22  ;;  %v1256_v40 = vpop.f32.mrb[38].mxu0  ;;  %v4637_v41 = vpop.f32.mrb[38].mxu1 }
 0x1ba   : > { %2223 = vst.msk [vmem:[%s4437_s23 + $0x48] sm:$0xf] %vm2204_vm0, %v3482_v29  ;;  %v2760_v42 = vsel %vm2333_vm1, %v2615_v31, 0.0  ;;  %v3483_v43 = vpack.c.bf16 %v1256_v40, %v1256_v40  ;;  %v2371_v45 = vsel %vm2333_vm1, %v1256_v40, 0.0  ;;  %v2616_v46 = vmul.f32 %v1256_v40, %v1256_v40  ;;  %v1258_v49 = vpop.f32.mrb[39].mxu0  ;;  %v1514_v50 = vpop.f32.mrb[39].mxu1 }
 0x1bb   : > { %2287 = vst.msk [vmem:[%s4437_s23 + $0x148] sm:$0xf] %vm2204_vm0, %v3546_v35  ;;  %v2761_v51 = vadd.f32 %v2760_v42, %v2759_v26  ;;  %v2372_v52 = vadd.f32 %v2371_v45, %v2370_v39  ;;  %v3547_v53 = vpack.c.bf16 %v4637_v41, %v4637_v41 }
 0x1bc   : > { %2224 = vst.msk [vmem:[%s4437_s23 + $0x4c] sm:$0xf] %vm2204_vm0, %v3483_v43  ;;  %v2762_v55 = vsel %vm2333_vm1, %v2616_v46, 0.0 }
 0x1bd   : > { %v2763_v56 = vadd.f32 %v2762_v55, %v2761_v51  ;;  %2288 = vst.msk [vmem:[%s4437_s23 + $0x14c] sm:$0xf] %vm2204_vm0, %v3547_v53 }
 0x1bf   : > { %v1261_v57 = vpop.f32.mrb[40].mxu0  ;;  %v4652_v59 = vpop.f32.mrb[40].mxu1 }
 0x1c0   : > { %v3484_v61 = vpack.c.bf16 %v1261_v57, %v1261_v57  ;;  %v2373_v62 = vsel %vm2333_vm1, %v1261_v57, 0.0  ;;  %v2617_v63 = vmul.f32 %v1261_v57, %v1261_v57  ;;  %v1263_v1 = vpop.f32.mrb[41].mxu0  ;;  %v3548_v2 = vpack.c.bf16 %v4652_v59, %v4652_v59  ;;  %v1519_v4 = vpop.f32.mrb[41].mxu1 }
 0x1c1   : > { %v2374_v5 = vadd.f32 %v2373_v62, %v2372_v52  ;;  %v1264_v6 = vpop.f32.mrb[42].mxu0  ;;  %v4657_v7 = vpop.f32.mrb[42].mxu1 }
 0x1c2   : > { %2225 = vst.msk [vmem:[%s4437_s23 + $0x50] sm:$0xf] %vm2204_vm0, %v3484_v61  ;;  %v2764_v9 = vsel %vm2333_vm1, %v2617_v63, 0.0  ;;  %v3485_v11 = vpack.c.bf16 %v1264_v6, %v1264_v6  ;;  %v2375_v13 = vsel %vm2333_vm1, %v1264_v6, 0.0  ;;  %v2618_v14 = vmul.f32 %v1264_v6, %v1264_v6  ;;  %v1266_v15 = vpop.f32.mrb[43].mxu0  ;;  %v1522_v16 = vpop.f32.mrb[43].mxu1 }
 0x1c3   : > { %2289 = vst.msk [vmem:[%s4437_s23 + $0x150] sm:$0xf] %vm2204_vm0, %v3548_v2  ;;  %v2765_v17 = vadd.f32 %v2764_v9, %v2763_v56  ;;  %v2376_v18 = vadd.f32 %v2375_v13, %v2374_v5  ;;  %v3549_v21 = vpack.c.bf16 %v4657_v7, %v4657_v7 }
 0x1c4   : > { %2226 = vst.msk [vmem:[%s4437_s23 + $0x54] sm:$0xf] %vm2204_vm0, %v3485_v11  ;;  %v2766_v22 = vsel %vm2333_vm1, %v2618_v14, 0.0 }
 0x1c5   : > { %v2767_v23 = vadd.f32 %v2766_v22, %v2765_v17  ;;  %2290 = vst.msk [vmem:[%s4437_s23 + $0x154] sm:$0xf] %vm2204_vm0, %v3549_v21 }
 0x1c7   : > { %v1269_v25 = vpop.f32.mrb[44].mxu0  ;;  %v4672_v26 = vpop.f32.mrb[44].mxu1 }
 0x1c8   : > { %v3486_v27 = vpack.c.bf16 %v1269_v25, %v1269_v25  ;;  %v2377_v29 = vsel %vm2333_vm1, %v1269_v25, 0.0  ;;  %v2619_v30 = vmul.f32 %v1269_v25, %v1269_v25  ;;  %v1271_v31 = vpop.f32.mrb[45].mxu0  ;;  %v3550_v33 = vpack.c.bf16 %v4672_v26, %v4672_v26  ;;  %v1527_v35 = vpop.f32.mrb[45].mxu1 }
 0x1c9   : > { %v2378_v38 = vadd.f32 %v2377_v29, %v2376_v18  ;;  %v1272_v39 = vpop.f32.mrb[46].mxu0  ;;  %v4677_v40 = vpop.f32.mrb[46].mxu1 }
 0x1ca   : > { %2227 = vst.msk [vmem:[%s4437_s23 + $0x58] sm:$0xf] %vm2204_vm0, %v3486_v27  ;;  %v2768_v42 = vsel %vm2333_vm1, %v2619_v30, 0.0  ;;  %v3487_v43 = vpack.c.bf16 %v1272_v39, %v1272_v39  ;;  %v2379_v45 = vsel %vm2333_vm1, %v1272_v39, 0.0  ;;  %v2620_v46 = vmul.f32 %v1272_v39, %v1272_v39  ;;  %v1274_v49 = vpop.f32.mrb[47].mxu0  ;;  %v1530_v50 = vpop.f32.mrb[47].mxu1 }
 0x1cb   : > { %2291 = vst.msk [vmem:[%s4437_s23 + $0x158] sm:$0xf] %vm2204_vm0, %v3550_v33  ;;  %v2769_v51 = vadd.f32 %v2768_v42, %v2767_v23  ;;  %v2380_v52 = vadd.f32 %v2379_v45, %v2378_v38  ;;  %v3551_v53 = vpack.c.bf16 %v4677_v40, %v4677_v40 }
 0x1cc   : > { %2228 = vst.msk [vmem:[%s4437_s23 + $0x5c] sm:$0xf] %vm2204_vm0, %v3487_v43  ;;  %v2770_v55 = vsel %vm2333_vm1, %v2620_v46, 0.0 }
 0x1cd   : > { %v2771_v56 = vadd.f32 %v2770_v55, %v2769_v51  ;;  %2292 = vst.msk [vmem:[%s4437_s23 + $0x15c] sm:$0xf] %vm2204_vm0, %v3551_v53 }
 0x1cf   : > { %v1277_v57 = vpop.f32.mrb[48].mxu0  ;;  %v4692_v61 = vpop.f32.mrb[48].mxu1 }
 0x1d0   : > { %v3488_v62 = vpack.c.bf16 %v1277_v57, %v1277_v57  ;;  %v2381_v63 = vsel %vm2333_vm1, %v1277_v57, 0.0  ;;  %v2621_v1 = vmul.f32 %v1277_v57, %v1277_v57  ;;  %v1279_v2 = vpop.f32.mrb[49].mxu0  ;;  %v3552_v4 = vpack.c.bf16 %v4692_v61, %v4692_v61  ;;  %v1535_v5 = vpop.f32.mrb[49].mxu1 }
 0x1d1   : > { %v2382_v6 = vadd.f32 %v2381_v63, %v2380_v52  ;;  %v1280_v9 = vpop.f32.mrb[50].mxu0  ;;  %v4697_v11 = vpop.f32.mrb[50].mxu1 }
 0x1d2   : > { %2229 = vst.msk [vmem:[%s4437_s23 + $0x60] sm:$0xf] %vm2204_vm0, %v3488_v62  ;;  %v2772_v13 = vsel %vm2333_vm1, %v2621_v1, 0.0  ;;  %v3489_v14 = vpack.c.bf16 %v1280_v9, %v1280_v9  ;;  %v2383_v15 = vsel %vm2333_vm1, %v1280_v9, 0.0  ;;  %v2622_v16 = vmul.f32 %v1280_v9, %v1280_v9  ;;  %v1282_v17 = vpop.f32.mrb[51].mxu0  ;;  %v1538_v18 = vpop.f32.mrb[51].mxu1 }
 0x1d3   : > { %2293 = vst.msk [vmem:[%s4437_s23 + $0x160] sm:$0xf] %vm2204_vm0, %v3552_v4  ;;  %v2773_v21 = vadd.f32 %v2772_v13, %v2771_v56  ;;  %v2384_v22 = vadd.f32 %v2383_v15, %v2382_v6  ;;  %v3553_v23 = vpack.c.bf16 %v4697_v11, %v4697_v11 }
 0x1d4   : > { %2230 = vst.msk [vmem:[%s4437_s23 + $0x64] sm:$0xf] %vm2204_vm0, %v3489_v14  ;;  %v2774_v25 = vsel %vm2333_vm1, %v2622_v16, 0.0 }
 0x1d5   : > { %v2775_v27 = vadd.f32 %v2774_v25, %v2773_v21  ;;  %2294 = vst.msk [vmem:[%s4437_s23 + $0x164] sm:$0xf] %vm2204_vm0, %v3553_v23 }
 0x1d7   : > { %v1285_v29 = vpop.f32.mrb[52].mxu0  ;;  %v4712_v30 = vpop.f32.mrb[52].mxu1 }
 0x1d8   : > { %v3490_v31 = vpack.c.bf16 %v1285_v29, %v1285_v29  ;;  %v2385_v33 = vsel %vm2333_vm1, %v1285_v29, 0.0  ;;  %v2623_v35 = vmul.f32 %v1285_v29, %v1285_v29  ;;  %v1287_v38 = vpop.f32.mrb[53].mxu0  ;;  %v3554_v39 = vpack.c.bf16 %v4712_v30, %v4712_v30  ;;  %v1543_v42 = vpop.f32.mrb[53].mxu1 }
 0x1d9   : > { %v2386_v43 = vadd.f32 %v2385_v33, %v2384_v22  ;;  %v1288_v45 = vpop.f32.mrb[54].mxu0  ;;  %v4717_v46 = vpop.f32.mrb[54].mxu1 }
 0x1da   : > { %2231 = vst.msk [vmem:[%s4437_s23 + $0x68] sm:$0xf] %vm2204_vm0, %v3490_v31  ;;  %v2776_v49 = vsel %vm2333_vm1, %v2623_v35, 0.0  ;;  %v3491_v50 = vpack.c.bf16 %v1288_v45, %v1288_v45  ;;  %v2387_v51 = vsel %vm2333_vm1, %v1288_v45, 0.0  ;;  %v2624_v52 = vmul.f32 %v1288_v45, %v1288_v45  ;;  %v1290_v53 = vpop.f32.mrb[55].mxu0  ;;  %v1546_v55 = vpop.f32.mrb[55].mxu1 }
 0x1db   : > { %2295 = vst.msk [vmem:[%s4437_s23 + $0x168] sm:$0xf] %vm2204_vm0, %v3554_v39  ;;  %v2777_v56 = vadd.f32 %v2776_v49, %v2775_v27  ;;  %v2388_v57 = vadd.f32 %v2387_v51, %v2386_v43  ;;  %v3555_v62 = vpack.c.bf16 %v4717_v46, %v4717_v46 }
 0x1dc   : > { %2232 = vst.msk [vmem:[%s4437_s23 + $0x6c] sm:$0xf] %vm2204_vm0, %v3491_v50  ;;  %v2778_v63 = vsel %vm2333_vm1, %v2624_v52, 0.0 }
 0x1dd   : > { %v2779_v1 = vadd.f32 %v2778_v63, %v2777_v56  ;;  %2296 = vst.msk [vmem:[%s4437_s23 + $0x16c] sm:$0xf] %vm2204_vm0, %v3555_v62 }
 0x1df   : > { %v1293_v2 = vpop.f32.mrb[56].mxu0  ;;  %v4732_v4 = vpop.f32.mrb[56].mxu1 }
 0x1e0   : > { %v3492_v5 = vpack.c.bf16 %v1293_v2, %v1293_v2  ;;  %v2389_v6 = vsel %vm2333_vm1, %v1293_v2, 0.0  ;;  %v2625_v9 = vmul.f32 %v1293_v2, %v1293_v2  ;;  %v1295_v13 = vpop.f32.mrb[57].mxu0  ;;  %v3556_v14 = vpack.c.bf16 %v4732_v4, %v4732_v4  ;;  %v1551_v15 = vpop.f32.mrb[57].mxu1 }
 0x1e1   : > { %v2390_v16 = vadd.f32 %v2389_v6, %v2388_v57  ;;  %v1296_v17 = vpop.f32.mrb[58].mxu0  ;;  %v4737_v18 = vpop.f32.mrb[58].mxu1 }
 0x1e2   : > { %2233 = vst.msk [vmem:[%s4437_s23 + $0x70] sm:$0xf] %vm2204_vm0, %v3492_v5  ;;  %v2780_v21 = vsel %vm2333_vm1, %v2625_v9, 0.0  ;;  %v3493_v22 = vpack.c.bf16 %v1296_v17, %v1296_v17  ;;  %v2391_v23 = vsel %vm2333_vm1, %v1296_v17, 0.0  ;;  %v2626_v25 = vmul.f32 %v1296_v17, %v1296_v17  ;;  %v1298_v27 = vpop.f32.mrb[59].mxu0  ;;  %v1554_v29 = vpop.f32.mrb[59].mxu1 }
 0x1e3   : > { %2297 = vst.msk [vmem:[%s4437_s23 + $0x170] sm:$0xf] %vm2204_vm0, %v3556_v14  ;;  %v2781_v31 = vadd.f32 %v2780_v21, %v2779_v1  ;;  %v2392_v33 = vadd.f32 %v2391_v23, %v2390_v16  ;;  %v3557_v35 = vpack.c.bf16 %v4737_v18, %v4737_v18 }
 0x1e4   : > { %2234 = vst.msk [vmem:[%s4437_s23 + $0x74] sm:$0xf] %vm2204_vm0, %v3493_v22  ;;  %v2782_v38 = vsel %vm2333_vm1, %v2626_v25, 0.0 }
 0x1e5   : > { %v2783_v39 = vadd.f32 %v2782_v38, %v2781_v31  ;;  %2298 = vst.msk [vmem:[%s4437_s23 + $0x174] sm:$0xf] %vm2204_vm0, %v3557_v35 }
 0x1e7   : > { %v1301_v42 = vpop.f32.mrb[60].mxu0  ;;  %v4752_v43 = vpop.f32.mrb[60].mxu1 }
 0x1e8   : > { %v3494_v45 = vpack.c.bf16 %v1301_v42, %v1301_v42  ;;  %v2393_v49 = vsel %vm2333_vm1, %v1301_v42, 0.0  ;;  %v2627_v50 = vmul.f32 %v1301_v42, %v1301_v42  ;;  %v1303_v51 = vpop.f32.mrb[61].mxu0  ;;  %v3558_v52 = vpack.c.bf16 %v4752_v43, %v4752_v43  ;;  %v1559_v53 = vpop.f32.mrb[61].mxu1 }
 0x1e9   : > { %v2394_v55 = vadd.f32 %v2393_v49, %v2392_v33  ;;  %v1304_v56 = vpop.f32.mrb[62].mxu0  ;;  %v4757_v57 = vpop.f32.mrb[62].mxu1 }
 0x1ea   : > { %2235 = vst.msk [vmem:[%s4437_s23 + $0x78] sm:$0xf] %vm2204_vm0, %v3494_v45  ;;  %v2784_v62 = vsel %vm2333_vm1, %v2627_v50, 0.0  ;;  %v3495_v63 = vpack.c.bf16 %v1304_v56, %v1304_v56  ;;  %v2395_v1 = vsel %vm2333_vm1, %v1304_v56, 0.0  ;;  %v2628_v2 = vmul.f32 %v1304_v56, %v1304_v56  ;;  %v1306_v5 = vpop.f32.mrb[63].mxu0  ;;  %v1562_v6 = vpop.f32.mrb[63].mxu1 }
 0x1eb   : > { %2299 = vst.msk [vmem:[%s4437_s23 + $0x178] sm:$0xf] %vm2204_vm0, %v3558_v52  ;;  %v2785_v9 = vadd.f32 %v2784_v62, %v2783_v39  ;;  %v2396_v13 = vadd.f32 %v2395_v1, %v2394_v55  ;;  %v3559_v14 = vpack.c.bf16 %v4757_v57, %v4757_v57 }
 0x1ec   : > { %2236 = vst.msk [vmem:[%s4437_s23 + $0x7c] sm:$0xf] %vm2204_vm0, %v3495_v63  ;;  %v2786_v15 = vsel %vm2333_vm1, %v2628_v2, 0.0 }
 0x1ed   : > { %v2787_v16 = vadd.f32 %v2786_v15, %v2785_v9  ;;  %2300 = vst.msk [vmem:[%s4437_s23 + $0x17c] sm:$0xf] %vm2204_vm0, %v3559_v14 }
 0x1ef   : > { %v1309_v17 = vpop.f32.mrb[64].mxu0  ;;  %v4772_v21 = vpop.f32.mrb[64].mxu1 }
 0x1f0   : > { %v3496_v22 = vpack.c.bf16 %v1309_v17, %v1309_v17  ;;  %v2397_v23 = vsel %vm2333_vm1, %v1309_v17, 0.0  ;;  %v2629_v25 = vmul.f32 %v1309_v17, %v1309_v17  ;;  %v1311_v27 = vpop.f32.mrb[65].mxu0  ;;  %v3560_v29 = vpack.c.bf16 %v4772_v21, %v4772_v21  ;;  %v1567_v31 = vpop.f32.mrb[65].mxu1 }
 0x1f1   : > { %v2398_v33 = vadd.f32 %v2397_v23, %v2396_v13  ;;  %v1312_v35 = vpop.f32.mrb[66].mxu0  ;;  %v4777_v38 = vpop.f32.mrb[66].mxu1 }
 0x1f2   : > { %2237 = vst.msk [vmem:[%s4437_s23 + $0x80] sm:$0xf] %vm2204_vm0, %v3496_v22  ;;  %v2788_v39 = vsel %vm2333_vm1, %v2629_v25, 0.0  ;;  %v3497_v42 = vpack.c.bf16 %v1312_v35, %v1312_v35  ;;  %v2399_v45 = vsel %vm2333_vm1, %v1312_v35, 0.0  ;;  %v2630_v49 = vmul.f32 %v1312_v35, %v1312_v35  ;;  %v1314_v50 = vpop.f32.mrb[67].mxu0  ;;  %v1570_v51 = vpop.f32.mrb[67].mxu1 }
 0x1f3   : > { %2301 = vst.msk [vmem:[%s4437_s23 + $0x180] sm:$0xf] %vm2204_vm0, %v3560_v29  ;;  %v2789_v52 = vadd.f32 %v2788_v39, %v2787_v16  ;;  %v2400_v53 = vadd.f32 %v2399_v45, %v2398_v33  ;;  %v3561_v55 = vpack.c.bf16 %v4777_v38, %v4777_v38 }
 0x1f4   : > { %2238 = vst.msk [vmem:[%s4437_s23 + $0x84] sm:$0xf] %vm2204_vm0, %v3497_v42  ;;  %v2790_v56 = vsel %vm2333_vm1, %v2630_v49, 0.0 }
 0x1f5   : > { %v2791_v62 = vadd.f32 %v2790_v56, %v2789_v52  ;;  %2302 = vst.msk [vmem:[%s4437_s23 + $0x184] sm:$0xf] %vm2204_vm0, %v3561_v55 }
 0x1f7   : > { %v1317_v63 = vpop.f32.mrb[68].mxu0  ;;  %v4792_v1 = vpop.f32.mrb[68].mxu1 }
 0x1f8   : > { %v3498_v2 = vpack.c.bf16 %v1317_v63, %v1317_v63  ;;  %v2401_v5 = vsel %vm2333_vm1, %v1317_v63, 0.0  ;;  %v2631_v6 = vmul.f32 %v1317_v63, %v1317_v63  ;;  %v1319_v9 = vpop.f32.mrb[69].mxu0  ;;  %v3562_v13 = vpack.c.bf16 %v4792_v1, %v4792_v1  ;;  %v1575_v14 = vpop.f32.mrb[69].mxu1 }
 0x1f9   : > { %v2402_v15 = vadd.f32 %v2401_v5, %v2400_v53  ;;  %v1320_v16 = vpop.f32.mrb[70].mxu0  ;;  %v4797_v17 = vpop.f32.mrb[70].mxu1 }
 0x1fa   : > { %2239 = vst.msk [vmem:[%s4437_s23 + $0x88] sm:$0xf] %vm2204_vm0, %v3498_v2  ;;  %v2792_v22 = vsel %vm2333_vm1, %v2631_v6, 0.0  ;;  %v3499_v23 = vpack.c.bf16 %v1320_v16, %v1320_v16  ;;  %v2403_v25 = vsel %vm2333_vm1, %v1320_v16, 0.0  ;;  %v2632_v27 = vmul.f32 %v1320_v16, %v1320_v16  ;;  %v1322_v29 = vpop.f32.mrb[71].mxu0  ;;  %v1578_v31 = vpop.f32.mrb[71].mxu1 }
 0x1fb   : > { %2303 = vst.msk [vmem:[%s4437_s23 + $0x188] sm:$0xf] %vm2204_vm0, %v3562_v13  ;;  %v2793_v33 = vadd.f32 %v2792_v22, %v2791_v62  ;;  %v2404_v35 = vadd.f32 %v2403_v25, %v2402_v15  ;;  %v3563_v39 = vpack.c.bf16 %v4797_v17, %v4797_v17 }
 0x1fc   : > { %2240 = vst.msk [vmem:[%s4437_s23 + $0x8c] sm:$0xf] %vm2204_vm0, %v3499_v23  ;;  %v2794_v42 = vsel %vm2333_vm1, %v2632_v27, 0.0 }
 0x1fd   : > { %v2795_v45 = vadd.f32 %v2794_v42, %v2793_v33  ;;  %2304 = vst.msk [vmem:[%s4437_s23 + $0x18c] sm:$0xf] %vm2204_vm0, %v3563_v39 }
 0x1ff   : > { %v1325_v49 = vpop.f32.mrb[72].mxu0  ;;  %v4812_v50 = vpop.f32.mrb[72].mxu1 }
 0x200   : > { %v3500_v51 = vpack.c.bf16 %v1325_v49, %v1325_v49  ;;  %v2405_v52 = vsel %vm2333_vm1, %v1325_v49, 0.0  ;;  %v2633_v53 = vmul.f32 %v1325_v49, %v1325_v49  ;;  %v1327_v55 = vpop.f32.mrb[73].mxu0  ;;  %v3564_v56 = vpack.c.bf16 %v4812_v50, %v4812_v50  ;;  %v1583_v62 = vpop.f32.mrb[73].mxu1 }
 0x201   : > { %v2406_v63 = vadd.f32 %v2405_v52, %v2404_v35  ;;  %v1328_v2 = vpop.f32.mrb[74].mxu0  ;;  %v4817_v5 = vpop.f32.mrb[74].mxu1 }
 0x202   : > { %2241 = vst.msk [vmem:[%s4437_s23 + $0x90] sm:$0xf] %vm2204_vm0, %v3500_v51  ;;  %v2796_v6 = vsel %vm2333_vm1, %v2633_v53, 0.0  ;;  %v3501_v9 = vpack.c.bf16 %v1328_v2, %v1328_v2  ;;  %v2407_v13 = vsel %vm2333_vm1, %v1328_v2, 0.0  ;;  %v2634_v14 = vmul.f32 %v1328_v2, %v1328_v2  ;;  %v1330_v15 = vpop.f32.mrb[75].mxu0  ;;  %v1586_v16 = vpop.f32.mrb[75].mxu1 }
 0x203   : > { %2305 = vst.msk [vmem:[%s4437_s23 + $0x190] sm:$0xf] %vm2204_vm0, %v3564_v56  ;;  %v2797_v22 = vadd.f32 %v2796_v6, %v2795_v45  ;;  %v2408_v23 = vadd.f32 %v2407_v13, %v2406_v63  ;;  %v3565_v25 = vpack.c.bf16 %v4817_v5, %v4817_v5 }
 0x204   : > { %2242 = vst.msk [vmem:[%s4437_s23 + $0x94] sm:$0xf] %vm2204_vm0, %v3501_v9  ;;  %v2798_v27 = vsel %vm2333_vm1, %v2634_v14, 0.0 }
 0x205   : > { %v2799_v29 = vadd.f32 %v2798_v27, %v2797_v22  ;;  %2306 = vst.msk [vmem:[%s4437_s23 + $0x194] sm:$0xf] %vm2204_vm0, %v3565_v25 }
 0x207   : > { %v1333_v31 = vpop.f32.mrb[76].mxu0  ;;  %v4832_v33 = vpop.f32.mrb[76].mxu1 }
 0x208   : > { %v3502_v35 = vpack.c.bf16 %v1333_v31, %v1333_v31  ;;  %v2409_v39 = vsel %vm2333_vm1, %v1333_v31, 0.0  ;;  %v2635_v42 = vmul.f32 %v1333_v31, %v1333_v31  ;;  %v1335_v45 = vpop.f32.mrb[77].mxu0  ;;  %v3566_v49 = vpack.c.bf16 %v4832_v33, %v4832_v33  ;;  %v1591_v51 = vpop.f32.mrb[77].mxu1 }
 0x209   : > { %v2410_v52 = vadd.f32 %v2409_v39, %v2408_v23  ;;  %v1336_v53 = vpop.f32.mrb[78].mxu0  ;;  %v4837_v55 = vpop.f32.mrb[78].mxu1 }
 0x20a   : > { %2243 = vst.msk [vmem:[%s4437_s23 + $0x98] sm:$0xf] %vm2204_vm0, %v3502_v35  ;;  %v2800_v56 = vsel %vm2333_vm1, %v2635_v42, 0.0  ;;  %v3503_v62 = vpack.c.bf16 %v1336_v53, %v1336_v53  ;;  %v2411_v63 = vsel %vm2333_vm1, %v1336_v53, 0.0  ;;  %v2636_v2 = vmul.f32 %v1336_v53, %v1336_v53  ;;  %v1338_v6 = vpop.f32.mrb[79].mxu0  ;;  %v1594_v9 = vpop.f32.mrb[79].mxu1 }
 0x20b   : > { %2307 = vst.msk [vmem:[%s4437_s23 + $0x198] sm:$0xf] %vm2204_vm0, %v3566_v49  ;;  %v2801_v13 = vadd.f32 %v2800_v56, %v2799_v29  ;;  %v2412_v14 = vadd.f32 %v2411_v63, %v2410_v52  ;;  %v3567_v15 = vpack.c.bf16 %v4837_v55, %v4837_v55 }
 0x20c   : > { %2244 = vst.msk [vmem:[%s4437_s23 + $0x9c] sm:$0xf] %vm2204_vm0, %v3503_v62  ;;  %v2802_v16 = vsel %vm2333_vm1, %v2636_v2, 0.0 }
 0x20d   : > { %v2803_v22 = vadd.f32 %v2802_v16, %v2801_v13  ;;  %2308 = vst.msk [vmem:[%s4437_s23 + $0x19c] sm:$0xf] %vm2204_vm0, %v3567_v15 }
 0x20f   : > { %v1341_v23 = vpop.f32.mrb[80].mxu0  ;;  %v4852_v25 = vpop.f32.mrb[80].mxu1 }
 0x210   : > { %v3504_v27 = vpack.c.bf16 %v1341_v23, %v1341_v23  ;;  %v2413_v31 = vsel %vm2333_vm1, %v1341_v23, 0.0  ;;  %v2637_v29 = vmul.f32 %v1341_v23, %v1341_v23  ;;  %v1343_v35 = vpop.f32.mrb[81].mxu0  ;;  %v3568_v39 = vpack.c.bf16 %v4852_v25, %v4852_v25  ;;  %v1599_v42 = vpop.f32.mrb[81].mxu1 }
 0x211   : > { %v2414_v45 = vadd.f32 %v2413_v31, %v2412_v14  ;;  %v1344_v49 = vpop.f32.mrb[82].mxu0  ;;  %v4857_v51 = vpop.f32.mrb[82].mxu1 }
 0x212   : > { %2245 = vst.msk [vmem:[%s4437_s23 + $0xa0] sm:$0xf] %vm2204_vm0, %v3504_v27  ;;  %v2804_v52 = vsel %vm2333_vm1, %v2637_v29, 0.0  ;;  %v3505_v53 = vpack.c.bf16 %v1344_v49, %v1344_v49  ;;  %v2415_v56 = vsel %vm2333_vm1, %v1344_v49, 0.0  ;;  %v2638_v62 = vmul.f32 %v1344_v49, %v1344_v49  ;;  %v1346_v63 = vpop.f32.mrb[83].mxu0  ;;  %v1602_v2 = vpop.f32.mrb[83].mxu1 }
 0x213   : > { %2309 = vst.msk [vmem:[%s4437_s23 + $0x1a0] sm:$0xf] %vm2204_vm0, %v3568_v39  ;;  %v2805_v6 = vadd.f32 %v2804_v52, %v2803_v22  ;;  %v2416_v9 = vadd.f32 %v2415_v56, %v2414_v45  ;;  %v3569_v13 = vpack.c.bf16 %v4857_v51, %v4857_v51 }
 0x214   : > { %2246 = vst.msk [vmem:[%s4437_s23 + $0xa4] sm:$0xf] %vm2204_vm0, %v3505_v53  ;;  %v2806_v14 = vsel %vm2333_vm1, %v2638_v62, 0.0 }
 0x215   : > { %v2807_v15 = vadd.f32 %v2806_v14, %v2805_v6  ;;  %2310 = vst.msk [vmem:[%s4437_s23 + $0x1a4] sm:$0xf] %vm2204_vm0, %v3569_v13 }
 0x217   : > { %v1349_v16 = vpop.f32.mrb[84].mxu0  ;;  %v4872_v23 = vpop.f32.mrb[84].mxu1 }
 0x218   : > { %v3506_v27 = vpack.c.bf16 %v1349_v16, %v1349_v16  ;;  %v2417_v31 = vsel %vm2333_vm1, %v1349_v16, 0.0  ;;  %v2639_v22 = vmul.f32 %v1349_v16, %v1349_v16  ;;  %v1351_v29 = vpop.f32.mrb[85].mxu0  ;;  %v3570_v35 = vpack.c.bf16 %v4872_v23, %v4872_v23  ;;  %v1607_v39 = vpop.f32.mrb[85].mxu1 }
 0x219   : > { %v2418_v42 = vadd.f32 %v2417_v31, %v2416_v9  ;;  %v1352_v45 = vpop.f32.mrb[86].mxu0  ;;  %v4877_v49 = vpop.f32.mrb[86].mxu1 }
 0x21a   : > { %2247 = vst.msk [vmem:[%s4437_s23 + $0xa8] sm:$0xf] %vm2204_vm0, %v3506_v27  ;;  %v2808_v52 = vsel %vm2333_vm1, %v2639_v22, 0.0  ;;  %v3507_v53 = vpack.c.bf16 %v1352_v45, %v1352_v45  ;;  %v2419_v56 = vsel %vm2333_vm1, %v1352_v45, 0.0  ;;  %v2640_v62 = vmul.f32 %v1352_v45, %v1352_v45  ;;  %v1354_v63 = vpop.f32.mrb[87].mxu0  ;;  %v1610_v2 = vpop.f32.mrb[87].mxu1 }
 0x21b   : > { %2311 = vst.msk [vmem:[%s4437_s23 + $0x1a8] sm:$0xf] %vm2204_vm0, %v3570_v35  ;;  %v2809_v6 = vadd.f32 %v2808_v52, %v2807_v15  ;;  %v2420_v13 = vadd.f32 %v2419_v56, %v2418_v42  ;;  %v3571_v9 = vpack.c.bf16 %v4877_v49, %v4877_v49 }
 0x21c   : > { %2248 = vst.msk [vmem:[%s4437_s23 + $0xac] sm:$0xf] %vm2204_vm0, %v3507_v53  ;;  %v2810_v14 = vsel %vm2333_vm1, %v2640_v62, 0.0 }
 0x21d   : > { %v2811_v16 = vadd.f32 %v2810_v14, %v2809_v6  ;;  %2312 = vst.msk [vmem:[%s4437_s23 + $0x1ac] sm:$0xf] %vm2204_vm0, %v3571_v9 }
 0x21f   : > { %v1357_v27 = vpop.f32.mrb[88].mxu0  ;;  %v4892_v31 = vpop.f32.mrb[88].mxu1 }
 0x220   : > { %v3508_v22 = vpack.c.bf16 %v1357_v27, %v1357_v27  ;;  %v2421_v29 = vsel %vm2333_vm1, %v1357_v27, 0.0  ;;  %v2641_v15 = vmul.f32 %v1357_v27, %v1357_v27  ;;  %v1359_v35 = vpop.f32.mrb[89].mxu0  ;;  %v3572_v39 = vpack.c.bf16 %v4892_v31, %v4892_v31  ;;  %v1615_v42 = vpop.f32.mrb[89].mxu1 }
 0x221   : > { %v2422_v45 = vadd.f32 %v2421_v29, %v2420_v13  ;;  %v1360_v52 = vpop.f32.mrb[90].mxu0  ;;  %v4897_v53 = vpop.f32.mrb[90].mxu1 }
 0x222   : > { %2249 = vst.msk [vmem:[%s4437_s23 + $0xb0] sm:$0xf] %vm2204_vm0, %v3508_v22  ;;  %v2812_v56 = vsel %vm2333_vm1, %v2641_v15, 0.0  ;;  %v3509_v62 = vpack.c.bf16 %v1360_v52, %v1360_v52  ;;  %v2423_v63 = vsel %vm2333_vm1, %v1360_v52, 0.0  ;;  %v2642_v2 = vmul.f32 %v1360_v52, %v1360_v52  ;;  %v1362_v6 = vpop.f32.mrb[91].mxu0  ;;  %v1618_v9 = vpop.f32.mrb[91].mxu1 }
 0x223   : > { %2313 = vst.msk [vmem:[%s4437_s23 + $0x1b0] sm:$0xf] %vm2204_vm0, %v3572_v39  ;;  %v2813_v14 = vadd.f32 %v2812_v56, %v2811_v16  ;;  %v2424_v27 = vadd.f32 %v2423_v63, %v2422_v45  ;;  %v3573_v13 = vpack.c.bf16 %v4897_v53, %v4897_v53 }
 0x224   : > { %2250 = vst.msk [vmem:[%s4437_s23 + $0xb4] sm:$0xf] %vm2204_vm0, %v3509_v62  ;;  %v2814_v22 = vsel %vm2333_vm1, %v2642_v2, 0.0 }
 0x225   : > { %v2815_v29 = vadd.f32 %v2814_v22, %v2813_v14  ;;  %2314 = vst.msk [vmem:[%s4437_s23 + $0x1b4] sm:$0xf] %vm2204_vm0, %v3573_v13 }
 0x227   : > { %v1365_v15 = vpop.f32.mrb[92].mxu0  ;;  %v4912_v35 = vpop.f32.mrb[92].mxu1 }
 0x228   : > { %5588 = vst [vmem:[#allocation15_spill] sm:$0xff] %v4912_v35  ;;  %v3510_v42 = vpack.c.bf16 %v1365_v15, %v1365_v15  ;;  %v2425_v39 = vsel %vm2333_vm1, %v1365_v15, 0.0  ;;  %v2643_v16 = vmul.f32 %v1365_v15, %v1365_v15  ;;  %v1367_v45 = vpop.f32.mrb[93].mxu0  ;;  %v3574_v52 = vpack.c.bf16 %v4912_v35, %v4912_v35  ;;  %v1623_v56 = vpop.f32.mrb[93].mxu1 }
 0x229   : > { %v2426_v62 = vadd.f32 %v2425_v39, %v2424_v27  ;;  %v1368_v63 = vpop.f32.mrb[94].mxu0  ;;  %v4917_v2 = vpop.f32.mrb[94].mxu1 }
 0x22a   : > { %5589 = vst [vmem:[#allocation16_spill] sm:$0xff] %v4917_v2  ;;  %2251 = vst.msk [vmem:[%s4437_s23 + $0xb8] sm:$0xf] %vm2204_vm0, %v3510_v42  ;;  %v2816_v6 = vsel %vm2333_vm1, %v2643_v16, 0.0  ;;  %v3511_v9 = vpack.c.bf16 %v1368_v63, %v1368_v63  ;;  %v2427_v14 = vsel %vm2333_vm1, %v1368_v63, 0.0  ;;  %v2644_v13 = vmul.f32 %v1368_v63, %v1368_v63  ;;  %v1370_v22 = vpop.f32.mrb[95].mxu0 }
 0x22b   : > { %2315 = vst.msk [vmem:[%s4437_s23 + $0x1b8] sm:$0xf] %vm2204_vm0, %v3574_v52  ;;  %v1626_v15 = vpop.f32.mrb[95].mxu1  ;;  %v2817_v45 = vadd.f32 %v2816_v6, %v2815_v29  ;;  %v2428_v35 = vadd.f32 %v2427_v14, %v2426_v62  ;;  %v3575_v27 = vpack.c.bf16 %v4917_v2, %v4917_v2 }
 0x22c   : > { %2252 = vst.msk [vmem:[%s4437_s23 + $0xbc] sm:$0xf] %vm2204_vm0, %v3511_v9  ;;  %v2818_v42 = vsel %vm2333_vm1, %v2644_v13, 0.0 }
 0x22d   : > { %v2819_v39 = vadd.f32 %v2818_v42, %v2817_v45  ;;  %2316 = vst.msk [vmem:[%s4437_s23 + $0x1bc] sm:$0xf] %vm2204_vm0, %v3575_v27 }
 0x22f   : > { %v1373_v16 = vpop.f32.mrb[96].mxu0  ;;  %v4932_v56 = vpop.f32.mrb[96].mxu1 }
 0x230   : > { %5590 = vst [vmem:[#allocation17_spill] sm:$0xff] %v4932_v56  ;;  %v3512_v63 = vpack.c.bf16 %v1373_v16, %v1373_v16  ;;  %v2429_v52 = vsel %vm2333_vm1, %v1373_v16, 0.0  ;;  %v2645_v29 = vmul.f32 %v1373_v16, %v1373_v16  ;;  %v1375_v62 = vpop.f32.mrb[97].mxu0  ;;  %v3576_v6 = vpack.c.bf16 %v4932_v56, %v4932_v56  ;;  %v1631_v14 = vpop.f32.mrb[97].mxu1 }
 0x231   : > { %v2430_v9 = vadd.f32 %v2429_v52, %v2428_v35  ;;  %v1376_v22 = vpop.f32.mrb[98].mxu0  ;;  %v4937_v13 = vpop.f32.mrb[98].mxu1 }
 0x232   : > { %5591 = vst [vmem:[#allocation18_spill] sm:$0xff] %v4937_v13  ;;  %2253 = vst.msk [vmem:[%s4437_s23 + $0xc0] sm:$0xf] %vm2204_vm0, %v3512_v63  ;;  %v2820_v15 = vsel %vm2333_vm1, %v2645_v29, 0.0  ;;  %v3513_v45 = vpack.c.bf16 %v1376_v22, %v1376_v22  ;;  %v2431_v27 = vsel %vm2333_vm1, %v1376_v22, 0.0  ;;  %v2646_v42 = vmul.f32 %v1376_v22, %v1376_v22  ;;  %v1378_v16 = vpop.f32.mrb[99].mxu0 }
 0x233   : > { %2317 = vst.msk [vmem:[%s4437_s23 + $0x1c0] sm:$0xf] %vm2204_vm0, %v3576_v6  ;;  %v1634_v62 = vpop.f32.mrb[99].mxu1  ;;  %v2821_v56 = vadd.f32 %v2820_v15, %v2819_v39  ;;  %v2432_v2 = vadd.f32 %v2431_v27, %v2430_v9  ;;  %v3577_v35 = vpack.c.bf16 %v4937_v13, %v4937_v13 }
 0x234   : > { %2254 = vst.msk [vmem:[%s4437_s23 + $0xc4] sm:$0xf] %vm2204_vm0, %v3513_v45  ;;  %v2822_v63 = vsel %vm2333_vm1, %v2646_v42, 0.0 }
 0x235   : > { %v2823_v52 = vadd.f32 %v2822_v63, %v2821_v56  ;;  %2318 = vst.msk [vmem:[%s4437_s23 + $0x1c4] sm:$0xf] %vm2204_vm0, %v3577_v35 }
 0x237   : > { %v1381_v29 = vpop.f32.mrb[100].mxu0  ;;  %v4952_v14 = vpop.f32.mrb[100].mxu1 }
 0x238   : > { %5592 = vst [vmem:[#allocation19_spill] sm:$0xff] %v4952_v14  ;;  %v3514_v22 = vpack.c.bf16 %v1381_v29, %v1381_v29  ;;  %v2433_v6 = vsel %vm2333_vm1, %v1381_v29, 0.0  ;;  %v2647_v39 = vmul.f32 %v1381_v29, %v1381_v29  ;;  %v1383_v9 = vpop.f32.mrb[101].mxu0  ;;  %v3578_v15 = vpack.c.bf16 %v4952_v14, %v4952_v14  ;;  %v1639_v27 = vpop.f32.mrb[101].mxu1 }
 0x239   : > { %v2434_v45 = vadd.f32 %v2433_v6, %v2432_v2  ;;  %v1384_v16 = vpop.f32.mrb[102].mxu0  ;;  %v4957_v56 = vpop.f32.mrb[102].mxu1 }
 0x23a   : > { %5593 = vst [vmem:[#allocation20_spill] sm:$0xff] %v4957_v56  ;;  %2255 = vst.msk [vmem:[%s4437_s23 + $0xc8] sm:$0xf] %vm2204_vm0, %v3514_v22  ;;  %v2824_v42 = vsel %vm2333_vm1, %v2647_v39, 0.0  ;;  %v3515_v62 = vpack.c.bf16 %v1384_v16, %v1384_v16  ;;  %v2435_v35 = vsel %vm2333_vm1, %v1384_v16, 0.0  ;;  %v2648_v63 = vmul.f32 %v1384_v16, %v1384_v16  ;;  %v1386_v29 = vpop.f32.mrb[103].mxu0 }
 0x23b   : > { %2319 = vst.msk [vmem:[%s4437_s23 + $0x1c8] sm:$0xf] %vm2204_vm0, %v3578_v15  ;;  %v1642_v9 = vpop.f32.mrb[103].mxu1  ;;  %v2825_v14 = vadd.f32 %v2824_v42, %v2823_v52  ;;  %v2436_v13 = vadd.f32 %v2435_v35, %v2434_v45  ;;  %v3579_v2 = vpack.c.bf16 %v4957_v56, %v4957_v56 }
 0x23c   : > { %2256 = vst.msk [vmem:[%s4437_s23 + $0xcc] sm:$0xf] %vm2204_vm0, %v3515_v62  ;;  %v2826_v22 = vsel %vm2333_vm1, %v2648_v63, 0.0 }
 0x23d   : > { %v2827_v6 = vadd.f32 %v2826_v22, %v2825_v14  ;;  %2320 = vst.msk [vmem:[%s4437_s23 + $0x1cc] sm:$0xf] %vm2204_vm0, %v3579_v2 }
 0x23f   : > { %v1389_v39 = vpop.f32.mrb[104].mxu0  ;;  %v4972_v27 = vpop.f32.mrb[104].mxu1 }
 0x240   : > { %5594 = vst [vmem:[#allocation21_spill] sm:$0xff] %v4972_v27  ;;  %v3516_v16 = vpack.c.bf16 %v1389_v39, %v1389_v39  ;;  %v2437_v15 = vsel %vm2333_vm1, %v1389_v39, 0.0  ;;  %v2649_v52 = vmul.f32 %v1389_v39, %v1389_v39  ;;  %v1391_v45 = vpop.f32.mrb[105].mxu0  ;;  %v3580_v42 = vpack.c.bf16 %v4972_v27, %v4972_v27  ;;  %v1647_v35 = vpop.f32.mrb[105].mxu1 }
 0x241   : > { %v2438_v62 = vadd.f32 %v2437_v15, %v2436_v13  ;;  %v1392_v29 = vpop.f32.mrb[106].mxu0  ;;  %v4977_v14 = vpop.f32.mrb[106].mxu1 }
 0x242   : > { %5595 = vst [vmem:[#allocation22_spill] sm:$0xff] %v4977_v14  ;;  %2257 = vst.msk [vmem:[%s4437_s23 + $0xd0] sm:$0xf] %vm2204_vm0, %v3516_v16  ;;  %v2828_v63 = vsel %vm2333_vm1, %v2649_v52, 0.0  ;;  %v3517_v9 = vpack.c.bf16 %v1392_v29, %v1392_v29  ;;  %v2439_v2 = vsel %vm2333_vm1, %v1392_v29, 0.0  ;;  %v2650_v22 = vmul.f32 %v1392_v29, %v1392_v29  ;;  %v1394_v39 = vpop.f32.mrb[107].mxu0 }
 0x243   : > { %2321 = vst.msk [vmem:[%s4437_s23 + $0x1d0] sm:$0xf] %vm2204_vm0, %v3580_v42  ;;  %v1650_v45 = vpop.f32.mrb[107].mxu1  ;;  %v2829_v27 = vadd.f32 %v2828_v63, %v2827_v6  ;;  %v2440_v56 = vadd.f32 %v2439_v2, %v2438_v62  ;;  %v3581_v13 = vpack.c.bf16 %v4977_v14, %v4977_v14 }
 0x244   : > { %2258 = vst.msk [vmem:[%s4437_s23 + $0xd4] sm:$0xf] %vm2204_vm0, %v3517_v9  ;;  %v2830_v16 = vsel %vm2333_vm1, %v2650_v22, 0.0 }
 0x245   : > { %v2831_v15 = vadd.f32 %v2830_v16, %v2829_v27  ;;  %2322 = vst.msk [vmem:[%s4437_s23 + $0x1d4] sm:$0xf] %vm2204_vm0, %v3581_v13 }
 0x247   : > { %v1397_v52 = vpop.f32.mrb[108].mxu0  ;;  %v4992_v35 = vpop.f32.mrb[108].mxu1 }
 0x248   : > { %5596 = vst [vmem:[#allocation23_spill] sm:$0xff] %v4992_v35  ;;  %v3518_v29 = vpack.c.bf16 %v1397_v52, %v1397_v52  ;;  %v2441_v42 = vsel %vm2333_vm1, %v1397_v52, 0.0  ;;  %v2651_v6 = vmul.f32 %v1397_v52, %v1397_v52  ;;  %v1399_v62 = vpop.f32.mrb[109].mxu0  ;;  %v3582_v63 = vpack.c.bf16 %v4992_v35, %v4992_v35  ;;  %v1655_v2 = vpop.f32.mrb[109].mxu1 }
 0x249   : > { %v2442_v9 = vadd.f32 %v2441_v42, %v2440_v56  ;;  %v1400_v39 = vpop.f32.mrb[110].mxu0  ;;  %v4997_v27 = vpop.f32.mrb[110].mxu1 }
 0x24a   : > { %5597 = vst [vmem:[#allocation24_spill] sm:$0xff] %v4997_v27  ;;  %2259 = vst.msk [vmem:[%s4437_s23 + $0xd8] sm:$0xf] %vm2204_vm0, %v3518_v29  ;;  %v2832_v22 = vsel %vm2333_vm1, %v2651_v6, 0.0  ;;  %v3519_v45 = vpack.c.bf16 %v1400_v39, %v1400_v39  ;;  %v2443_v13 = vsel %vm2333_vm1, %v1400_v39, 0.0  ;;  %v2652_v16 = vmul.f32 %v1400_v39, %v1400_v39  ;;  %v1402_v52 = vpop.f32.mrb[111].mxu0 }
 0x24b   : > { %2323 = vst.msk [vmem:[%s4437_s23 + $0x1d8] sm:$0xf] %vm2204_vm0, %v3582_v63  ;;  %v1658_v62 = vpop.f32.mrb[111].mxu1  ;;  %v2833_v35 = vadd.f32 %v2832_v22, %v2831_v15  ;;  %v2444_v14 = vadd.f32 %v2443_v13, %v2442_v9  ;;  %v3583_v56 = vpack.c.bf16 %v4997_v27, %v4997_v27 }
 0x24c   : > { %2260 = vst.msk [vmem:[%s4437_s23 + $0xdc] sm:$0xf] %vm2204_vm0, %v3519_v45  ;;  %v2834_v29 = vsel %vm2333_vm1, %v2652_v16, 0.0 }
 0x24d   : > { %v2835_v42 = vadd.f32 %v2834_v29, %v2833_v35  ;;  %2324 = vst.msk [vmem:[%s4437_s23 + $0x1dc] sm:$0xf] %vm2204_vm0, %v3583_v56 }
 0x24f   : > { %v1405_v6 = vpop.f32.mrb[112].mxu0  ;;  %v5012_v2 = vpop.f32.mrb[112].mxu1 }
 0x250   : > { %5598 = vst [vmem:[#allocation25_spill] sm:$0xff] %v5012_v2  ;;  %v3520_v39 = vpack.c.bf16 %v1405_v6, %v1405_v6  ;;  %v2445_v63 = vsel %vm2333_vm1, %v1405_v6, 0.0  ;;  %v2653_v15 = vmul.f32 %v1405_v6, %v1405_v6  ;;  %v1407_v9 = vpop.f32.mrb[113].mxu0  ;;  %v3584_v22 = vpack.c.bf16 %v5012_v2, %v5012_v2  ;;  %v1663_v13 = vpop.f32.mrb[113].mxu1 }
 0x251   : > { %v2446_v45 = vadd.f32 %v2445_v63, %v2444_v14  ;;  %v1408_v52 = vpop.f32.mrb[114].mxu0  ;;  %v5017_v35 = vpop.f32.mrb[114].mxu1 }
 0x252   : > { %5599 = vst [vmem:[#allocation26_spill] sm:$0xff] %v5017_v35  ;;  %2261 = vst.msk [vmem:[%s4437_s23 + $0xe0] sm:$0xf] %vm2204_vm0, %v3520_v39  ;;  %v2836_v16 = vsel %vm2333_vm1, %v2653_v15, 0.0  ;;  %v3521_v62 = vpack.c.bf16 %v1408_v52, %v1408_v52  ;;  %v2447_v56 = vsel %vm2333_vm1, %v1408_v52, 0.0  ;;  %v2654_v29 = vmul.f32 %v1408_v52, %v1408_v52  ;;  %v1410_v6 = vpop.f32.mrb[115].mxu0 }
 0x253   : > { %2325 = vst.msk [vmem:[%s4437_s23 + $0x1e0] sm:$0xf] %vm2204_vm0, %v3584_v22  ;;  %v1666_v9 = vpop.f32.mrb[115].mxu1  ;;  %v2837_v2 = vadd.f32 %v2836_v16, %v2835_v42  ;;  %v2448_v27 = vadd.f32 %v2447_v56, %v2446_v45  ;;  %v3585_v14 = vpack.c.bf16 %v5017_v35, %v5017_v35 }
 0x254   : > { %2262 = vst.msk [vmem:[%s4437_s23 + $0xe4] sm:$0xf] %vm2204_vm0, %v3521_v62  ;;  %v2838_v39 = vsel %vm2333_vm1, %v2654_v29, 0.0 }
 0x255   : > { %v2839_v63 = vadd.f32 %v2838_v39, %v2837_v2  ;;  %2326 = vst.msk [vmem:[%s4437_s23 + $0x1e4] sm:$0xf] %vm2204_vm0, %v3585_v14 }
 0x257   : > { %v1413_v15 = vpop.f32.mrb[116].mxu0  ;;  %v5032_v13 = vpop.f32.mrb[116].mxu1 }
 0x258   : > { %5600 = vst [vmem:[#allocation27_spill] sm:$0xff] %v5032_v13  ;;  %v3522_v52 = vpack.c.bf16 %v1413_v15, %v1413_v15  ;;  %v2449_v22 = vsel %vm2333_vm1, %v1413_v15, 0.0  ;;  %v2655_v42 = vmul.f32 %v1413_v15, %v1413_v15  ;;  %v1415_v45 = vpop.f32.mrb[117].mxu0  ;;  %v3586_v16 = vpack.c.bf16 %v5032_v13, %v5032_v13  ;;  %v1671_v56 = vpop.f32.mrb[117].mxu1 }
 0x259   : > { %v2450_v62 = vadd.f32 %v2449_v22, %v2448_v27  ;;  %v1416_v6 = vpop.f32.mrb[118].mxu0  ;;  %v5037_v2 = vpop.f32.mrb[118].mxu1 }
 0x25a   : > { %5601 = vst [vmem:[#allocation28_spill] sm:$0xff] %v5037_v2  ;;  %2263 = vst.msk [vmem:[%s4437_s23 + $0xe8] sm:$0xf] %vm2204_vm0, %v3522_v52  ;;  %v2840_v29 = vsel %vm2333_vm1, %v2655_v42, 0.0  ;;  %v3523_v9 = vpack.c.bf16 %v1416_v6, %v1416_v6  ;;  %v2451_v14 = vsel %vm2333_vm1, %v1416_v6, 0.0  ;;  %v2656_v39 = vmul.f32 %v1416_v6, %v1416_v6  ;;  %v1418_v15 = vpop.f32.mrb[119].mxu0 }
 0x25b   : > { %2327 = vst.msk [vmem:[%s4437_s23 + $0x1e8] sm:$0xf] %vm2204_vm0, %v3586_v16  ;;  %v1674_v45 = vpop.f32.mrb[119].mxu1  ;;  %v2841_v13 = vadd.f32 %v2840_v29, %v2839_v63  ;;  %v2452_v35 = vadd.f32 %v2451_v14, %v2450_v62  ;;  %v3587_v27 = vpack.c.bf16 %v5037_v2, %v5037_v2 }
 0x25c   : > { %2264 = vst.msk [vmem:[%s4437_s23 + $0xec] sm:$0xf] %vm2204_vm0, %v3523_v9  ;;  %v2842_v52 = vsel %vm2333_vm1, %v2656_v39, 0.0 }
 0x25d   : > { %v2843_v22 = vadd.f32 %v2842_v52, %v2841_v13  ;;  %2328 = vst.msk [vmem:[%s4437_s23 + $0x1ec] sm:$0xf] %vm2204_vm0, %v3587_v27 }
 0x25f   : > { %v1421_v42 = vpop.f32.mrb[120].mxu0  ;;  %v5052_v56 = vpop.f32.mrb[120].mxu1 }
 0x260   : > { %5602 = vst [vmem:[#allocation29_spill] sm:$0xff] %v5052_v56  ;;  %v3524_v6 = vpack.c.bf16 %v1421_v42, %v1421_v42  ;;  %v2453_v16 = vsel %vm2333_vm1, %v1421_v42, 0.0  ;;  %v2657_v63 = vmul.f32 %v1421_v42, %v1421_v42  ;;  %v1423_v62 = vpop.f32.mrb[121].mxu0  ;;  %v3588_v29 = vpack.c.bf16 %v5052_v56, %v5052_v56  ;;  %v1679_v14 = vpop.f32.mrb[121].mxu1 }
 0x261   : > { %v2454_v9 = vadd.f32 %v2453_v16, %v2452_v35  ;;  %v1424_v15 = vpop.f32.mrb[122].mxu0  ;;  %v5057_v13 = vpop.f32.mrb[122].mxu1 }
 0x262   : > { %5603 = vst [vmem:[#allocation30_spill] sm:$0xff] %v5057_v13  ;;  %2265 = vst.msk [vmem:[%s4437_s23 + $0xf0] sm:$0xf] %vm2204_vm0, %v3524_v6  ;;  %v2844_v39 = vsel %vm2333_vm1, %v2657_v63, 0.0  ;;  %v3525_v45 = vpack.c.bf16 %v1424_v15, %v1424_v15  ;;  %v2455_v27 = vsel %vm2333_vm1, %v1424_v15, 0.0  ;;  %v2658_v52 = vmul.f32 %v1424_v15, %v1424_v15  ;;  %v1426_v42 = vpop.f32.mrb[123].mxu0 }
 0x263   : > { %2329 = vst.msk [vmem:[%s4437_s23 + $0x1f0] sm:$0xf] %vm2204_vm0, %v3588_v29  ;;  %v1682_v62 = vpop.f32.mrb[123].mxu1  ;;  %v2845_v56 = vadd.f32 %v2844_v39, %v2843_v22  ;;  %v2456_v2 = vadd.f32 %v2455_v27, %v2454_v9  ;;  %v3589_v35 = vpack.c.bf16 %v5057_v13, %v5057_v13 }
 0x264   : > { %2266 = vst.msk [vmem:[%s4437_s23 + $0xf4] sm:$0xf] %vm2204_vm0, %v3525_v45  ;;  %v2846_v6 = vsel %vm2333_vm1, %v2658_v52, 0.0  ;;  %v2661_v45 = vmul.f32 %v4429_v34, %v4429_v34 }
 0x265   : > { %v2847_v16 = vadd.f32 %v2846_v6, %v2845_v56  ;;  %2330 = vst.msk [vmem:[%s4437_s23 + $0x1f4] sm:$0xf] %vm2204_vm0, %v3589_v35 }
 0x267   : > { %v1429_v63 = vpop.f32.mrb[124].mxu0  ;;  %v5072_v14 = vpop.f32.mrb[124].mxu1 }
 0x268   : > { %5604 = vst [vmem:[#allocation31_spill] sm:$0xff] %v5072_v14  ;;  %v3526_v15 = vpack.c.bf16 %v1429_v63, %v1429_v63  ;;  %v2457_v29 = vsel %vm2333_vm1, %v1429_v63, 0.0  ;;  %v2659_v22 = vmul.f32 %v1429_v63, %v1429_v63  ;;  %v1431_v9 = vpop.f32.mrb[125].mxu0  ;;  %v3590_v39 = vpack.c.bf16 %v5072_v14, %v5072_v14  ;;  %v1687_v27 = vpop.f32.mrb[125].mxu1 }
 0x269   : > { %v2458_v52 = vadd.f32 %v2457_v29, %v2456_v2  ;;  %v1432_v56 = vpop.f32.mrb[126].mxu0  ;;  %v5079_v42 = vpop.f32.mrb[126].mxu1  ;;  %v2461_v29 = vsel %vm2333_vm1, %v4429_v34, 0.0 }
 0x26a   : > { %2267 = vst.msk [vmem:[%s4437_s23 + $0xf8] sm:$0xf] %vm2204_vm0, %v3526_v15  ;;  %v2848_v62 = vsel %vm2333_vm1, %v2659_v22, 0.0  ;;  %v3527_v35 = vpack.c.bf16 %v1432_v56, %v1432_v56  ;;  %v2459_v6 = vsel %vm2333_vm1, %v1432_v56, 0.0  ;;  %v2660_v63 = vmul.f32 %v1432_v56, %v1432_v56  ;;  %v1434_v9 = vpop.f32.mrb[127].mxu0  ;;  %v1690_v27 = vpop.f32.mrb[127].mxu1 }
 0x26b   : > { %2331 = vst.msk [vmem:[%s4437_s23 + $0x1f8] sm:$0xf] %vm2204_vm0, %v3590_v39  ;;  %v2849_v14 = vadd.f32 %v2848_v62, %v2847_v16  ;;  %v2460_v13 = vadd.f32 %v2459_v6, %v2458_v52  ;;  %v3591_v2 = vpack.c.bf16 %v5079_v42, %v5079_v42  ;;  %v2662_v15 = vmul.f32 %v4435_v44, %v4435_v44 }
 0x26c   : > { %2268 = vst.msk [vmem:[%s4437_s23 + $0xfc] sm:$0xf] %vm2204_vm0, %v3527_v35  ;;  %v2850_v22 = vsel %vm2333_vm1, %v2660_v63, 0.0  ;;  %v2852_v16 = vsel %vm2333_vm1, %v2661_v45, 0.0  ;;  %v2463_v39 = vsel %vm2333_vm1, %v4435_v44, 0.0  ;;  %v2663_v52 = vmul.f32 %v4456_v60, %v4456_v60 }
 0x26d   : > { %v2462_v56 = vadd.f32 %v2461_v29, %v2460_v13  ;;  %v2851_v9 = vadd.f32 %v2850_v22, %v2849_v14  ;;  %2332 = vst.msk [vmem:[%s4437_s23 + $0x1fc] sm:$0xf] %vm2204_vm0, %v3591_v2  ;;  %v2854_v6 = vsel %vm2333_vm1, %v2662_v15, 0.0  ;;  %v2465_v35 = vsel %vm2333_vm1, %v4456_v60, 0.0 }
 0x26e   : > { %v2664_v13 = vmul.f32 %v4463_v8, %v4463_v8  ;;  %v2856_v45 = vsel %vm2333_vm1, %v2663_v52, 0.0  ;;  %v2467_v44 = vsel %vm2333_vm1, %v4463_v8, 0.0  ;;  %v2665_v27 = vmul.f32 %v4481_v24, %v4481_v24 }
 0x26f   : > { %v2464_v34 = vadd.f32 %v2463_v39, %v2462_v56  ;;  %v2853_v62 = vadd.f32 %v2852_v16, %v2851_v9  ;;  %v2469_v60 = vsel %vm2333_vm1, %v4481_v24, 0.0  ;;  %v2666_v22 = vmul.f32 %v4488_v37, %v4488_v37 }
 0x270   : > { %v2858_v15 = vsel %vm2333_vm1, %v2664_v13, 0.0  ;;  %v2860_v16 = vsel %vm2333_vm1, %v2665_v27, 0.0  ;;  %v2471_v8 = vsel %vm2333_vm1, %v4488_v37, 0.0  ;;  %v2667_v39 = vmul.f32 %v4506_v54, %v4506_v54 }
 0x271   : > { %v2466_v14 = vadd.f32 %v2465_v35, %v2464_v34  ;;  %v2855_v63 = vadd.f32 %v2854_v6, %v2853_v62  ;;  %v2862_v62 = vsel %vm2333_vm1, %v2666_v22, 0.0  ;;  %v2473_v24 = vsel %vm2333_vm1, %v4506_v54, 0.0 }
 0x272   : > { %v2668_v6 = vmul.f32 %v4513_v3, %v4513_v3  ;;  %v2475_v37 = vsel %vm2333_vm1, %v4513_v3, 0.0  ;;  %v2477_v54 = vsel %vm2333_vm1, %v4531_v20, 0.0  ;;  %v2671_v22 = vmul.f32 %v4552_v48, %v4552_v48 }
 0x273   : > { %v2468_v2 = vadd.f32 %v2467_v44, %v2466_v14  ;;  %v2857_v29 = vadd.f32 %v2856_v45, %v2855_v63  ;;  %v2864_v14 = vsel %vm2333_vm1, %v2667_v39, 0.0  ;;  %v2669_v63 = vmul.f32 %v4531_v20, %v4531_v20 }
 0x274   : > { %v2866_v27 = vsel %vm2333_vm1, %v2668_v6, 0.0 }
 0x275   : > { %v2470_v56 = vadd.f32 %v2469_v60, %v2468_v2  ;;  %v2859_v9 = vadd.f32 %v2858_v15, %v2857_v29  ;;  %v2670_v2 = vmul.f32 %v4537_v32, %v4537_v32  ;;  %v2868_v3 = vsel %vm2333_vm1, %v2669_v63, 0.0 }
 0x276   : > { %v2479_v60 = vsel %vm2333_vm1, %v4537_v32, 0.0  ;;  %v2481_v32 = vsel %vm2333_vm1, %v4552_v48, 0.0 }
 0x277   : > { %v2472_v52 = vadd.f32 %v2471_v8, %v2470_v56  ;;  %v2861_v34 = vadd.f32 %v2860_v16, %v2859_v9  ;;  %v2870_v9 = vsel %vm2333_vm1, %v2670_v2, 0.0  ;;  %v2672_v16 = vmul.f32 %v4557_v58, %v4557_v58 }
 0x279   : > { %v2474_v35 = vadd.f32 %v2473_v24, %v2472_v52  ;;  %v2863_v13 = vadd.f32 %v2862_v62, %v2861_v34 }
 0x27b   : > { %v2476_v45 = vadd.f32 %v2475_v37, %v2474_v35  ;;  %v2865_v44 = vadd.f32 %v2864_v14, %v2863_v13 }
 0x27d   : > { %v2478_v29 = vadd.f32 %v2477_v54, %v2476_v45  ;;  %v2867_v15 = vadd.f32 %v2866_v27, %v2865_v44 }
 0x27f   : > { %v2480_v20 = vadd.f32 %v2479_v60, %v2478_v29  ;;  %v2869_v56 = vadd.f32 %v2868_v3, %v2867_v15 }
 0x280   : > { %3957 = shalt.err (!%p3954_p7)
}
 0x281   : > { %s3958_s24 = scalar_lea.hbm %s5148_s6, 8192  ;;  %s3962_s21 = scalar_lea.hbm %s5537_s2, 16384 }
 0x282   : > { %p3959_p9 = scmp.ne.s32.totalorder %s5148_s6, %s3958_s24  ;;  %p3963_p5 = scmp.lt.u32.totalorder %s5148_s6, %s5537_s2 }
 0x283   : > { %p3964_p11 = scmp.lt.u32.totalorder %s3962_s21, %s3958_s24  ;;  %p3966_p4 = scmp.lt.u32.totalorder %s3958_s24, %s5148_s6 }
 0x284   : > { %p3960_p2 = pnand %p3959_p9, %p4206_p12 }
 0x285   : > { %p3965_p1 = por %p3964_p11, %p3963_p5 }
 0x286   : > { %p3961_p0 = pneg %p3960_p2 }
 0x287   : > { %p3967_p6 = por %p3966_p4, %p3965_p1 }
 0x289   : > { %p3968_p8 = pnand %p3967_p6, %p3961_p0 }
 0x28b   : > { %3971 = shalt.err (!%p3968_p8)
}
 0x28c   : > { %s4084_s29 = smov 64   ;;  %s4085_s11 = smov 4   ;;  %v2482_v48 = vadd.f32 %v2481_v32, %v2480_v20  ;;  %v2871_v8 = vadd.f32 %v2870_v9, %v2869_v56  ;;  %v2872_v39 = vsel %vm2333_vm1, %v2671_v22, 0.0  ;;  %v2483_v52 = vsel %vm2333_vm1, %v4557_v58, 0.0 }
 0x28d   : > { %3631 = dma.vmem_to_hbm [thread:$0]  (%p4206_p12), %s5150_s28, 8192, %s5148_s6, %s2988_s26, %s4084_s29, %s4084_s29, %s4085_s11   ;;  %v2673_v34 = vmul.f32 %v4572_v10, %v4572_v10  ;;  %v2874_v6 = vsel %vm2333_vm1, %v2672_v16, 0.0  ;;  %v2485_v35 = vsel %vm2333_vm1, %v4572_v10, 0.0  ;;  %v2674_v13 = vmul.f32 %v4577_v19, %v4577_v19 }
 0x28e   : > { %v2484_v62 = vadd.f32 %v2483_v52, %v2482_v48  ;;  %v2873_v24 = vadd.f32 %v2872_v39, %v2871_v8  ;;  %v2487_v58 = vsel %vm2333_vm1, %v4577_v19, 0.0  ;;  %v2675_v45 = vmul.f32 %v4592_v36, %v4592_v36  ;;  %s2992_s28 = sand.u32 1, %s4134_s19   ;;  %s3458_s6 = sshll.u32 %s4134_s19, 4 }
 0x28f   : > { %v2876_v63 = vsel %vm2333_vm1, %v2673_v34, 0.0  ;;  %v2878_v54 = vsel %vm2333_vm1, %v2674_v13, 0.0  ;;  %v2489_v10 = vsel %vm2333_vm1, %v4592_v36, 0.0  ;;  %v2676_v2 = vmul.f32 %v4597_v47, %v4597_v47  ;;  %s241_s26 = scalar_lea.vmem [#allocation8], %s4254_s14  ;;  %s247_s25 = scalar_lea.vmem [#allocation10], %s4254_s14 }
 0x290   : > { %v2486_v14 = vadd.f32 %v2485_v35, %v2484_v62  ;;  %v2875_v37 = vadd.f32 %v2874_v6, %v2873_v24  ;;  %v2880_v3 = vsel %vm2333_vm1, %v2675_v45, 0.0  ;;  %v2491_v19 = vsel %vm2333_vm1, %v4597_v47, 0.0  ;;  %s3025_s9 = sshll.u32 %s241_s26, 4  ;;  %s3038_s12 = sshll.u32 %s247_s25, 4  ;;  %s5456_s9 = int_to_ptr.vmem [resolvable:$true] %s3025_s9  ;;  %s5464_s12 = int_to_ptr.vmem [resolvable:$true] %s3038_s12 }
 0x291   : > { %v2677_v60 = vmul.f32 %v4612_v0, %v4612_v0  ;;  %v2882_v56 = vsel %vm2333_vm1, %v2676_v2, 0.0  ;;  %v2493_v36 = vsel %vm2333_vm1, %v4612_v0, 0.0  ;;  %v2678_v9 = vmul.f32 %v4617_v12, %v4617_v12  ;;  %s5454_s7 = scalar_lea.hbm %s5538_s3, %s3458_s6  ;;  %s5462_s21 = scalar_lea.hbm %s5539_s4, %s3458_s6 }
 0x292   : > { %v2488_v44 = vadd.f32 %v2487_v58, %v2486_v14  ;;  %v2877_v27 = vadd.f32 %v2876_v63, %v2875_v37  ;;  %v2495_v47 = vsel %vm2333_vm1, %v4617_v12, 0.0  ;;  %v2679_v8 = vmul.f32 %v4632_v28, %v4632_v28  ;;  %s5466_s23 = scalar_lea.sflag [#allocation9], %s2992_s28  ;;  %s3972_s10 = scalar_lea.vmem %s5456_s9, 16 }
 0x293   : > { %v2884_v48 = vsel %vm2333_vm1, %v2677_v60, 0.0  ;;  %v2886_v34 = vsel %vm2333_vm1, %v2678_v9, 0.0  ;;  %v2497_v0 = vsel %vm2333_vm1, %v4632_v28, 0.0  ;;  %v2680_v62 = vmul.f32 %v4637_v41, %v4637_v41  ;;  %p3973_p10 = scmp.ne.s32.totalorder %s5456_s9, %s3972_s10  ;;  %s4086_s29 = smov [#allocation8]  }
 0x294   : > { %v2490_v29 = vadd.f32 %v2489_v10, %v2488_v44  ;;  %v2879_v15 = vadd.f32 %v2878_v54, %v2877_v27  ;;  %v2888_v35 = vsel %vm2333_vm1, %v2679_v8, 0.0  ;;  %v2499_v12 = vsel %vm2333_vm1, %v4637_v41, 0.0  ;;  %s3976_s11 = sshll.u32 %s4086_s29, 4  ;;  %s3977_s11 = int_to_ptr.vmem [resolvable:$false] %s3976_s11 }
 0x295   : > { %v2681_v13 = vmul.f32 %v4652_v59, %v4652_v59  ;;  %v2890_v63 = vsel %vm2333_vm1, %v2680_v62, 0.0  ;;  %v2501_v28 = vsel %vm2333_vm1, %v4652_v59, 0.0  ;;  %v2682_v58 = vmul.f32 %v4657_v7, %v4657_v7  ;;  %p3974_p13 = pnand %p3973_p10, %p4206_p12  ;;  %s3978_s13 = scalar_lea.vmem %s3977_s11, 32 }
 0x296   : > { %v2492_v22 = vadd.f32 %v2491_v19, %v2490_v29  ;;  %v2881_v20 = vadd.f32 %v2880_v3, %v2879_v15  ;;  %v2503_v41 = vsel %vm2333_vm1, %v4657_v7, 0.0  ;;  %v2683_v54 = vmul.f32 %v4672_v26, %v4672_v26  ;;  %p3979_p7 = scmp.lt.s32.totalorder %s5456_s9, %s3977_s11  ;;  %p3980_p9 = scmp.lt.s32.totalorder %s3978_s13, %s3972_s10 }
 0x297   : > { %v2892_v27 = vsel %vm2333_vm1, %v2681_v13, 0.0  ;;  %v2894_v29 = vsel %vm2333_vm1, %v2682_v58, 0.0  ;;  %v2505_v59 = vsel %vm2333_vm1, %v4672_v26, 0.0  ;;  %v2684_v15 = vmul.f32 %v4677_v40, %v4677_v40  ;;  %p3975_p3 = pneg %p3974_p13 }
 0x298   : > { %v2494_v32 = vadd.f32 %v2493_v36, %v2492_v22  ;;  %v2883_v16 = vadd.f32 %v2882_v56, %v2881_v20  ;;  %v2896_v60 = vsel %vm2333_vm1, %v2683_v54, 0.0  ;;  %v2507_v7 = vsel %vm2333_vm1, %v4677_v40, 0.0  ;;  %p3981_p2 = por %p3980_p9, %p3979_p7 }
 0x299   : > { %v2685_v22 = vmul.f32 %v4692_v61, %v4692_v61  ;;  %v2898_v36 = vsel %vm2333_vm1, %v2684_v15, 0.0  ;;  %v2509_v26 = vsel %vm2333_vm1, %v4692_v61, 0.0  ;;  %v2686_v9 = vmul.f32 %v4697_v11, %v4697_v11 }
 0x29a   : > { %v2885_v39 = vadd.f32 %v2884_v48, %v2883_v16  ;;  %v2496_v52 = vadd.f32 %v2495_v47, %v2494_v32  ;;  %v2511_v40 = vsel %vm2333_vm1, %v4697_v11, 0.0  ;;  %v2687_v47 = vmul.f32 %v4712_v30, %v4712_v30  ;;  %p3982_p0 = pnand %p3981_p2, %p3975_p3 }
 0x29b   : > { %v2900_v48 = vsel %vm2333_vm1, %v2685_v22, 0.0  ;;  %v2513_v61 = vsel %vm2333_vm1, %v4712_v30, 0.0  ;;  %v2515_v11 = vsel %vm2333_vm1, %v4717_v46, 0.0  ;;  %v2517_v30 = vsel %vm2333_vm1, %v4732_v4, 0.0 }
 0x29c   : > { %v2498_v24 = vadd.f32 %v2497_v0, %v2496_v52  ;;  %v2887_v6 = vadd.f32 %v2886_v34, %v2885_v39  ;;  %v2902_v52 = vsel %vm2333_vm1, %v2686_v9, 0.0  ;;  %v2688_v34 = vmul.f32 %v4717_v46, %v4717_v46 }
 0x29d   : > { %v2519_v46 = vsel %vm2333_vm1, %v4737_v18, 0.0  ;;  %v2691_v58 = vmul.f32 %v4752_v43, %v4752_v43  ;;  %v2696_v9 = vmul.f32 %v4797_v17, %v4797_v17  ;;  %vm2595_vm2 = vcmask 516096  }
 0x29e   : > { %v2500_v14 = vadd.f32 %v2499_v12, %v2498_v24  ;;  %v2889_v37 = vadd.f32 %v2888_v35, %v2887_v6  ;;  %v2904_v24 = vsel %vm2333_vm1, %v2687_v47, 0.0  ;;  %v2689_v6 = vmul.f32 %v4732_v4, %v4732_v4 }
 0x29f   : > { %v2906_v13 = vsel %vm2333_vm1, %v2688_v34, 0.0  ;;  %v2521_v4 = vsel %vm2333_vm1, %v4752_v43, 0.0  ;;  %v2525_v43 = vsel %vm2333_vm1, %v4772_v21, 0.0 }
 0x2a0   : > { %v2502_v45 = vadd.f32 %v2501_v28, %v2500_v14  ;;  %v2891_v44 = vadd.f32 %v2890_v63, %v2889_v37  ;;  %v2690_v14 = vmul.f32 %v4737_v18, %v4737_v18  ;;  %v2908_v28 = vsel %vm2333_vm1, %v2689_v6, 0.0 }
 0x2a1   : > { %v2523_v18 = vsel %vm2333_vm1, %v4757_v57, 0.0 }
 0x2a2   : > { %v2504_v10 = vadd.f32 %v2503_v41, %v2502_v45  ;;  %v2893_v2 = vadd.f32 %v2892_v27, %v2891_v44  ;;  %v2910_v27 = vsel %vm2333_vm1, %v2690_v14, 0.0  ;;  %v2692_v41 = vmul.f32 %v4757_v57, %v4757_v57 }
 0x2a3   : > { %v2527_v57 = vsel %vm2333_vm1, %v4777_v38, 0.0  ;;  %v2701_v14 = vmul.f32 %v4852_v25, %v4852_v25 }
 0x2a4   : > { %v2506_v3 = vadd.f32 %v2505_v59, %v2504_v10  ;;  %v2895_v19 = vadd.f32 %v2894_v29, %v2893_v2  ;;  %v2912_v2 = vsel %vm2333_vm1, %v2691_v58, 0.0  ;;  %v2693_v29 = vmul.f32 %v4772_v21, %v4772_v21 }
 0x2a5   : > { %v2529_v21 = vsel %vm2333_vm1, %v4792_v1, 0.0 }
 0x2a6   : > { %v2508_v20 = vadd.f32 %v2507_v7, %v2506_v3  ;;  %v2897_v56 = vadd.f32 %v2896_v60, %v2895_v19  ;;  %v2914_v3 = vsel %vm2333_vm1, %v2692_v41, 0.0  ;;  %v2694_v19 = vmul.f32 %v4777_v38, %v4777_v38 }
 0x2a7   : > { %v2916_v22 = vsel %vm2333_vm1, %v2693_v29, 0.0  ;;  %v2531_v38 = vsel %vm2333_vm1, %v4797_v17, 0.0  ;;  %v2535_v17 = vsel %vm2333_vm1, %v4817_v5, 0.0 }
 0x2a8   : > { %v2510_v32 = vadd.f32 %v2509_v26, %v2508_v20  ;;  %v2899_v16 = vadd.f32 %v2898_v36, %v2897_v56  ;;  %v2695_v20 = vmul.f32 %v4792_v1, %v4792_v1  ;;  %v2918_v26 = vsel %vm2333_vm1, %v2694_v19, 0.0 }
 0x2a9   : > { %v2533_v1 = vsel %vm2333_vm1, %v4812_v50, 0.0  ;;  %v2706_v19 = vmul.f32 %v4897_v53, %v4897_v53 }
 0x2aa   : > { %v2512_v8 = vadd.f32 %v2511_v40, %v2510_v32  ;;  %v2901_v39 = vadd.f32 %v2900_v48, %v2899_v16  ;;  %v2920_v48 = vsel %vm2333_vm1, %v2695_v20, 0.0  ;;  %v2697_v40 = vmul.f32 %v4812_v50, %v4812_v50 }
 0x2ab   : > { %v2537_v50 = vsel %vm2333_vm1, %v4832_v33, 0.0 }
 0x2ac   : > { %v2514_v0 = vadd.f32 %v2513_v61, %v2512_v8  ;;  %v2903_v62 = vadd.f32 %v2902_v52, %v2901_v39  ;;  %v2922_v39 = vsel %vm2333_vm1, %v2696_v9, 0.0  ;;  %v2698_v52 = vmul.f32 %v4817_v5, %v4817_v5 }
 0x2ad   : > { %v2539_v5 = vsel %vm2333_vm1, %v4837_v55, 0.0 }
 0x2ae   : > { %v2516_v35 = vadd.f32 %v2515_v11, %v2514_v0  ;;  %v2905_v12 = vadd.f32 %v2904_v24, %v2903_v62  ;;  %v2924_v0 = vsel %vm2333_vm1, %v2697_v40, 0.0  ;;  %v2699_v62 = vmul.f32 %v4832_v33, %v4832_v33 }
 0x2af   : > { %v2926_v6 = vsel %vm2333_vm1, %v2698_v52, 0.0  ;;  %v2541_v33 = vsel %vm2333_vm1, %v4852_v25, 0.0  ;;  %v2545_v25 = vsel %vm2333_vm1, %v4872_v23, 0.0  ;;  %v5608_v52 = vld [vmem:[#allocation18_spill] sm:$0xff] }
 0x2b0   : > { %v2518_v37 = vadd.f32 %v2517_v30, %v2516_v35  ;;  %v2907_v63 = vadd.f32 %v2906_v13, %v2905_v12  ;;  %v2700_v35 = vmul.f32 %v4837_v55, %v4837_v55  ;;  %v2928_v30 = vsel %vm2333_vm1, %v2699_v62, 0.0 }
 0x2b1   : > { %v2543_v55 = vsel %vm2333_vm1, %v4857_v51, 0.0  ;;  %v2559_v62 = vsel %vm2333_vm1, %v5608_v52, 0.0 }
 0x2b2   : > { %v2520_v45 = vadd.f32 %v2519_v46, %v2518_v37  ;;  %v2909_v44 = vadd.f32 %v2908_v28, %v2907_v63  ;;  %v2930_v28 = vsel %vm2333_vm1, %v2700_v35, 0.0  ;;  %v2702_v46 = vmul.f32 %v4857_v51, %v4857_v51 }
 0x2b3   : > { %v2547_v51 = vsel %vm2333_vm1, %v4877_v49, 0.0 }
 0x2b4   : > { %v2522_v54 = vadd.f32 %v2521_v4, %v2520_v45  ;;  %v2911_v10 = vadd.f32 %v2910_v27, %v2909_v44  ;;  %v2932_v44 = vsel %vm2333_vm1, %v2701_v14, 0.0  ;;  %v2703_v27 = vmul.f32 %v4872_v23, %v4872_v23 }
 0x2b5   : > { %v2549_v23 = vsel %vm2333_vm1, %v4892_v31, 0.0 }
 0x2b6   : > { %v2524_v59 = vadd.f32 %v2523_v18, %v2522_v54  ;;  %v2913_v15 = vadd.f32 %v2912_v2, %v2911_v10  ;;  %v2934_v54 = vsel %vm2333_vm1, %v2702_v46, 0.0  ;;  %v2704_v10 = vmul.f32 %v4877_v49, %v4877_v49 }
 0x2b7   : > { %v2936_v29 = vsel %vm2333_vm1, %v2703_v27, 0.0  ;;  %v2551_v49 = vsel %vm2333_vm1, %v4897_v53, 0.0 }
 0x2b8   : > { %v2526_v60 = vadd.f32 %v2525_v43, %v2524_v59  ;;  %v2915_v7 = vadd.f32 %v2914_v3, %v2913_v15  ;;  %v2705_v59 = vmul.f32 %v4892_v31, %v4892_v31  ;;  %v2938_v43 = vsel %vm2333_vm1, %v2704_v10, 0.0  ;;  %v5613_v10 = vld [vmem:[#allocation23_spill] sm:$0xff] }
 0x2ba   : > { %v2917_v56 = vadd.f32 %v2916_v22, %v2915_v7  ;;  %v2528_v36 = vadd.f32 %v2527_v57, %v2526_v60  ;;  %v2940_v22 = vsel %vm2333_vm1, %v2705_v59, 0.0  ;;  %v5605_v57 = vld [vmem:[#allocation15_spill] sm:$0xff]  ;;  %v2569_v59 = vsel %vm2333_vm1, %v5613_v10, 0.0 }
 0x2bb   : > { %v2707_v20 = vmul.f32 %v5605_v57, %v5605_v57  ;;  %v2553_v31 = vsel %vm2333_vm1, %v5605_v57, 0.0 }
 0x2bc   : > { %v2919_v32 = vadd.f32 %v2918_v26, %v2917_v56  ;;  %v2530_v16 = vadd.f32 %v2529_v21, %v2528_v36  ;;  %v2942_v26 = vsel %vm2333_vm1, %v2706_v19, 0.0  ;;  %v5606_v21 = vld [vmem:[#allocation16_spill] sm:$0xff] }
 0x2bd   : > { %v2708_v9 = vmul.f32 %v5606_v21, %v5606_v21  ;;  %v2555_v53 = vsel %vm2333_vm1, %v5606_v21, 0.0 }
 0x2be   : > { %v2921_v47 = vadd.f32 %v2920_v48, %v2919_v32  ;;  %v2532_v8 = vadd.f32 %v2531_v38, %v2530_v16  ;;  %v2944_v48 = vsel %vm2333_vm1, %v2707_v20, 0.0  ;;  %v5607_v38 = vld [vmem:[#allocation17_spill] sm:$0xff] }
 0x2bf   : > { %v2709_v40 = vmul.f32 %v5607_v38, %v5607_v38 }
 0x2c0   : > { %v2923_v61 = vadd.f32 %v2922_v39, %v2921_v47  ;;  %v2534_v34 = vadd.f32 %v2533_v1, %v2532_v8  ;;  %v2946_v39 = vsel %vm2333_vm1, %v2708_v9, 0.0  ;;  %v2557_v1 = vsel %vm2333_vm1, %v5607_v38, 0.0 }
 0x2c2   : > { %v2925_v24 = vadd.f32 %v2924_v0, %v2923_v61  ;;  %v2536_v11 = vadd.f32 %v2535_v17, %v2534_v34  ;;  %v2710_v61 = vmul.f32 %v5608_v52, %v5608_v52  ;;  %v2948_v17 = vsel %vm2333_vm1, %v2709_v40, 0.0 }
 0x2c4   : > { %v2927_v12 = vadd.f32 %v2926_v6, %v2925_v24  ;;  %v2538_v13 = vadd.f32 %v2537_v50, %v2536_v11  ;;  %v5609_v24 = vld [vmem:[#allocation19_spill] sm:$0xff]  ;;  %v2950_v35 = vsel %vm2333_vm1, %v2710_v61, 0.0 }
 0x2c5   : > { %v2711_v11 = vmul.f32 %v5609_v24, %v5609_v24 }
 0x2c6   : > { %v2929_v37 = vadd.f32 %v2928_v30, %v2927_v12  ;;  %v2540_v63 = vadd.f32 %v2539_v5, %v2538_v13  ;;  %v2561_v12 = vsel %vm2333_vm1, %v5609_v24, 0.0  ;;  %v5610_v13 = vld [vmem:[#allocation20_spill] sm:$0xff] }
 0x2c7   : > { %v2712_v30 = vmul.f32 %v5610_v13, %v5610_v13 }
 0x2c8   : > { %v2931_v58 = vadd.f32 %v2930_v28, %v2929_v37  ;;  %v2542_v45 = vadd.f32 %v2541_v33, %v2540_v63  ;;  %v2952_v37 = vsel %vm2333_vm1, %v2711_v11, 0.0  ;;  %v2563_v63 = vsel %vm2333_vm1, %v5610_v13, 0.0  ;;  %v5611_v28 = vld [vmem:[#allocation21_spill] sm:$0xff] }
 0x2c9   : > { %v2713_v33 = vmul.f32 %v5611_v28, %v5611_v28 }
 0x2ca   : > { %v2933_v4 = vadd.f32 %v2932_v44, %v2931_v58  ;;  %v2544_v41 = vadd.f32 %v2543_v55, %v2542_v45  ;;  %v2954_v45 = vsel %vm2333_vm1, %v2712_v30, 0.0  ;;  %v2565_v44 = vsel %vm2333_vm1, %v5611_v28, 0.0  ;;  %v5612_v55 = vld [vmem:[#allocation22_spill] sm:$0xff] }
 0x2cb   : > { %v2714_v27 = vmul.f32 %v5612_v55, %v5612_v55 }
 0x2cc   : > { %v2935_v2 = vadd.f32 %v2934_v54, %v2933_v4  ;;  %v2546_v18 = vadd.f32 %v2545_v25, %v2544_v41  ;;  %v2956_v54 = vsel %vm2333_vm1, %v2713_v33, 0.0  ;;  %v2567_v25 = vsel %vm2333_vm1, %v5612_v55, 0.0 }
 0x2ce   : > { %v2937_v15 = vadd.f32 %v2936_v29, %v2935_v2  ;;  %v2548_v3 = vadd.f32 %v2547_v51, %v2546_v18  ;;  %v2715_v2 = vmul.f32 %v5613_v10, %v5613_v10  ;;  %v2958_v51 = vsel %vm2333_vm1, %v2714_v27, 0.0 }
 0x2cf   : > { %v2587_v27 = vsel %vm2333_vm1, %v5079_v42, 0.0 }
 0x2d0   : > { %v2939_v60 = vadd.f32 %v2938_v43, %v2937_v15  ;;  %v2550_v7 = vadd.f32 %v2549_v23, %v2548_v3  ;;  %v5614_v15 = vld [vmem:[#allocation24_spill] sm:$0xff]  ;;  %v2960_v19 = vsel %vm2333_vm1, %v2715_v2, 0.0 }
 0x2d1   : > { %v2716_v3 = vmul.f32 %v5614_v15, %v5614_v15 }
 0x2d2   : > { %v2941_v56 = vadd.f32 %v2940_v22, %v2939_v60  ;;  %v2552_v36 = vadd.f32 %v2551_v49, %v2550_v7  ;;  %v2571_v60 = vsel %vm2333_vm1, %v5614_v15, 0.0  ;;  %v5615_v7 = vld [vmem:[#allocation25_spill] sm:$0xff] }
 0x2d3   : > { %v2717_v22 = vmul.f32 %v5615_v7, %v5615_v7  ;;  %v2962_v20 = vsel %vm2333_vm1, %v2716_v3, 0.0 }
 0x2d4   : > { %v2943_v32 = vadd.f32 %v2942_v26, %v2941_v56  ;;  %v2554_v16 = vadd.f32 %v2553_v31, %v2552_v36  ;;  %v2573_v56 = vsel %vm2333_vm1, %v5615_v7, 0.0  ;;  %v5616_v36 = vld [vmem:[#allocation26_spill] sm:$0xff] }
 0x2d5   : > { %v2718_v26 = vmul.f32 %v5616_v36, %v5616_v36  ;;  %v2964_v9 = vsel %vm2333_vm1, %v2717_v22, 0.0 }
 0x2d6   : > { %v2945_v47 = vadd.f32 %v2944_v48, %v2943_v32  ;;  %v2556_v8 = vadd.f32 %v2555_v53, %v2554_v16  ;;  %v2575_v32 = vsel %vm2333_vm1, %v5616_v36, 0.0  ;;  %v5617_v16 = vld [vmem:[#allocation27_spill] sm:$0xff] }
 0x2d7   : > { %v2719_v48 = vmul.f32 %v5617_v16, %v5617_v16  ;;  %v2966_v40 = vsel %vm2333_vm1, %v2718_v26, 0.0 }
 0x2d8   : > { %v2947_v34 = vadd.f32 %v2946_v39, %v2945_v47  ;;  %v2558_v0 = vadd.f32 %v2557_v1, %v2556_v8  ;;  %v2577_v47 = vsel %vm2333_vm1, %v5617_v16, 0.0  ;;  %v5618_v8 = vld [vmem:[#allocation28_spill] sm:$0xff] }
 0x2d9   : > { %v2720_v39 = vmul.f32 %v5618_v8, %v5618_v8  ;;  %v2968_v61 = vsel %vm2333_vm1, %v2719_v48, 0.0 }
 0x2da   : > { %v2949_v6 = vadd.f32 %v2948_v17, %v2947_v34  ;;  %v2560_v50 = vadd.f32 %v2559_v62, %v2558_v0  ;;  %v2579_v34 = vsel %vm2333_vm1, %v5618_v8, 0.0  ;;  %v5619_v0 = vld [vmem:[#allocation29_spill] sm:$0xff] }
 0x2db   : > { %v2721_v17 = vmul.f32 %v5619_v0, %v5619_v0  ;;  %v2970_v11 = vsel %vm2333_vm1, %v2720_v39, 0.0 }
 0x2dc   : > { %v2951_v5 = vadd.f32 %v2950_v35, %v2949_v6  ;;  %v2562_v14 = vadd.f32 %v2561_v12, %v2560_v50  ;;  %v2581_v6 = vsel %vm2333_vm1, %v5619_v0, 0.0  ;;  %v5620_v50 = vld [vmem:[#allocation30_spill] sm:$0xff]  ;;  %v5621_v12 = vld [vmem:[#allocation31_spill] sm:$0xff] }
 0x2dd   : > { %v2722_v35 = vmul.f32 %v5620_v50, %v5620_v50  ;;  %v2723_v13 = vmul.f32 %v5621_v12, %v5621_v12 }
 0x2de   : > { %v2953_v46 = vadd.f32 %v2952_v37, %v2951_v5  ;;  %v2564_v58 = vadd.f32 %v2563_v63, %v2562_v14  ;;  %v2972_v14 = vsel %vm2333_vm1, %v2721_v17, 0.0  ;;  %v2583_v37 = vsel %vm2333_vm1, %v5620_v50, 0.0 }
 0x2df   : > { %v2585_v63 = vsel %vm2333_vm1, %v5621_v12, 0.0 }
 0x2e0   : > { %v2955_v4 = vadd.f32 %v2954_v45, %v2953_v46  ;;  %v2566_v41 = vadd.f32 %v2565_v44, %v2564_v58  ;;  %v2974_v46 = vsel %vm2333_vm1, %v2722_v35, 0.0  ;;  %v2976_v58 = vsel %vm2333_vm1, %v2723_v13, 0.0 }
 0x2e1   : > { %v2724_v45 = vmul.f32 %v5079_v42, %v5079_v42 }
 0x2e2   : > { %v2957_v18 = vadd.f32 %v2956_v54, %v2955_v4  ;;  %v2568_v29 = vadd.f32 %v2567_v25, %v2566_v41 }
 0x2e3   : > { %v2978_v54 = vsel %vm2333_vm1, %v2724_v45, 0.0 }
 0x2e4   : > { %v2959_v43 = vadd.f32 %v2958_v51, %v2957_v18  ;;  %v2570_v23 = vadd.f32 %v2569_v59, %v2568_v29 }
 0x2e6   : > { %v2961_v49 = vadd.f32 %v2960_v19, %v2959_v43  ;;  %v2572_v57 = vadd.f32 %v2571_v60, %v2570_v23 }
 0x2e8   : > { %v2963_v31 = vadd.f32 %v2962_v20, %v2961_v49  ;;  %v2574_v21 = vadd.f32 %v2573_v56, %v2572_v57 }
 0x2ea   : > { %v2965_v53 = vadd.f32 %v2964_v9, %v2963_v31  ;;  %v2576_v38 = vadd.f32 %v2575_v32, %v2574_v21 }
 0x2ec   : > { %v2967_v1 = vadd.f32 %v2966_v40, %v2965_v53  ;;  %v2578_v52 = vadd.f32 %v2577_v47, %v2576_v38 }
 0x2ee   : > { %v2969_v62 = vadd.f32 %v2968_v61, %v2967_v1  ;;  %v2580_v24 = vadd.f32 %v2579_v34, %v2578_v52 }
 0x2f0   : > { %v2971_v30 = vadd.f32 %v2970_v11, %v2969_v62  ;;  %v2582_v5 = vadd.f32 %v2581_v6, %v2580_v24 }
 0x2f2   : > { %v2973_v28 = vadd.f32 %v2972_v14, %v2971_v30  ;;  %v2584_v33 = vadd.f32 %v2583_v37, %v2582_v5 }
 0x2f4   : > { %v2975_v44 = vadd.f32 %v2974_v46, %v2973_v28  ;;  %v2586_v55 = vadd.f32 %v2585_v63, %v2584_v33 }
 0x2f6   : > { %v2977_v4 = vadd.f32 %v2976_v58, %v2975_v44  ;;  %v2588_v41 = vadd.f32 %v2587_v27, %v2586_v55 }
 0x2f8   : > { %v2589_v25 = vrot.slane %v2588_v41, 4  ;;  %v2979_v10 = vadd.f32 %v2978_v54, %v2977_v4 }
 0x2fa   : > { %v2590_v2 = vadd.f32 %v2589_v25, %v2588_v41  ;;  %v2980_v18 = vrot.slane %v2979_v10, 4 }
 0x2fc   : > { %v2591_v29 = vrot.slane %v2590_v2, 2  ;;  %v2981_v51 = vadd.f32 %v2980_v18, %v2979_v10 }
 0x2fe   : > { %v2592_v59 = vadd.f32 %v2591_v29, %v2590_v2  ;;  %v2982_v15 = vrot.slane %v2981_v51, 2 }
 0x300   : > { %v2593_v3 = vrot.slane %v2592_v59, 1  ;;  %v2983_v42 = vadd.f32 %v2982_v15, %v2981_v51 }
 0x302   : > { %v2594_v43 = vadd.f32 %v2593_v3, %v2592_v59  ;;  %v2984_v23 = vrot.slane %v2983_v42, 1 }
 0x304   : > { %v2985_v19 = vadd.f32 %v2984_v23, %v2983_v42  ;;  %2596 = vst.msk [vmem:[%s241_s26] sm:$0x1] %vm2595_vm2, %v2594_v43 }
 0x305   : > { %3985 = shalt.err (!%p3982_p0)
}
 0x306   : > { %s3986_s28 = scalar_lea.hbm %s5454_s7, 16  ;;  %s3990_s24 = scalar_lea.hbm %s5538_s3, 32 }
 0x307   : > { %p3987_p5 = scmp.ne.s32.totalorder %s5454_s7, %s3986_s28  ;;  %p3991_p4 = scmp.lt.u32.totalorder %s5454_s7, %s5538_s3 }
 0x308   : > { %p3992_p6 = scmp.lt.u32.totalorder %s3990_s24, %s3986_s28  ;;  %p3994_p10 = scmp.lt.u32.totalorder %s3986_s28, %s5454_s7 }
 0x309   : > { %p3988_p11 = pnand %p3987_p5, %p4206_p12 }
 0x30a   : > { %p3993_p8 = por %p3992_p6, %p3991_p4 }
 0x30b   : > { %p3989_p1 = pneg %p3988_p11 }
 0x30c   : > { %p3995_p13 = por %p3994_p10, %p3993_p8 }
 0x30e   : > { %p3996_p3 = pnand %p3995_p13, %p3989_p1 }
 0x310   : > { %3999 = shalt.err (!%p3996_p3)
}
 0x311   : > { %3632 = dma.vmem_to_hbm [thread:$0]  (%p4206_p12), %s5456_s9, 16, %s5454_s7, %s5466_s23   ;;  %2986 = vst.msk [vmem:[%s247_s25] sm:$0x1] %vm2595_vm2, %v2985_v19 }
 0x312   : > { %s4000_s10 = scalar_lea.vmem %s5464_s12, 16  ;;  %s4087_s29 = smov [#allocation10]  }
 0x313   : > { %p4001_p7 = scmp.ne.s32.totalorder %s5464_s12, %s4000_s10  ;;  %s4004_s11 = sshll.u32 %s4087_s29, 4  ;;  %s4005_s11 = int_to_ptr.vmem [resolvable:$false] %s4004_s11 }
 0x314   : > { %s4006_s13 = scalar_lea.vmem %s4005_s11, 32  ;;  %p4007_p0 = scmp.lt.s32.totalorder %s5464_s12, %s4005_s11 }
 0x315   : > { %p4002_p9 = pnand %p4001_p7, %p4206_p12  ;;  %p4008_p5 = scmp.lt.s32.totalorder %s4006_s13, %s4000_s10 }
 0x317   : > { %p4003_p2 = pneg %p4002_p9  ;;  %p4009_p11 = por %p4008_p5, %p4007_p0 }
 0x319   : > { %p4010_p1 = pnand %p4009_p11, %p4003_p2 }
 0x31b   : > { %4013 = shalt.err (!%p4010_p1)
}
 0x31c   : > { %s4014_s14 = scalar_lea.hbm %s5462_s21, 16  ;;  %s4018_s7 = scalar_lea.hbm %s5539_s4, 32 }
 0x31d   : > { %p4015_p4 = scmp.ne.s32.totalorder %s5462_s21, %s4014_s14  ;;  %p4019_p10 = scmp.lt.u32.totalorder %s5462_s21, %s5539_s4 }
 0x31e   : > { %p4020_p13 = scmp.lt.u32.totalorder %s4018_s7, %s4014_s14  ;;  %p4022_p7 = scmp.lt.u32.totalorder %s4014_s14, %s5462_s21 }
 0x31f   : > { %p4016_p6 = pnand %p4015_p4, %p4206_p12 }
 0x320   : > { %p4021_p3 = por %p4020_p13, %p4019_p10 }
 0x321   : > { %p4017_p8 = pneg %p4016_p6 }
 0x322   : > { %p4023_p9 = por %p4022_p7, %p4021_p3 }
 0x324   : > { %p4024_p2 = pnand %p4023_p9, %p4017_p8 }
 0x326   : > { %4027 = shalt.err (!%p4024_p2)
}
 0x327   : > { %3633 = dma.vmem_to_hbm [thread:$0]  (%p4206_p12), %s5464_s12, 16, %s5462_s21, %s5466_s23  }
 0x328 PF: > { %s3050_s26 = sand.u32 1, %s4062_s15   ;;  %p5622_p0 = scmp.ne.s32.totalorder %s5578_s22, 0 }
 0x329   : > { %p5623_p5 = scmp.ge.s32.totalorder %s4074_s18, 2  ;;  %s3051_s24 = scalar_lea.sflag [#allocation4], %s3050_s26 }
 0x32b   : > { %p3646_p11 = pnand %p5623_p5, %p5622_p0 }
 0x32d   : > { %4053 = dma.done.wait (!%p3646_p11), %s3051_s24, 8192  }
 0x32e   : > { %4055 = vsyncadd (!%p3646_p11), %s3051_s24, 4294959104  ;;  %s3059_s19 = sand.u32 1, %s3171_s20  }
 0x32f   : > { %s3060_s8 = scalar_lea.sflag [#allocation9], %s3059_s19 }
 0x330   : > { %4057 = dma.done.wait (!%p3646_p11), %s3060_s8, 32  }
 0x331   : > { %4059 = vsyncadd (!%p3646_p11), %s3060_s8, 4294967264  ;;  %p22_p12 = scmp.ge.s32.totalorder %s4171_s27, 4   ;;  %s5624_s15 = smov %s4066_s16 }
 0x332   : > { %s5625_s16 = smov %s4070_s17  ;;  %s5626_s17 = smov %s4202_s30 }
 0x333   : > { %s5627_s18 = smov %s4171_s27  ;;  %24 = sbr.rel (!%p22_p12) target bundleno = 8 (0x8), region = 109 }
 0x33a   :  { %3072 = vsyncpa [#allocation3], 1 }
 0x33b   :  { %3074 = vsyncpa [#allocation3 + $0x1], 1 }
 0x33c   :  { %3075 = vsyncpa [#allocation6], 1 }
 0x33d   :  { %3076 = vsyncpa [#allocation4], 1 }
 0x33e   :  { %3078 = vsyncpa [#allocation4 + $0x1], 1 }
 0x33f   :  { %3079 = vsyncpa [#allocation9], 1 }
 0x340   :  { %3081 = vsyncpa [#allocation9 + $0x1], 1 }

</bundles_post_ra>
